<compile_context>
chip_gen: v6e
topology: v6e:2x2x1
jax: 0.10.0
libtpu: 0.0.40
codegen_flags: <defaults>
</compile_context>

<pallas_src>
import jax
import jax.numpy as jnp
from jax import lax
from jax.experimental import pallas as pl
from jax.experimental.pallas import tpu as pltpu

EPS = 1e-5


def conv_bn_relu_pool_kernel(cols_ref, w_ref, bias_ref, out_ref):
    """Fused (5x5 conv, stride 1, pad 2) + BatchNorm(eval) + ReLU + 2x2 MaxPool
    for a block of B images.

    cols_ref : (4, B*P, K) bf16  im2col patches, one slab per 2x2 pool offset,
                                 P = (H//2)*(W//2), K = 25*Cin
    w_ref    : (K, Cout)   bf16  conv weights with BN scale folded in
    bias_ref : (1, Cout)   f32   folded bias = (conv_b - running_mean)*scale + beta
    out_ref  : (B*P, Cout) f32   pooled activations
    """
    w = w_ref[...]
    # One large-M GEMM per pooling offset (M = B*P), running elementwise max on
    # the VPU.  Max-pool commutes with the per-channel bias add and with ReLU.
    m = jnp.dot(cols_ref[0], w, preferred_element_type=jnp.float32)
    for a in range(1, 4):
        m = jnp.maximum(m, jnp.dot(cols_ref[a], w,
                                   preferred_element_type=jnp.float32))
    out_ref[...] = jnp.maximum(m + bias_ref[...], 0.0)


def fc_kernel(x_ref, w_ref, b_ref, out_ref):
    out_ref[...] = jnp.dot(x_ref[...], w_ref[...],
                           preferred_element_type=jnp.float32) + b_ref[...]


def _pick_batch_block(n, rows_per_item, max_block):
    """Largest divisor B of n with B <= max_block and (B*rows_per_item) % 16 == 0
    (sublane-aligned blocks even for bf16).  Falls back to the full batch
    (a block equal to the full array extent is always legal)."""
    for b in range(min(n, max_block), 0, -1):
        if n % b == 0 and (b * rows_per_item) % 16 == 0:
            return b
    return n


def _im2col_pool_offsets(x_nhwc):
    """JAX glue: im2col patch matrices, one slab per 2x2 pooling offset.

    x_nhwc: (N, H, W, Cin)  ->  (4, N*(H//2)*(W//2), 25*Cin)  bf16
    Row order inside each slab is (image, pooled_row, pooled_col).
    """
    n, h, w, cin = x_nhwc.shape
    p = (h // 2) * (w // 2)
    xp = jnp.pad(x_nhwc, ((0, 0), (2, 2), (2, 2), (0, 0)))
    taps = [xp[:, kh:kh + h, kw:kw + w, :] for kh in range(5) for kw in range(5)]
    patches = jnp.stack(taps, axis=-2).reshape(n, h, w, 25 * cin)
    offs = [patches[:, a::2, b::2, :].reshape(n * p, 25 * cin)
            for a in range(2) for b in range(2)]
    # TODO(synk): patch extraction still materializes the 25x-inflated im2col
    # array in HBM; in-kernel patch building (DMA the raw image tile) is not
    # implemented.
    return jnp.stack(offs, axis=0).astype(jnp.bfloat16)


def conv_bn_relu_pool(x_nhwc, w_hwio, conv_b, gamma, beta, rmean, rvar,
                      *, max_batch_block=32):
    n, h, w, cin = x_nhwc.shape
    cout = w_hwio.shape[-1]
    ho, wo = h // 2, w // 2
    p, k = ho * wo, 25 * cin

    cols = _im2col_pool_offsets(x_nhwc)                       # (4, N*P, K) bf16
    scale = gamma / jnp.sqrt(rvar + EPS)                      # (Cout,)
    w_eff = (w_hwio.reshape(k, cout) * scale).astype(jnp.bfloat16)
    bias = ((conv_b - rmean) * scale + beta).reshape(1, cout).astype(jnp.float32)

    bb = _pick_batch_block(n, p, max_batch_block)             # images per step
    out = pl.pallas_call(
        conv_bn_relu_pool_kernel,
        out_shape=jax.ShapeDtypeStruct((n * p, cout), jnp.float32),
        grid=(n // bb,),
        in_specs=[
            pl.BlockSpec((4, bb * p, k), lambda i: (0, i, 0)),
            pl.BlockSpec((k, cout), lambda i: (0, 0)),
            pl.BlockSpec((1, cout), lambda i: (0, 0)),
        ],
        out_specs=pl.BlockSpec((bb * p, cout), lambda i: (i, 0)),
        compiler_params=pltpu.CompilerParams(dimension_semantics=("parallel",)),
    )(cols, w_eff, bias)
    return out.reshape(n, ho, wo, cout)                       # back to NHWC


def fc(x, w, b, *, max_batch_block=256):
    n, k = x.shape
    nc = w.shape[-1]
    bb = _pick_batch_block(n, 1, max_batch_block)
    return pl.pallas_call(
        fc_kernel,
        out_shape=jax.ShapeDtypeStruct((n, nc), jnp.float32),
        grid=(n // bb,),
        in_specs=[
            pl.BlockSpec((bb, k), lambda i: (i, 0)),
            pl.BlockSpec((k, nc), lambda i: (0, 0)),
            pl.BlockSpec((1, nc), lambda i: (0, 0)),
        ],
        out_specs=pl.BlockSpec((bb, nc), lambda i: (i, 0)),
        compiler_params=pltpu.CompilerParams(dimension_semantics=("parallel",)),
    )(x.astype(jnp.bfloat16), w.astype(jnp.bfloat16),
      b.reshape(1, nc).astype(jnp.float32))


def _permute_fc_weight(wfc, c, p):
    """PyTorch flattens NCHW: row = ch*P + pos.  Our activations flatten NHWC:
    row = pos*C + ch.  Permute wfc rows once at trace time."""
    nc = wfc.shape[-1]
    return wfc.reshape(c, p, nc).transpose(1, 0, 2).reshape(c * p, nc)


def convnet_forward(x_nchw, params):
    # TODO(synk): BatchNorm2d is applied in eval mode (running stats folded into
    # scale/bias); training-mode batch statistics are not implemented.
    x = jnp.transpose(x_nchw, (0, 2, 3, 1)).astype(jnp.float32)   # NCHW -> NHWC
    y = conv_bn_relu_pool(x, params["w1"], params["b1"], params["g1"],
                          params["bt1"], params["rm1"], params["rv1"])
    y = conv_bn_relu_pool(y, params["w2"], params["b2"], params["g2"],
                          params["bt2"], params["rm2"], params["rv2"])
    n, ho, wo, c = y.shape
    # Flatten directly in NHWC order; the FC weight is permuted to match, so the
    # NHWC->NCHW activation transpose is no longer needed.
    y = y.reshape(n, ho * wo * c)
    wfc_hwc = _permute_fc_weight(params["wfc"], c, ho * wo)
    return fc(y, wfc_hwc, params["bfc"])


def ref_forward(x_nchw, p):
    """Pure-JAX reference (PyTorch ConvNet.forward semantics, BN in eval mode)."""
    def block(x, w, b, g, bt, rm, rv):
        y = lax.conv_general_dilated(
            x, w, window_strides=(1, 1), padding=[(2, 2), (2, 2)],
            dimension_numbers=("NHWC", "HWIO", "NHWC"),
            precision=lax.Precision.HIGHEST) + b
        y = (y - rm) / jnp.sqrt(rv + EPS) * g + bt
        y = jnp.maximum(y, 0.0)
        n, h, w_, c = y.shape
        return y.reshape(n, h // 2, 2, w_ // 2, 2, c).max(axis=(2, 4))

    x = jnp.transpose(x_nchw, (0, 2, 3, 1)).astype(jnp.float32)
    y = block(x, p["w1"], p["b1"], p["g1"], p["bt1"], p["rm1"], p["rv1"])
    y = block(y, p["w2"], p["b2"], p["g2"], p["bt2"], p["rm2"], p["rv2"])
    y = jnp.transpose(y, (0, 3, 1, 2)).reshape(y.shape[0], -1)
    return jnp.dot(y, p["wfc"], precision=lax.Precision.HIGHEST) + p["bfc"]


if __name__ == "__main__":
    key = jax.random.PRNGKey(0)
    ks = jax.random.split(key, 16)
    f32 = jnp.float32
    params = {
        "w1": 0.10 * jax.random.normal(ks[0], (5, 5, 1, 16), f32),
        "b1": 0.10 * jax.random.normal(ks[1], (16,), f32),
        "g1": 1.0 + 0.10 * jax.random.normal(ks[2], (16,), f32),
        "bt1": 0.10 * jax.random.normal(ks[3], (16,), f32),
        "rm1": 0.10 * jax.random.normal(ks[4], (16,), f32),
        "rv1": 1.0 + 0.10 * jnp.abs(jax.random.normal(ks[5], (16,), f32)),
        "w2": 0.05 * jax.random.normal(ks[6], (5, 5, 16, 32), f32),
        "b2": 0.10 * jax.random.normal(ks[7], (32,), f32),
        "g2": 1.0 + 0.10 * jax.random.normal(ks[8], (32,), f32),
        "bt2": 0.10 * jax.random.normal(ks[9], (32,), f32),
        "rm2": 0.10 * jax.random.normal(ks[10], (32,), f32),
        "rv2": 1.0 + 0.10 * jnp.abs(jax.random.normal(ks[11], (32,), f32)),
        "wfc": 0.02 * jax.random.normal(ks[12], (7 * 7 * 32, 10), f32),
        "bfc": 0.10 * jax.random.normal(ks[13], (10,), f32),
    }
    # MNIST-shaped input (the fc layer hard-codes 7*7*32, so spatial must be 28).
    x = jax.random.normal(ks[14], (2, 1, 28, 28), f32)

    out = jax.block_until_ready(jax.jit(convnet_forward)(x, params))
    assert out.shape == (2, 10) and out.dtype == jnp.float32

    ref = jax.block_until_ready(jax.jit(ref_forward)(x, params))
    max_diff = float(jnp.max(jnp.abs(out - ref)))
    # Kernel uses native bf16 MXU (f32 accumulate); reference uses HIGHEST f32.
    # Observed error is ~1e-3; 2e-2 leaves headroom while still catching bugs.
    assert max_diff < 2e-2, f"kernel/reference mismatch: max|diff|={max_diff}"
    print("KERNEL_OK")
</pallas_src>

<mosaic_0001>
module attributes {stable_mosaic.version = 11 : i64} {
  func.func @conv_bn_relu_pool_kernel(%arg0: i32, %arg1: memref<4x392x25xbf16, #tpu.memory_space<vmem>>, %arg2: memref<25x16xbf16, #tpu.memory_space<vmem>>, %arg3: memref<1x16xf32, #tpu.memory_space<vmem>>, %arg4: memref<392x16xf32, #tpu.memory_space<vmem>>) attributes {dimension_semantics = [#tpu.dimension_semantics<parallel>], iteration_bounds = array<i64: 1>, scalar_prefetch = 0 : i64, scratch_operands = 0 : i64, tpu.core_type = #tpu.core_type<tc>, window_params = [{transform_indices = @transform_0, window_bounds = array<i64: 4, 392, 25>}, {pipeline_mode = #tpu.pipeline_mode<synchronous>, transform_indices = @transform_1, window_bounds = array<i64: 25, 16>}, {pipeline_mode = #tpu.pipeline_mode<synchronous>, transform_indices = @transform_2, window_bounds = array<i64: 1, 16>}, {transform_indices = @transform_3, window_bounds = array<i64: 392, 16>}]} {
    %c0 = arith.constant 0 : index
    %c0_0 = arith.constant 0 : index
    %0 = vector.load %arg2[%c0, %c0_0] : memref<25x16xbf16, #tpu.memory_space<vmem>>, vector<25x16xbf16>
    %c0_1 = arith.constant 0 : index
    %c0_2 = arith.constant 0 : index
    %c0_3 = arith.constant 0 : index
    %1 = vector.load %arg1[%c0_1, %c0_2, %c0_3] : memref<4x392x25xbf16, #tpu.memory_space<vmem>>, vector<1x392x25xbf16>
    %2 = vector.shape_cast %1 : vector<1x392x25xbf16> to vector<392x25xbf16>
    %cst = arith.constant dense<0.000000e+00> : vector<392x16xf32>
    %3 = tpu.matmul %2, %0, %cst {dimension_numbers = #tpu.dot_dimension_numbers<[1], [0], [0], [1], [0, 0, 1, 1], [], []>} : vector<392x25xbf16>, vector<25x16xbf16>, vector<392x16xf32> -> vector<392x16xf32>
    %c1 = arith.constant 1 : index
    %c0_4 = arith.constant 0 : index
    %c0_5 = arith.constant 0 : index
    %4 = vector.load %arg1[%c1, %c0_4, %c0_5] : memref<4x392x25xbf16, #tpu.memory_space<vmem>>, vector<1x392x25xbf16>
    %5 = vector.shape_cast %4 : vector<1x392x25xbf16> to vector<392x25xbf16>
    %cst_6 = arith.constant dense<0.000000e+00> : vector<392x16xf32>
    %6 = tpu.matmul %5, %0, %cst_6 {dimension_numbers = #tpu.dot_dimension_numbers<[1], [0], [0], [1], [0, 0, 1, 1], [], []>} : vector<392x25xbf16>, vector<25x16xbf16>, vector<392x16xf32> -> vector<392x16xf32>
    %7 = arith.maximumf %3, %6 : vector<392x16xf32>
    %c2 = arith.constant 2 : index
    %c0_7 = arith.constant 0 : index
    %c0_8 = arith.constant 0 : index
    %8 = vector.load %arg1[%c2, %c0_7, %c0_8] : memref<4x392x25xbf16, #tpu.memory_space<vmem>>, vector<1x392x25xbf16>
    %9 = vector.shape_cast %8 : vector<1x392x25xbf16> to vector<392x25xbf16>
    %cst_9 = arith.constant dense<0.000000e+00> : vector<392x16xf32>
    %10 = tpu.matmul %9, %0, %cst_9 {dimension_numbers = #tpu.dot_dimension_numbers<[1], [0], [0], [1], [0, 0, 1, 1], [], []>} : vector<392x25xbf16>, vector<25x16xbf16>, vector<392x16xf32> -> vector<392x16xf32>
    %11 = arith.maximumf %7, %10 : vector<392x16xf32>
    %c3 = arith.constant 3 : index
    %c0_10 = arith.constant 0 : index
    %c0_11 = arith.constant 0 : index
    %12 = vector.load %arg1[%c3, %c0_10, %c0_11] : memref<4x392x25xbf16, #tpu.memory_space<vmem>>, vector<1x392x25xbf16>
    %13 = vector.shape_cast %12 : vector<1x392x25xbf16> to vector<392x25xbf16>
    %cst_12 = arith.constant dense<0.000000e+00> : vector<392x16xf32>
    %14 = tpu.matmul %13, %0, %cst_12 {dimension_numbers = #tpu.dot_dimension_numbers<[1], [0], [0], [1], [0, 0, 1, 1], [], []>} : vector<392x25xbf16>, vector<25x16xbf16>, vector<392x16xf32> -> vector<392x16xf32>
    %15 = arith.maximumf %11, %14 : vector<392x16xf32>
    %c0_13 = arith.constant 0 : index
    %c0_14 = arith.constant 0 : index
    %16 = vector.load %arg3[%c0_13, %c0_14] : memref<1x16xf32, #tpu.memory_space<vmem>>, vector<1x16xf32>
    %17 = vector.broadcast %16 : vector<1x16xf32> to vector<392x16xf32>
    %18 = arith.addf %15, %17 : vector<392x16xf32>
    %cst_15 = arith.constant 0.000000e+00 : f32
    %19 = vector.broadcast %cst_15 : f32 to vector<392x16xf32>
    %20 = arith.maximumf %18, %19 : vector<392x16xf32>
    %c0_16 = arith.constant 0 : index
    %c0_17 = arith.constant 0 : index
    %21 = vector.load %arg4[%c0_16, %c0_17] : memref<392x16xf32, #tpu.memory_space<vmem>>, vector<392x16xf32>
    tpu.vector_store %arg4[%c0_16, %c0_17], %20 {strides = array<i32>} : memref<392x16xf32, #tpu.memory_space<vmem>>, vector<392x16xf32>,
    return
  }
  func.func @transform_0(%arg0: i32) -> (i32, i32, i32) {
    %c0_i32 = arith.constant 0 : i32
    %c0_i32_0 = arith.constant 0 : i32
    %c0_i32_1 = arith.constant 0 : i32
    return %c0_i32, %arg0, %c0_i32_0 : i32, i32, i32
  }
  func.func @transform_1(%arg0: i32) -> (i32, i32) {
    %c0_i32 = arith.constant 0 : i32
    %c0_i32_0 = arith.constant 0 : i32
    %c0_i32_1 = arith.constant 0 : i32
    return %c0_i32, %c0_i32_0 : i32, i32
  }
  func.func @transform_2(%arg0: i32) -> (i32, i32) {
    %c0_i32 = arith.constant 0 : i32
    %c0_i32_0 = arith.constant 0 : i32
    %c0_i32_1 = arith.constant 0 : i32
    return %c0_i32, %c0_i32_0 : i32, i32
  }
  func.func @transform_3(%arg0: i32) -> (i32, i32) {
    %c0_i32 = arith.constant 0 : i32
    %c0_i32_0 = arith.constant 0 : i32
    return %arg0, %c0_i32 : i32, i32
  }
}

module attributes {stable_mosaic.version = 11 : i64} {
  func.func @conv_bn_relu_pool_kernel(%arg0: i32, %arg1: memref<4x98x400xbf16, #tpu.memory_space<vmem>>, %arg2: memref<400x32xbf16, #tpu.memory_space<vmem>>, %arg3: memref<1x32xf32, #tpu.memory_space<vmem>>, %arg4: memref<98x32xf32, #tpu.memory_space<vmem>>) attributes {dimension_semantics = [#tpu.dimension_semantics<parallel>], iteration_bounds = array<i64: 1>, scalar_prefetch = 0 : i64, scratch_operands = 0 : i64, tpu.core_type = #tpu.core_type<tc>, window_params = [{transform_indices = @transform_0, window_bounds = array<i64: 4, 98, 400>}, {pipeline_mode = #tpu.pipeline_mode<synchronous>, transform_indices = @transform_1, window_bounds = array<i64: 400, 32>}, {pipeline_mode = #tpu.pipeline_mode<synchronous>, transform_indices = @transform_2, window_bounds = array<i64: 1, 32>}, {transform_indices = @transform_3, window_bounds = array<i64: 98, 32>}]} {
    %c0 = arith.constant 0 : index
    %c0_0 = arith.constant 0 : index
    %0 = vector.load %arg2[%c0, %c0_0] : memref<400x32xbf16, #tpu.memory_space<vmem>>, vector<400x32xbf16>
    %c0_1 = arith.constant 0 : index
    %c0_2 = arith.constant 0 : index
    %c0_3 = arith.constant 0 : index
    %1 = vector.load %arg1[%c0_1, %c0_2, %c0_3] : memref<4x98x400xbf16, #tpu.memory_space<vmem>>, vector<1x98x400xbf16>
    %2 = vector.shape_cast %1 : vector<1x98x400xbf16> to vector<98x400xbf16>
    %cst = arith.constant dense<0.000000e+00> : vector<98x32xf32>
    %3 = tpu.matmul %2, %0, %cst {dimension_numbers = #tpu.dot_dimension_numbers<[1], [0], [0], [1], [0, 0, 1, 1], [], []>} : vector<98x400xbf16>, vector<400x32xbf16>, vector<98x32xf32> -> vector<98x32xf32>
    %c1 = arith.constant 1 : index
    %c0_4 = arith.constant 0 : index
    %c0_5 = arith.constant 0 : index
    %4 = vector.load %arg1[%c1, %c0_4, %c0_5] : memref<4x98x400xbf16, #tpu.memory_space<vmem>>, vector<1x98x400xbf16>
    %5 = vector.shape_cast %4 : vector<1x98x400xbf16> to vector<98x400xbf16>
    %cst_6 = arith.constant dense<0.000000e+00> : vector<98x32xf32>
    %6 = tpu.matmul %5, %0, %cst_6 {dimension_numbers = #tpu.dot_dimension_numbers<[1], [0], [0], [1], [0, 0, 1, 1], [], []>} : vector<98x400xbf16>, vector<400x32xbf16>, vector<98x32xf32> -> vector<98x32xf32>
    %7 = arith.maximumf %3, %6 : vector<98x32xf32>
    %c2 = arith.constant 2 : index
    %c0_7 = arith.constant 0 : index
    %c0_8 = arith.constant 0 : index
    %8 = vector.load %arg1[%c2, %c0_7, %c0_8] : memref<4x98x400xbf16, #tpu.memory_space<vmem>>, vector<1x98x400xbf16>
    %9 = vector.shape_cast %8 : vector<1x98x400xbf16> to vector<98x400xbf16>
    %cst_9 = arith.constant dense<0.000000e+00> : vector<98x32xf32>
    %10 = tpu.matmul %9, %0, %cst_9 {dimension_numbers = #tpu.dot_dimension_numbers<[1], [0], [0], [1], [0, 0, 1, 1], [], []>} : vector<98x400xbf16>, vector<400x32xbf16>, vector<98x32xf32> -> vector<98x32xf32>
    %11 = arith.maximumf %7, %10 : vector<98x32xf32>
    %c3 = arith.constant 3 : index
    %c0_10 = arith.constant 0 : index
    %c0_11 = arith.constant 0 : index
    %12 = vector.load %arg1[%c3, %c0_10, %c0_11] : memref<4x98x400xbf16, #tpu.memory_space<vmem>>, vector<1x98x400xbf16>
    %13 = vector.shape_cast %12 : vector<1x98x400xbf16> to vector<98x400xbf16>
    %cst_12 = arith.constant dense<0.000000e+00> : vector<98x32xf32>
    %14 = tpu.matmul %13, %0, %cst_12 {dimension_numbers = #tpu.dot_dimension_numbers<[1], [0], [0], [1], [0, 0, 1, 1], [], []>} : vector<98x400xbf16>, vector<400x32xbf16>, vector<98x32xf32> -> vector<98x32xf32>
    %15 = arith.maximumf %11, %14 : vector<98x32xf32>
    %c0_13 = arith.constant 0 : index
    %c0_14 = arith.constant 0 : index
    %16 = vector.load %arg3[%c0_13, %c0_14] : memref<1x32xf32, #tpu.memory_space<vmem>>, vector<1x32xf32>
    %17 = vector.broadcast %16 : vector<1x32xf32> to vector<98x32xf32>
    %18 = arith.addf %15, %17 : vector<98x32xf32>
    %cst_15 = arith.constant 0.000000e+00 : f32
    %19 = vector.broadcast %cst_15 : f32 to vector<98x32xf32>
    %20 = arith.maximumf %18, %19 : vector<98x32xf32>
    %c0_16 = arith.constant 0 : index
    %c0_17 = arith.constant 0 : index
    %21 = vector.load %arg4[%c0_16, %c0_17] : memref<98x32xf32, #tpu.memory_space<vmem>>, vector<98x32xf32>
    tpu.vector_store %arg4[%c0_16, %c0_17], %20 {strides = array<i32>} : memref<98x32xf32, #tpu.memory_space<vmem>>, vector<98x32xf32>,
    return
  }
  func.func @transform_0(%arg0: i32) -> (i32, i32, i32) {
    %c0_i32 = arith.constant 0 : i32
    %c0_i32_0 = arith.constant 0 : i32
    %c0_i32_1 = arith.constant 0 : i32
    return %c0_i32, %arg0, %c0_i32_0 : i32, i32, i32
  }
  func.func @transform_1(%arg0: i32) -> (i32, i32) {
    %c0_i32 = arith.constant 0 : i32
    %c0_i32_0 = arith.constant 0 : i32
    %c0_i32_1 = arith.constant 0 : i32
    return %c0_i32, %c0_i32_0 : i32, i32
  }
  func.func @transform_2(%arg0: i32) -> (i32, i32) {
    %c0_i32 = arith.constant 0 : i32
    %c0_i32_0 = arith.constant 0 : i32
    %c0_i32_1 = arith.constant 0 : i32
    return %c0_i32, %c0_i32_0 : i32, i32
  }
  func.func @transform_3(%arg0: i32) -> (i32, i32) {
    %c0_i32 = arith.constant 0 : i32
    %c0_i32_0 = arith.constant 0 : i32
    return %arg0, %c0_i32 : i32, i32
  }
}

module attributes {stable_mosaic.version = 11 : i64} {
  func.func @fc_kernel(%arg0: i32, %arg1: memref<2x1568xbf16, #tpu.memory_space<vmem>>, %arg2: memref<1568x10xbf16, #tpu.memory_space<vmem>>, %arg3: memref<1x10xf32, #tpu.memory_space<vmem>>, %arg4: memref<2x10xf32, #tpu.memory_space<vmem>>) attributes {dimension_semantics = [#tpu.dimension_semantics<parallel>], iteration_bounds = array<i64: 1>, scalar_prefetch = 0 : i64, scratch_operands = 0 : i64, tpu.core_type = #tpu.core_type<tc>, window_params = [{transform_indices = @transform_0, window_bounds = array<i64: 2, 1568>}, {pipeline_mode = #tpu.pipeline_mode<synchronous>, transform_indices = @transform_1, window_bounds = array<i64: 1568, 10>}, {pipeline_mode = #tpu.pipeline_mode<synchronous>, transform_indices = @transform_2, window_bounds = array<i64: 1, 10>}, {transform_indices = @transform_3, window_bounds = array<i64: 2, 10>}]} {
    %c0 = arith.constant 0 : index
    %c0_0 = arith.constant 0 : index
    %0 = vector.load %arg1[%c0, %c0_0] : memref<2x1568xbf16, #tpu.memory_space<vmem>>, vector<2x1568xbf16>
    %c0_1 = arith.constant 0 : index
    %c0_2 = arith.constant 0 : index
    %1 = vector.load %arg2[%c0_1, %c0_2] : memref<1568x10xbf16, #tpu.memory_space<vmem>>, vector<1568x10xbf16>
    %cst = arith.constant dense<0.000000e+00> : vector<2x10xf32>
    %2 = tpu.matmul %0, %1, %cst {dimension_numbers = #tpu.dot_dimension_numbers<[1], [0], [0], [1], [0, 0, 1, 1], [], []>} : vector<2x1568xbf16>, vector<1568x10xbf16>, vector<2x10xf32> -> vector<2x10xf32>
    %c0_3 = arith.constant 0 : index
    %c0_4 = arith.constant 0 : index
    %3 = vector.load %arg3[%c0_3, %c0_4] : memref<1x10xf32, #tpu.memory_space<vmem>>, vector<1x10xf32>
    %4 = vector.broadcast %3 : vector<1x10xf32> to vector<2x10xf32>
    %5 = arith.addf %2, %4 : vector<2x10xf32>
    %c0_5 = arith.constant 0 : index
    %c0_6 = arith.constant 0 : index
    %6 = vector.load %arg4[%c0_5, %c0_6] : memref<2x10xf32, #tpu.memory_space<vmem>>, vector<2x10xf32>
    tpu.vector_store %arg4[%c0_5, %c0_6], %5 {strides = array<i32>} : memref<2x10xf32, #tpu.memory_space<vmem>>, vector<2x10xf32>,
    return
  }
  func.func @transform_0(%arg0: i32) -> (i32, i32) {
    %c0_i32 = arith.constant 0 : i32
    %c0_i32_0 = arith.constant 0 : i32
    return %arg0, %c0_i32 : i32, i32
  }
  func.func @transform_1(%arg0: i32) -> (i32, i32) {
    %c0_i32 = arith.constant 0 : i32
    %c0_i32_0 = arith.constant 0 : i32
    %c0_i32_1 = arith.constant 0 : i32
    return %c0_i32, %c0_i32_0 : i32, i32
  }
  func.func @transform_2(%arg0: i32) -> (i32, i32) {
    %c0_i32 = arith.constant 0 : i32
    %c0_i32_0 = arith.constant 0 : i32
    %c0_i32_1 = arith.constant 0 : i32
    return %c0_i32, %c0_i32_0 : i32, i32
  }
  func.func @transform_3(%arg0: i32) -> (i32, i32) {
    %c0_i32 = arith.constant 0 : i32
    %c0_i32_0 = arith.constant 0 : i32
    return %arg0, %c0_i32 : i32, i32
  }
}

</mosaic_0001>

<bundles_post_ra>
// kernel: convnet_forward.3
= control target key start
LH: loop header
LB: loop body
LE: loop exit
PB: predicated region body
PF: predicated region fallthrough
CT: control target
= control target key end

     0   :  { %vm278_vm0 = vcmask 1043456   ;;  %vm279_vm1 = vcmask 1044480   ;;  %v4574_v0 = vmov 0.0   ;;  %v3243_v2 = vmov 65535   ;;  %s4570_s1 = inlined_call_operand.vmem [shape: bf16[25,16], index: 1, kind: input, shape index: {}]   ;;  %s4571_s0 = inlined_call_operand.vmem [shape: bf16[4,392,25], index: 0, kind: input, shape index: {}]   ;;  %s4572_s2 = inlined_call_operand.vmem [shape: f32[1,16], index: 2, kind: input, shape index: {}]   ;;  %s4573_s3 = inlined_call_operand.vmem [shape: f32[392,16], index: 3, kind: output, shape index: {}]  }
   0x1   :  { %2721 = vmatprep.subr.bf16.mxu0 %v4574_v0  ;;  %2825 = vmatprep.subr.bf16.mxu1 %v4574_v0  ;;  %v3140_v1 = vld [vmem:[%s4570_s1 + $0x8] sm:$0x1f]   ;;  %v280_v3 = vsel %vm278_vm0, 4294967295, %v3243_v2  ;;  %vm3244_vm2 = vmmov 0   ;;  %v3141_v6 = vld [vmem:[%s4570_s1] sm:$0xff]   ;;  %vm202_vm3 = vcmask 203776  }
   0x2   :  { %v281_v4 = vsel %vm279_vm1, %v280_v3, 0  ;;  %2725 = vmatprep.mubr.msk.bf16.mxu0 %vm3244_vm2, %v4574_v0  ;;  %2829 = vmatprep.mubr.msk.bf16.mxu1 %vm3244_vm2, %v4574_v0  ;;  %v3142_v7 = vld [vmem:[%s4571_s0] sm:$0xff]   ;;  %v3144_v9 = vld [vmem:[%s4571_s0 + $0x8] sm:$0xff]   ;;  %v3146_v11 = vld [vmem:[%s4571_s0 + $0x10] sm:$0xff]   ;;  %vm2209_vm4 = vcmask 130048  }
   0x3   :  { %v283_v5 = vand.u32 %v3140_v1, %v281_v4  ;;  %v3143_v8 = vld [vmem:[%s4571_s0 + $0xc4] sm:$0xff]   ;;  %v3145_v10 = vld [vmem:[%s4571_s0 + $0xcc] sm:$0xff]   ;;  %v3147_v12 = vld [vmem:[%s4571_s0 + $0xd4] sm:$0xff]  }
   0x4   :  { %v3148_v13 = vld [vmem:[%s4571_s0 + $0x18] sm:$0xff]   ;;  %v3150_v15 = vld [vmem:[%s4571_s0 + $0x20] sm:$0xff]   ;;  %v3152_v17 = vld [vmem:[%s4571_s0 + $0x28] sm:$0xff]  }
   0x5   :  { %2722 = vmatpush3.bf16.msra.mxu0 %v283_v5  ;;  %2826 = vmatpush3.bf16.msra.mxu1 %v283_v5  ;;  %v3149_v14 = vld [vmem:[%s4571_s0 + $0xdc] sm:$0xff]   ;;  %v3151_v16 = vld [vmem:[%s4571_s0 + $0xe4] sm:$0xff]   ;;  %v3153_v18 = vld [vmem:[%s4571_s0 + $0xec] sm:$0xff]  }
   0x6   :  { %2723 = vmatprep.subr.bf16.mxu0 %v4574_v0  ;;  %2827 = vmatprep.subr.bf16.mxu1 %v4574_v0  ;;  %v3154_v19 = vld [vmem:[%s4571_s0 + $0x30] sm:$0xff]   ;;  %v3156_v21 = vld [vmem:[%s4571_s0 + $0x38] sm:$0xff]   ;;  %v3158_v23 = vld [vmem:[%s4571_s0 + $0x40] sm:$0xff]  }
   0x7   :  { %v3155_v20 = vld [vmem:[%s4571_s0 + $0xf4] sm:$0xff]   ;;  %v3157_v22 = vld [vmem:[%s4571_s0 + $0xfc] sm:$0xff]   ;;  %v3159_v24 = vld [vmem:[%s4571_s0 + $0x104] sm:$0xff]  }
   0x8   :  { %v3160_v25 = vld [vmem:[%s4571_s0 + $0x48] sm:$0xff]   ;;  %v3162_v27 = vld [vmem:[%s4571_s0 + $0x50] sm:$0xff]   ;;  %v3164_v29 = vld [vmem:[%s4571_s0 + $0x58] sm:$0xff]  }
   0x9   :  { %2724 = vmatpush3.bf16.msra.mxu0 %v3141_v6  ;;  %2828 = vmatpush3.bf16.msra.mxu1 %v3141_v6  ;;  %v3161_v26 = vld [vmem:[%s4571_s0 + $0x10c] sm:$0xff]   ;;  %v3163_v28 = vld [vmem:[%s4571_s0 + $0x114] sm:$0xff]   ;;  %v3165_v30 = vld [vmem:[%s4571_s0 + $0x11c] sm:$0xff]  }
   0xa   :  { %2929 = vmatprep.subr.bf16.mxu0 %v4574_v0  ;;  %3033 = vmatprep.subr.bf16.mxu1 %v4574_v0  ;;  %v3166_v31 = vld [vmem:[%s4571_s0 + $0x60] sm:$0xff]   ;;  %v3168_v33 = vld [vmem:[%s4571_s0 + $0x68] sm:$0xff]   ;;  %v3170_v35 = vld [vmem:[%s4571_s0 + $0x70] sm:$0xff]  }
   0xb   :  { %v3167_v32 = vld [vmem:[%s4571_s0 + $0x124] sm:$0xff]   ;;  %v3169_v34 = vld [vmem:[%s4571_s0 + $0x12c] sm:$0xff]   ;;  %v3171_v36 = vld [vmem:[%s4571_s0 + $0x134] sm:$0xff]  }
   0xc   :  { %2726 = vmatmul.mubr.msk.bf16.vlgmr.msra.gmra.mxu0 %vm202_vm3, %v3142_v7  ;;  %2830 = vmatmul.mubr.msk.bf16.vlgmr.msra.gmra.mxu1 %vm202_vm3, %v3143_v8  ;;  %v3172_v37 = vld [vmem:[%s4571_s0 + $0x78] sm:$0xff]   ;;  %v3174_v39 = vld [vmem:[%s4571_s0 + $0x80] sm:$0xff]   ;;  %v3176_v41 = vld [vmem:[%s4571_s0 + $0x88] sm:$0xff]  }
   0xd   :  { %2930 = vmatpush3.bf16.msra.mxu0 %v283_v5  ;;  %3034 = vmatpush3.bf16.msra.mxu1 %v283_v5  ;;  %v3173_v38 = vld [vmem:[%s4571_s0 + $0x13c] sm:$0xff]   ;;  %v3175_v40 = vld [vmem:[%s4571_s0 + $0x144] sm:$0xff]   ;;  %v3177_v42 = vld [vmem:[%s4571_s0 + $0x14c] sm:$0xff]  }
   0xe   :  { %2729 = vmatprep.mubr.msk.bf16.mxu0 %vm3244_vm2, %v4574_v0  ;;  %2833 = vmatprep.mubr.msk.bf16.mxu1 %vm3244_vm2, %v4574_v0  ;;  %v3178_v43 = vld [vmem:[%s4571_s0 + $0x90] sm:$0xff]   ;;  %v3180_v45 = vld [vmem:[%s4571_s0 + $0x98] sm:$0xff]   ;;  %v3182_v47 = vld [vmem:[%s4571_s0 + $0xa0] sm:$0xff]  }
   0xf   :  { %2931 = vmatprep.subr.bf16.mxu0 %v4574_v0  ;;  %3035 = vmatprep.subr.bf16.mxu1 %v4574_v0  ;;  %v3179_v44 = vld [vmem:[%s4571_s0 + $0x154] sm:$0xff]   ;;  %v3181_v46 = vld [vmem:[%s4571_s0 + $0x15c] sm:$0xff]   ;;  %v3183_v48 = vld [vmem:[%s4571_s0 + $0x164] sm:$0xff]  }
  0x10   :  { %v3184_v49 = vld [vmem:[%s4571_s0 + $0xa8] sm:$0xff]   ;;  %v3186_v51 = vld [vmem:[%s4571_s0 + $0xb0] sm:$0xff]   ;;  %v3188_v53 = vld [vmem:[%s4571_s0 + $0xb8] sm:$0xff]  }
  0x11   :  { %2932 = vmatpush3.bf16.msra.mxu0 %v3141_v6  ;;  %3036 = vmatpush3.bf16.msra.mxu1 %v3141_v6  ;;  %v3185_v50 = vld [vmem:[%s4571_s0 + $0x16c] sm:$0xff]   ;;  %v3187_v52 = vld [vmem:[%s4571_s0 + $0x174] sm:$0xff]   ;;  %v3189_v54 = vld [vmem:[%s4571_s0 + $0x17c] sm:$0xff]  }
  0x12   :  { %v3190_v55 = vld [vmem:[%s4571_s0 + $0xc0] ss:$0 sps:$4 sm:$0xff]   ;;  %v3191_v56 = vld [vmem:[%s4571_s0 + $0x184] ss:$0 sps:$4 sm:$0xff]   ;;  %v3192_v1 = vld [vmem:[%s4571_s0 + $0x188] sm:$0xff]  }
  0x13   :  { %v3193_v2 = vld [vmem:[%s4571_s0 + $0x24c] sm:$0xff]  }
  0x14   :  { %2730 = vmatmul.mubr.msk.bf16.gmra.mxu0 %vm202_vm3, %v3144_v9  ;;  %2834 = vmatmul.mubr.msk.bf16.gmra.mxu1 %vm202_vm3, %v3145_v10 }
  0x15   :  { %2733 = vmatprep.mubr.msk.bf16.mxu0 %vm3244_vm2, %v4574_v0  ;;  %2837 = vmatprep.mubr.msk.bf16.mxu1 %vm3244_vm2, %v4574_v0 }
  0x1c   :  { %2734 = vmatmul.mubr.msk.bf16.gmra.mxu0 %vm202_vm3, %v3146_v11  ;;  %2838 = vmatmul.mubr.msk.bf16.gmra.mxu1 %vm202_vm3, %v3147_v12 }
  0x1d   :  { %2737 = vmatprep.mubr.msk.bf16.mxu0 %vm3244_vm2, %v4574_v0  ;;  %2841 = vmatprep.mubr.msk.bf16.mxu1 %vm3244_vm2, %v4574_v0 }
  0x24   :  { %2738 = vmatmul.mubr.msk.bf16.gmra.mxu0 %vm202_vm3, %v3148_v13  ;;  %2842 = vmatmul.mubr.msk.bf16.gmra.mxu1 %vm202_vm3, %v3149_v14  ;;  %v3194_v13 = vld [vmem:[%s4571_s0 + $0x190] sm:$0xff]  }
  0x25   :  { %2741 = vmatprep.mubr.msk.bf16.mxu0 %vm3244_vm2, %v4574_v0  ;;  %2845 = vmatprep.mubr.msk.bf16.mxu1 %vm3244_vm2, %v4574_v0  ;;  %v3195_v14 = vld [vmem:[%s4571_s0 + $0x254] sm:$0xff]  }
  0x2c   :  { %2742 = vmatmul.mubr.msk.bf16.gmra.mxu0 %vm202_vm3, %v3150_v15  ;;  %2846 = vmatmul.mubr.msk.bf16.gmra.mxu1 %vm202_vm3, %v3151_v16 }
  0x2d   :  { %2745 = vmatprep.mubr.msk.bf16.mxu0 %vm3244_vm2, %v4574_v0  ;;  %2849 = vmatprep.mubr.msk.bf16.mxu1 %vm3244_vm2, %v4574_v0 }
  0x34   :  { %2746 = vmatmul.mubr.msk.bf16.gmra.mxu0 %vm202_vm3, %v3152_v17  ;;  %2850 = vmatmul.mubr.msk.bf16.gmra.mxu1 %vm202_vm3, %v3153_v18 }
  0x35   :  { %2749 = vmatprep.mubr.msk.bf16.mxu0 %vm3244_vm2, %v4574_v0  ;;  %2853 = vmatprep.mubr.msk.bf16.mxu1 %vm3244_vm2, %v4574_v0 }
  0x3c   :  { %2750 = vmatmul.mubr.msk.bf16.gmra.mxu0 %vm202_vm3, %v3154_v19  ;;  %2854 = vmatmul.mubr.msk.bf16.gmra.mxu1 %vm202_vm3, %v3155_v20 }
  0x3d   :  { %2753 = vmatprep.mubr.msk.bf16.mxu0 %vm3244_vm2, %v4574_v0  ;;  %2857 = vmatprep.mubr.msk.bf16.mxu1 %vm3244_vm2, %v4574_v0 }
  0x44   :  { %2754 = vmatmul.mubr.msk.bf16.gmra.mxu0 %vm202_vm3, %v3156_v21  ;;  %2858 = vmatmul.mubr.msk.bf16.gmra.mxu1 %vm202_vm3, %v3157_v22 }
  0x45   :  { %2757 = vmatprep.mubr.msk.bf16.mxu0 %vm3244_vm2, %v4574_v0  ;;  %2861 = vmatprep.mubr.msk.bf16.mxu1 %vm3244_vm2, %v4574_v0 }
  0x4c   :  { %2758 = vmatmul.mubr.msk.bf16.gmra.mxu0 %vm202_vm3, %v3158_v23  ;;  %2862 = vmatmul.mubr.msk.bf16.gmra.mxu1 %vm202_vm3, %v3159_v24 }
  0x4d   :  { %2761 = vmatprep.mubr.msk.bf16.mxu0 %vm3244_vm2, %v4574_v0  ;;  %2865 = vmatprep.mubr.msk.bf16.mxu1 %vm3244_vm2, %v4574_v0 }
  0x54   :  { %2762 = vmatmul.mubr.msk.bf16.gmra.mxu0 %vm202_vm3, %v3160_v25  ;;  %2866 = vmatmul.mubr.msk.bf16.gmra.mxu1 %vm202_vm3, %v3161_v26  ;;  %v3196_v25 = vld [vmem:[%s4571_s0 + $0x198] sm:$0xff]  }
  0x55   :  { %2765 = vmatprep.mubr.msk.bf16.mxu0 %vm3244_vm2, %v4574_v0  ;;  %2869 = vmatprep.mubr.msk.bf16.mxu1 %vm3244_vm2, %v4574_v0  ;;  %v3197_v26 = vld [vmem:[%s4571_s0 + $0x25c] sm:$0xff]  }
  0x5c   :  { %2766 = vmatmul.mubr.msk.bf16.gmra.mxu0 %vm202_vm3, %v3162_v27  ;;  %2870 = vmatmul.mubr.msk.bf16.gmra.mxu1 %vm202_vm3, %v3163_v28 }
  0x5d   :  { %2769 = vmatprep.mubr.msk.bf16.mxu0 %vm3244_vm2, %v4574_v0  ;;  %2873 = vmatprep.mubr.msk.bf16.mxu1 %vm3244_vm2, %v4574_v0 }
  0x64   :  { %2770 = vmatmul.mubr.msk.bf16.gmra.mxu0 %vm202_vm3, %v3164_v29  ;;  %2874 = vmatmul.mubr.msk.bf16.gmra.mxu1 %vm202_vm3, %v3165_v30 }
  0x65   :  { %2773 = vmatprep.mubr.msk.bf16.mxu0 %vm3244_vm2, %v4574_v0  ;;  %2877 = vmatprep.mubr.msk.bf16.mxu1 %vm3244_vm2, %v4574_v0 }
  0x6c   :  { %2774 = vmatmul.mubr.msk.bf16.gmra.mxu0 %vm202_vm3, %v3166_v31  ;;  %2878 = vmatmul.mubr.msk.bf16.gmra.mxu1 %vm202_vm3, %v3167_v32 }
  0x6d   :  { %2777 = vmatprep.mubr.msk.bf16.mxu0 %vm3244_vm2, %v4574_v0  ;;  %2881 = vmatprep.mubr.msk.bf16.mxu1 %vm3244_vm2, %v4574_v0 }
  0x74   :  { %2778 = vmatmul.mubr.msk.bf16.gmra.mxu0 %vm202_vm3, %v3168_v33  ;;  %2882 = vmatmul.mubr.msk.bf16.gmra.mxu1 %vm202_vm3, %v3169_v34 }
  0x75   :  { %2781 = vmatprep.mubr.msk.bf16.mxu0 %vm3244_vm2, %v4574_v0  ;;  %2885 = vmatprep.mubr.msk.bf16.mxu1 %vm3244_vm2, %v4574_v0 }
  0x7c   :  { %2782 = vmatmul.mubr.msk.bf16.gmra.mxu0 %vm202_vm3, %v3170_v35  ;;  %2886 = vmatmul.mubr.msk.bf16.gmra.mxu1 %vm202_vm3, %v3171_v36 }
  0x7d   :  { %2785 = vmatprep.mubr.msk.bf16.mxu0 %vm3244_vm2, %v4574_v0  ;;  %2889 = vmatprep.mubr.msk.bf16.mxu1 %vm3244_vm2, %v4574_v0 }
  0x84   :  { %2786 = vmatmul.mubr.msk.bf16.gmra.mxu0 %vm202_vm3, %v3172_v37  ;;  %2890 = vmatmul.mubr.msk.bf16.gmra.mxu1 %vm202_vm3, %v3173_v38  ;;  %v3198_v37 = vld [vmem:[%s4571_s0 + $0x1a0] sm:$0xff]  }
  0x85   :  { %2789 = vmatprep.mubr.msk.bf16.mxu0 %vm3244_vm2, %v4574_v0  ;;  %2893 = vmatprep.mubr.msk.bf16.mxu1 %vm3244_vm2, %v4574_v0  ;;  %v3199_v38 = vld [vmem:[%s4571_s0 + $0x264] sm:$0xff]  }
  0x8c   :  { %2790 = vmatmul.mubr.msk.bf16.gmra.mxu0 %vm202_vm3, %v3174_v39  ;;  %2894 = vmatmul.mubr.msk.bf16.gmra.mxu1 %vm202_vm3, %v3175_v40 }
  0x8d   :  { %2793 = vmatprep.mubr.msk.bf16.mxu0 %vm3244_vm2, %v4574_v0  ;;  %2897 = vmatprep.mubr.msk.bf16.mxu1 %vm3244_vm2, %v4574_v0 }
  0x94   :  { %2794 = vmatmul.mubr.msk.bf16.gmra.mxu0 %vm202_vm3, %v3176_v41  ;;  %2898 = vmatmul.mubr.msk.bf16.gmra.mxu1 %vm202_vm3, %v3177_v42 }
  0x95   :  { %2797 = vmatprep.mubr.msk.bf16.mxu0 %vm3244_vm2, %v4574_v0  ;;  %2901 = vmatprep.mubr.msk.bf16.mxu1 %vm3244_vm2, %v4574_v0 }
  0x9c   :  { %2798 = vmatmul.mubr.msk.bf16.gmra.mxu0 %vm202_vm3, %v3178_v43  ;;  %2902 = vmatmul.mubr.msk.bf16.gmra.mxu1 %vm202_vm3, %v3179_v44 }
  0x9d   :  { %2801 = vmatprep.mubr.msk.bf16.mxu0 %vm3244_vm2, %v4574_v0  ;;  %2905 = vmatprep.mubr.msk.bf16.mxu1 %vm3244_vm2, %v4574_v0 }
  0xa4   :  { %2802 = vmatmul.mubr.msk.bf16.gmra.mxu0 %vm202_vm3, %v3180_v45  ;;  %2906 = vmatmul.mubr.msk.bf16.gmra.mxu1 %vm202_vm3, %v3181_v46 }
  0xa5   :  { %2805 = vmatprep.mubr.msk.bf16.mxu0 %vm3244_vm2, %v4574_v0  ;;  %2909 = vmatprep.mubr.msk.bf16.mxu1 %vm3244_vm2, %v4574_v0 }
  0xac   :  { %2806 = vmatmul.mubr.msk.bf16.gmra.mxu0 %vm202_vm3, %v3182_v47  ;;  %2910 = vmatmul.mubr.msk.bf16.gmra.mxu1 %vm202_vm3, %v3183_v48 }
  0xad   :  { %2809 = vmatprep.mubr.msk.bf16.mxu0 %vm3244_vm2, %v4574_v0  ;;  %2913 = vmatprep.mubr.msk.bf16.mxu1 %vm3244_vm2, %v4574_v0 }
  0xb4   :  { %2810 = vmatmul.mubr.msk.bf16.gmra.mxu0 %vm202_vm3, %v3184_v49  ;;  %2914 = vmatmul.mubr.msk.bf16.gmra.mxu1 %vm202_vm3, %v3185_v50  ;;  %v3200_v49 = vld [vmem:[%s4571_s0 + $0x1a8] sm:$0xff]  }
  0xb5   :  { %2813 = vmatprep.mubr.msk.bf16.mxu0 %vm3244_vm2, %v4574_v0  ;;  %2917 = vmatprep.mubr.msk.bf16.mxu1 %vm3244_vm2, %v4574_v0  ;;  %v3201_v50 = vld [vmem:[%s4571_s0 + $0x26c] sm:$0xff]  }
  0xbc   :  { %2814 = vmatmul.mubr.msk.bf16.gmra.mxu0 %vm202_vm3, %v3186_v51  ;;  %2918 = vmatmul.mubr.msk.bf16.gmra.mxu1 %vm202_vm3, %v3187_v52 }
  0xbd   :  { %2817 = vmatprep.mubr.msk.bf16.mxu0 %vm3244_vm2, %v4574_v0  ;;  %2921 = vmatprep.mubr.msk.bf16.mxu1 %vm3244_vm2, %v4574_v0 }
  0xc4   :  { %2818 = vmatmul.mubr.msk.bf16.gmra.mxu0 %vm202_vm3, %v3188_v53  ;;  %2922 = vmatmul.mubr.msk.bf16.gmra.mxu1 %vm202_vm3, %v3189_v54 }
  0xc5   :  { %2821 = vmatprep.mubr.msk.bf16.mxu0 %vm3244_vm2, %v4574_v0  ;;  %2925 = vmatprep.mubr.msk.bf16.mxu1 %vm3244_vm2, %v4574_v0 }
  0xcc   :  { %v3577_v57 = vpop.f32.mrf.mxu0  ;;  %2822 = vmatmul.mubr.msk.bf16.gmra.mxu0 %vm202_vm3, %v3190_v55  ;;  %v3580_v58 = vpop.f32.mrf.mxu1  ;;  %2926 = vmatmul.mubr.msk.bf16.gmra.mxu1 %vm202_vm3, %v3191_v56 }
  0xcd   :  { %2933 = vmatprep.mubr.msk.bf16.mxu0 %vm3244_vm2, %v4574_v0  ;;  %3037 = vmatprep.mubr.msk.bf16.mxu1 %vm3244_vm2, %v4574_v0 }
  0xce   :  { %v2727_v60 = vpop.f32.mrf.mxu0  ;;  %v2831_v61 = vpop.f32.mrf.mxu1 }
  0xd0   :  { %v3589_v62 = vpop.f32.mrf.mxu0  ;;  %v3591_v63 = vpop.f32.mrf.mxu1 }
  0xd2   :  { %v2728_v4 = vpop.f32.mrf.mxu0  ;;  %v2832_v5 = vpop.f32.mrf.mxu1 }
  0xd3   :  { %v3202_v4 = vld [vmem:[%s4571_s0 + $0x1b0] sm:$0xff]  }
  0xd4   :  { %v3601_v6 = vpop.f32.mrf.mxu0  ;;  %v3603_v7 = vpop.f32.mrf.mxu1  ;;  %2934 = vmatmul.mubr.msk.bf16.vlgmr.msra.gmra.mxu0 %vm202_vm3, %v3192_v1  ;;  %3038 = vmatmul.mubr.msk.bf16.vlgmr.msra.gmra.mxu1 %vm202_vm3, %v3193_v2  ;;  %v3203_v5 = vld [vmem:[%s4571_s0 + $0x274] sm:$0xff]  }
  0xd5   :  { %2937 = vmatprep.mubr.msk.bf16.mxu0 %vm3244_vm2, %v4574_v0  ;;  %3041 = vmatprep.mubr.msk.bf16.mxu1 %vm3244_vm2, %v4574_v0 }
  0xd6   :  { %v2731_v9 = vpop.f32.mrf.mxu0  ;;  %v2835_v10 = vpop.f32.mrf.mxu1 }
  0xd8   :  { %v3613_v11 = vpop.f32.mrf.mxu0  ;;  %v3615_v12 = vpop.f32.mrf.mxu1 }
  0xda   :  { %v2732_v16 = vpop.f32.mrf.mxu0  ;;  %v2836_v17 = vpop.f32.mrf.mxu1 }
  0xdc   :  { %v3625_v18 = vpop.f32.mrf.mxu0  ;;  %v3627_v19 = vpop.f32.mrf.mxu1  ;;  %2938 = vmatmul.mubr.msk.bf16.gmra.mxu0 %vm202_vm3, %v3194_v13  ;;  %3042 = vmatmul.mubr.msk.bf16.gmra.mxu1 %vm202_vm3, %v3195_v14 }
  0xdd   :  { %2941 = vmatprep.mubr.msk.bf16.mxu0 %vm3244_vm2, %v4574_v0  ;;  %3045 = vmatprep.mubr.msk.bf16.mxu1 %vm3244_vm2, %v4574_v0 }
  0xde   :  { %v2735_v21 = vpop.f32.mrf.mxu0  ;;  %v2839_v22 = vpop.f32.mrf.mxu1 }
  0xe0   :  { %v3637_v23 = vpop.f32.mrf.mxu0  ;;  %v3639_v24 = vpop.f32.mrf.mxu1 }
  0xe2   :  { %v2736_v28 = vpop.f32.mrf.mxu0  ;;  %v2840_v29 = vpop.f32.mrf.mxu1 }
  0xe3   :  { %v3204_v28 = vld [vmem:[%s4571_s0 + $0x1b8] sm:$0xff]  }
  0xe4   :  { %v3649_v30 = vpop.f32.mrf.mxu0  ;;  %v3651_v31 = vpop.f32.mrf.mxu1  ;;  %2942 = vmatmul.mubr.msk.bf16.gmra.mxu0 %vm202_vm3, %v3196_v25  ;;  %3046 = vmatmul.mubr.msk.bf16.gmra.mxu1 %vm202_vm3, %v3197_v26  ;;  %v3205_v29 = vld [vmem:[%s4571_s0 + $0x27c] sm:$0xff]  }
  0xe5   :  { %2945 = vmatprep.mubr.msk.bf16.mxu0 %vm3244_vm2, %v4574_v0  ;;  %3049 = vmatprep.mubr.msk.bf16.mxu1 %vm3244_vm2, %v4574_v0 }
  0xe6   :  { %v2739_v33 = vpop.f32.mrf.mxu0  ;;  %v2843_v34 = vpop.f32.mrf.mxu1 }
  0xe8   :  { %v3661_v35 = vpop.f32.mrf.mxu0  ;;  %v3663_v36 = vpop.f32.mrf.mxu1 }
  0xea   :  { %v2740_v40 = vpop.f32.mrf.mxu0  ;;  %v2844_v41 = vpop.f32.mrf.mxu1 }
  0xec   :  { %v3673_v42 = vpop.f32.mrf.mxu0  ;;  %v3675_v43 = vpop.f32.mrf.mxu1  ;;  %2946 = vmatmul.mubr.msk.bf16.gmra.mxu0 %vm202_vm3, %v3198_v37  ;;  %3050 = vmatmul.mubr.msk.bf16.gmra.mxu1 %vm202_vm3, %v3199_v38 }
  0xed   :  { %2949 = vmatprep.mubr.msk.bf16.mxu0 %vm3244_vm2, %v4574_v0  ;;  %3053 = vmatprep.mubr.msk.bf16.mxu1 %vm3244_vm2, %v4574_v0 }
  0xee   :  { %v2743_v45 = vpop.f32.mrf.mxu0  ;;  %v2847_v46 = vpop.f32.mrf.mxu1 }
  0xf0   :  { %v3685_v47 = vpop.f32.mrf.mxu0  ;;  %v3687_v48 = vpop.f32.mrf.mxu1 }
  0xf2   :  { %v2744_v52 = vpop.f32.mrf.mxu0  ;;  %v2848_v53 = vpop.f32.mrf.mxu1 }
  0xf3   :  { %v3206_v52 = vld [vmem:[%s4571_s0 + $0x1c0] sm:$0xff]  }
  0xf4   :  { %v3697_v54 = vpop.f32.mrf.mxu0  ;;  %v3699_v55 = vpop.f32.mrf.mxu1  ;;  %2950 = vmatmul.mubr.msk.bf16.gmra.mxu0 %vm202_vm3, %v3200_v49  ;;  %3054 = vmatmul.mubr.msk.bf16.gmra.mxu1 %vm202_vm3, %v3201_v50  ;;  %v3207_v53 = vld [vmem:[%s4571_s0 + $0x284] sm:$0xff]  }
  0xf5   :  { %2953 = vmatprep.mubr.msk.bf16.mxu0 %vm3244_vm2, %v4574_v0  ;;  %3057 = vmatprep.mubr.msk.bf16.mxu1 %vm3244_vm2, %v4574_v0 }
  0xf6   :  { %v2747_v60 = vpop.f32.mrf.mxu0  ;;  %v2851_v61 = vpop.f32.mrf.mxu1 }
  0xf8   :  { %v3709_v1 = vpop.f32.mrf.mxu0  ;;  %v3711_v2 = vpop.f32.mrf.mxu1 }
  0xfa   :  { %v2748_v10 = vpop.f32.mrf.mxu0  ;;  %v2852_v13 = vpop.f32.mrf.mxu1 }
  0xfc   :  { %v3721_v14 = vpop.f32.mrf.mxu0  ;;  %v3723_v16 = vpop.f32.mrf.mxu1  ;;  %2954 = vmatmul.mubr.msk.bf16.gmra.mxu0 %vm202_vm3, %v3202_v4  ;;  %3058 = vmatmul.mubr.msk.bf16.gmra.mxu1 %vm202_vm3, %v3203_v5 }
  0xfd   :  { %2957 = vmatprep.mubr.msk.bf16.mxu0 %vm3244_vm2, %v4574_v0  ;;  %3061 = vmatprep.mubr.msk.bf16.mxu1 %vm3244_vm2, %v4574_v0 }
  0xfe   :  { %v2751_v21 = vpop.f32.mrf.mxu0  ;;  %v2855_v22 = vpop.f32.mrf.mxu1 }
 0x100   :  { %v3733_v25 = vpop.f32.mrf.mxu0  ;;  %v3735_v26 = vpop.f32.mrf.mxu1 }
 0x102   :  { %v2752_v34 = vpop.f32.mrf.mxu0  ;;  %v2856_v37 = vpop.f32.mrf.mxu1 }
 0x103   :  { %v3208_v34 = vld [vmem:[%s4571_s0 + $0x1c8] sm:$0xff]  }
 0x104   :  { %v3745_v38 = vpop.f32.mrf.mxu0  ;;  %v3747_v40 = vpop.f32.mrf.mxu1  ;;  %2958 = vmatmul.mubr.msk.bf16.gmra.mxu0 %vm202_vm3, %v3204_v28  ;;  %3062 = vmatmul.mubr.msk.bf16.gmra.mxu1 %vm202_vm3, %v3205_v29  ;;  %v3209_v37 = vld [vmem:[%s4571_s0 + $0x28c] sm:$0xff]  }
 0x105   :  { %2961 = vmatprep.mubr.msk.bf16.mxu0 %vm3244_vm2, %v4574_v0  ;;  %3065 = vmatprep.mubr.msk.bf16.mxu1 %vm3244_vm2, %v4574_v0 }
 0x106   :  { %v2755_v45 = vpop.f32.mrf.mxu0  ;;  %v2859_v46 = vpop.f32.mrf.mxu1 }
 0x108   :  { %v3757_v49 = vpop.f32.mrf.mxu0  ;;  %v3759_v50 = vpop.f32.mrf.mxu1 }
 0x10a   :  { %v2756_v61 = vpop.f32.mrf.mxu0  ;;  %v2860_v4 = vpop.f32.mrf.mxu1 }
 0x10c   :  { %v3769_v5 = vpop.f32.mrf.mxu0  ;;  %v3771_v10 = vpop.f32.mrf.mxu1  ;;  %2962 = vmatmul.mubr.msk.bf16.gmra.mxu0 %vm202_vm3, %v3206_v52  ;;  %3066 = vmatmul.mubr.msk.bf16.gmra.mxu1 %vm202_vm3, %v3207_v53 }
 0x10d   :  { %2965 = vmatprep.mubr.msk.bf16.mxu0 %vm3244_vm2, %v4574_v0  ;;  %3069 = vmatprep.mubr.msk.bf16.mxu1 %vm3244_vm2, %v4574_v0 }
 0x10e   :  { %v2759_v21 = vpop.f32.mrf.mxu0  ;;  %v2863_v22 = vpop.f32.mrf.mxu1 }
 0x110   :  { %v3781_v28 = vpop.f32.mrf.mxu0  ;;  %v3783_v29 = vpop.f32.mrf.mxu1 }
 0x112   :  { %v2760_v46 = vpop.f32.mrf.mxu0  ;;  %v2864_v52 = vpop.f32.mrf.mxu1 }
 0x114   :  { %v3793_v53 = vpop.f32.mrf.mxu0  ;;  %v3795_v61 = vpop.f32.mrf.mxu1  ;;  %2966 = vmatmul.mubr.msk.bf16.gmra.mxu0 %vm202_vm3, %v3208_v34  ;;  %3070 = vmatmul.mubr.msk.bf16.gmra.mxu1 %vm202_vm3, %v3209_v37  ;;  %v3210_v34 = vld [vmem:[%s4571_s0 + $0x1d0] sm:$0xff]  }
 0x115   :  { %2969 = vmatprep.mubr.msk.bf16.mxu0 %vm3244_vm2, %v4574_v0  ;;  %3073 = vmatprep.mubr.msk.bf16.mxu1 %vm3244_vm2, %v4574_v0  ;;  %v3211_v37 = vld [vmem:[%s4571_s0 + $0x294] sm:$0xff]  }
 0x116   :  { %v2763_v21 = vpop.f32.mrf.mxu0  ;;  %v2867_v22 = vpop.f32.mrf.mxu1 }
 0x118   :  { %v3805_v46 = vpop.f32.mrf.mxu0  ;;  %v3807_v52 = vpop.f32.mrf.mxu1 }
 0x11a   :  { %v2764_v45 = vpop.f32.mrf.mxu0  ;;  %v2868_v13 = vpop.f32.mrf.mxu1 }
 0x11c   :  { %v3817_v60 = vpop.f32.mrf.mxu0  ;;  %v3819_v21 = vpop.f32.mrf.mxu1  ;;  %2970 = vmatmul.mubr.msk.bf16.gmra.mxu0 %vm202_vm3, %v3210_v34  ;;  %3074 = vmatmul.mubr.msk.bf16.gmra.mxu1 %vm202_vm3, %v3211_v37  ;;  %v3212_v34 = vld [vmem:[%s4571_s0 + $0x1d8] sm:$0xff]  }
 0x11d   :  { %2973 = vmatprep.mubr.msk.bf16.mxu0 %vm3244_vm2, %v4574_v0  ;;  %3077 = vmatprep.mubr.msk.bf16.mxu1 %vm3244_vm2, %v4574_v0  ;;  %v3213_v37 = vld [vmem:[%s4571_s0 + $0x29c] sm:$0xff]  }
 0x11e   :  { %v2767_v4 = vpop.f32.mrf.mxu0  ;;  %v2871_v45 = vpop.f32.mrf.mxu1 }
 0x120   :  { %v3829_v13 = vpop.f32.mrf.mxu0  ;;  %v3831_v41 = vpop.f32.mrf.mxu1 }
 0x122   :  { %v2768_v33 = vpop.f32.mrf.mxu0  ;;  %v2872_v17 = vpop.f32.mrf.mxu1 }
 0x124   :  { %v3841_v9 = vpop.f32.mrf.mxu0  ;;  %v3843_v4 = vpop.f32.mrf.mxu1  ;;  %2974 = vmatmul.mubr.msk.bf16.gmra.mxu0 %vm202_vm3, %v3212_v34  ;;  %3078 = vmatmul.mubr.msk.bf16.gmra.mxu1 %vm202_vm3, %v3213_v37  ;;  %v3214_v34 = vld [vmem:[%s4571_s0 + $0x1e0] sm:$0xff]  }
 0x125   :  { %2977 = vmatprep.mubr.msk.bf16.mxu0 %vm3244_vm2, %v4574_v0  ;;  %3081 = vmatprep.mubr.msk.bf16.mxu1 %vm3244_vm2, %v4574_v0  ;;  %v3215_v37 = vld [vmem:[%s4571_s0 + $0x2a4] sm:$0xff]  }
 0x126   :  { %v2771_v22 = vpop.f32.mrf.mxu0  ;;  %v2875_v33 = vpop.f32.mrf.mxu1 }
 0x128   :  { %v3853_v17 = vpop.f32.mrf.mxu0  ;;  %v3855_v56 = vpop.f32.mrf.mxu1 }
 0x12a   :  { %v2772_v51 = vpop.f32.mrf.mxu0  ;;  %v2876_v44 = vpop.f32.mrf.mxu1 }
 0x12c   :  { %v3865_v39 = vpop.f32.mrf.mxu0  ;;  %v3867_v22 = vpop.f32.mrf.mxu1  ;;  %2978 = vmatmul.mubr.msk.bf16.gmra.mxu0 %vm202_vm3, %v3214_v34  ;;  %3082 = vmatmul.mubr.msk.bf16.gmra.mxu1 %vm202_vm3, %v3215_v37  ;;  %v3216_v34 = vld [vmem:[%s4571_s0 + $0x1e8] sm:$0xff]  }
 0x12d   :  { %4625 = vst [vmem:[#allocation2_spill] sm:$0xff] %v3867_v22  ;;  %2981 = vmatprep.mubr.msk.bf16.mxu0 %vm3244_vm2, %v4574_v0  ;;  %3085 = vmatprep.mubr.msk.bf16.mxu1 %vm3244_vm2, %v4574_v0  ;;  %v3217_v37 = vld [vmem:[%s4571_s0 + $0x2ac] sm:$0xff]  }
 0x12e   :  { %v2775_v45 = vpop.f32.mrf.mxu0  ;;  %v2879_v51 = vpop.f32.mrf.mxu1 }
 0x130   :  { %v3877_v44 = vpop.f32.mrf.mxu0  ;;  %v3879_v32 = vpop.f32.mrf.mxu1 }
 0x131   :  { %4626 = vst [vmem:[#allocation3_spill] sm:$0xff] %v3877_v44  ;;  %4627 = vst [vmem:[#allocation4_spill] sm:$0xff] %v3879_v32 }
 0x132   :  { %v2776_v27 = vpop.f32.mrf.mxu0  ;;  %v2880_v20 = vpop.f32.mrf.mxu1 }
 0x134   :  { %v3889_v15 = vpop.f32.mrf.mxu0  ;;  %v3891_v45 = vpop.f32.mrf.mxu1  ;;  %2982 = vmatmul.mubr.msk.bf16.gmra.mxu0 %vm202_vm3, %v3216_v34  ;;  %3086 = vmatmul.mubr.msk.bf16.gmra.mxu1 %vm202_vm3, %v3217_v37  ;;  %v3218_v34 = vld [vmem:[%s4571_s0 + $0x1f0] sm:$0xff]  }
 0x135   :  { %4628 = vst [vmem:[#allocation5_spill] sm:$0xff] %v3889_v15  ;;  %4629 = vst [vmem:[#allocation6_spill] sm:$0xff] %v3891_v45  ;;  %2985 = vmatprep.mubr.msk.bf16.mxu0 %vm3244_vm2, %v4574_v0  ;;  %3089 = vmatprep.mubr.msk.bf16.mxu1 %vm3244_vm2, %v4574_v0  ;;  %v3219_v37 = vld [vmem:[%s4571_s0 + $0x2b4] sm:$0xff]   ;;  %v4634_v45 = vmov 0.0  }
 0x136   :  { %v2779_v33 = vpop.f32.mrf.mxu0  ;;  %v2883_v27 = vpop.f32.mrf.mxu1 }
 0x138   :  { %v3901_v20 = vpop.f32.mrf.mxu0  ;;  %v3903_v8 = vpop.f32.mrf.mxu1 }
 0x139   :  { %4630 = vst [vmem:[#allocation7_spill] sm:$0xff] %v3901_v20  ;;  %4631 = vst [vmem:[#allocation8_spill] sm:$0xff] %v3903_v8 }
 0x13a   :  { %v2780_v3 = vpop.f32.mrf.mxu0  ;;  %v2884_v59 = vpop.f32.mrf.mxu1 }
 0x13c   :  { %v3913_v0 = vpop.f32.mrf.mxu0  ;;  %v3915_v33 = vpop.f32.mrf.mxu1  ;;  %2986 = vmatmul.mubr.msk.bf16.gmra.mxu0 %vm202_vm3, %v3218_v34  ;;  %3090 = vmatmul.mubr.msk.bf16.gmra.mxu1 %vm202_vm3, %v3219_v37  ;;  %v3220_v34 = vld [vmem:[%s4571_s0 + $0x1f8] sm:$0xff]  }
 0x13d   :  { %4632 = vst [vmem:[#allocation9_spill] sm:$0xff] %v3913_v0  ;;  %4633 = vst [vmem:[#allocation10_spill] sm:$0xff] %v3915_v33  ;;  %2989 = vmatprep.mubr.msk.bf16.mxu0 %vm3244_vm2, %v4634_v45  ;;  %3093 = vmatprep.mubr.msk.bf16.mxu1 %vm3244_vm2, %v4634_v45  ;;  %v3221_v37 = vld [vmem:[%s4571_s0 + $0x2bc] sm:$0xff]  }
 0x13e   :  { %v2783_v51 = vpop.f32.mrf.mxu0  ;;  %v2887_v3 = vpop.f32.mrf.mxu1 }
 0x140   :  { %v3925_v59 = vpop.f32.mrf.mxu0  ;;  %v3927_v8 = vpop.f32.mrf.mxu1 }
 0x141   :  { %4635 = vst [vmem:[#allocation11_spill] sm:$0xff] %v3925_v59  ;;  %4636 = vst [vmem:[#allocation12_spill] sm:$0xff] %v3927_v8 }
 0x142   :  { %v2784_v33 = vpop.f32.mrf.mxu0  ;;  %v2888_v0 = vpop.f32.mrf.mxu1 }
 0x144   :  { %v3937_v20 = vpop.f32.mrf.mxu0  ;;  %v3939_v51 = vpop.f32.mrf.mxu1  ;;  %2990 = vmatmul.mubr.msk.bf16.gmra.mxu0 %vm202_vm3, %v3220_v34  ;;  %3094 = vmatmul.mubr.msk.bf16.gmra.mxu1 %vm202_vm3, %v3221_v37  ;;  %v3222_v34 = vld [vmem:[%s4571_s0 + $0x200] sm:$0xff]  }
 0x145   :  { %4637 = vst [vmem:[#allocation13_spill] sm:$0xff] %v3937_v20  ;;  %4638 = vst [vmem:[#allocation14_spill] sm:$0xff] %v3939_v51  ;;  %2993 = vmatprep.mubr.msk.bf16.mxu0 %vm3244_vm2, %v4634_v45  ;;  %3097 = vmatprep.mubr.msk.bf16.mxu1 %vm3244_vm2, %v4634_v45  ;;  %v3223_v37 = vld [vmem:[%s4571_s0 + $0x2c4] sm:$0xff]  }
 0x146   :  { %v2787_v27 = vpop.f32.mrf.mxu0  ;;  %v2891_v33 = vpop.f32.mrf.mxu1 }
 0x148   :  { %v3949_v0 = vpop.f32.mrf.mxu0  ;;  %v3951_v8 = vpop.f32.mrf.mxu1 }
 0x149   :  { %4639 = vst [vmem:[#allocation15_spill] sm:$0xff] %v3949_v0  ;;  %4640 = vst [vmem:[#allocation16_spill] sm:$0xff] %v3951_v8 }
 0x14a   :  { %v2788_v51 = vpop.f32.mrf.mxu0  ;;  %v2892_v20 = vpop.f32.mrf.mxu1 }
 0x14c   :  { %v3961_v59 = vpop.f32.mrf.mxu0  ;;  %v3963_v27 = vpop.f32.mrf.mxu1  ;;  %2994 = vmatmul.mubr.msk.bf16.gmra.mxu0 %vm202_vm3, %v3222_v34  ;;  %3098 = vmatmul.mubr.msk.bf16.gmra.mxu1 %vm202_vm3, %v3223_v37  ;;  %v3224_v34 = vld [vmem:[%s4571_s0 + $0x208] sm:$0xff]  }
 0x14d   :  { %4641 = vst [vmem:[#allocation17_spill] sm:$0xff] %v3961_v59  ;;  %4642 = vst [vmem:[#allocation18_spill] sm:$0xff] %v3963_v27  ;;  %2997 = vmatprep.mubr.msk.bf16.mxu0 %vm3244_vm2, %v4634_v45  ;;  %3101 = vmatprep.mubr.msk.bf16.mxu1 %vm3244_vm2, %v4634_v45  ;;  %v3225_v37 = vld [vmem:[%s4571_s0 + $0x2cc] sm:$0xff]  }
 0x14e   :  { %v2791_v3 = vpop.f32.mrf.mxu0  ;;  %v2895_v51 = vpop.f32.mrf.mxu1 }
 0x150   :  { %v3973_v20 = vpop.f32.mrf.mxu0  ;;  %v3975_v8 = vpop.f32.mrf.mxu1 }
 0x151   :  { %4643 = vst [vmem:[#allocation19_spill] sm:$0xff] %v3973_v20  ;;  %4644 = vst [vmem:[#allocation20_spill] sm:$0xff] %v3975_v8 }
 0x152   :  { %v2792_v27 = vpop.f32.mrf.mxu0  ;;  %v2896_v59 = vpop.f32.mrf.mxu1 }
 0x154   :  { %v3985_v0 = vpop.f32.mrf.mxu0  ;;  %v3987_v3 = vpop.f32.mrf.mxu1  ;;  %2998 = vmatmul.mubr.msk.bf16.gmra.mxu0 %vm202_vm3, %v3224_v34  ;;  %3102 = vmatmul.mubr.msk.bf16.gmra.mxu1 %vm202_vm3, %v3225_v37  ;;  %v3226_v34 = vld [vmem:[%s4571_s0 + $0x210] sm:$0xff]  }
 0x155   :  { %4645 = vst [vmem:[#allocation21_spill] sm:$0xff] %v3985_v0  ;;  %4646 = vst [vmem:[#allocation22_spill] sm:$0xff] %v3987_v3  ;;  %3001 = vmatprep.mubr.msk.bf16.mxu0 %vm3244_vm2, %v4634_v45  ;;  %3105 = vmatprep.mubr.msk.bf16.mxu1 %vm3244_vm2, %v4634_v45  ;;  %v3227_v37 = vld [vmem:[%s4571_s0 + $0x2d4] sm:$0xff]  }
 0x156   :  { %v2795_v33 = vpop.f32.mrf.mxu0  ;;  %v2899_v27 = vpop.f32.mrf.mxu1 }
 0x158   :  { %v3997_v59 = vpop.f32.mrf.mxu0  ;;  %v3999_v8 = vpop.f32.mrf.mxu1 }
 0x159   :  { %4647 = vst [vmem:[#allocation23_spill] sm:$0xff] %v3997_v59  ;;  %4648 = vst [vmem:[#allocation24_spill] sm:$0xff] %v3999_v8 }
 0x15a   :  { %v2796_v3 = vpop.f32.mrf.mxu0  ;;  %v2900_v0 = vpop.f32.mrf.mxu1 }
 0x15c   :  { %v4009_v20 = vpop.f32.mrf.mxu0  ;;  %v4011_v33 = vpop.f32.mrf.mxu1  ;;  %3002 = vmatmul.mubr.msk.bf16.gmra.mxu0 %vm202_vm3, %v3226_v34  ;;  %3106 = vmatmul.mubr.msk.bf16.gmra.mxu1 %vm202_vm3, %v3227_v37  ;;  %v3228_v34 = vld [vmem:[%s4571_s0 + $0x218] sm:$0xff]  }
 0x15d   :  { %4649 = vst [vmem:[#allocation25_spill] sm:$0xff] %v4009_v20  ;;  %4650 = vst [vmem:[#allocation26_spill] sm:$0xff] %v4011_v33  ;;  %3005 = vmatprep.mubr.msk.bf16.mxu0 %vm3244_vm2, %v4634_v45  ;;  %3109 = vmatprep.mubr.msk.bf16.mxu1 %vm3244_vm2, %v4634_v45  ;;  %v3229_v37 = vld [vmem:[%s4571_s0 + $0x2dc] sm:$0xff]  }
 0x15e   :  { %v2799_v51 = vpop.f32.mrf.mxu0  ;;  %v2903_v3 = vpop.f32.mrf.mxu1 }
 0x160   :  { %v4021_v0 = vpop.f32.mrf.mxu0  ;;  %v4023_v8 = vpop.f32.mrf.mxu1 }
 0x161   :  { %4651 = vst [vmem:[#allocation27_spill] sm:$0xff] %v4021_v0  ;;  %4652 = vst [vmem:[#allocation28_spill] sm:$0xff] %v4023_v8 }
 0x162   :  { %v2800_v33 = vpop.f32.mrf.mxu0  ;;  %v2904_v20 = vpop.f32.mrf.mxu1 }
 0x164   :  { %v4033_v59 = vpop.f32.mrf.mxu0  ;;  %v4035_v51 = vpop.f32.mrf.mxu1  ;;  %3006 = vmatmul.mubr.msk.bf16.gmra.mxu0 %vm202_vm3, %v3228_v34  ;;  %3110 = vmatmul.mubr.msk.bf16.gmra.mxu1 %vm202_vm3, %v3229_v37  ;;  %v3230_v34 = vld [vmem:[%s4571_s0 + $0x220] sm:$0xff]  }
 0x165   :  { %4653 = vst [vmem:[#allocation29_spill] sm:$0xff] %v4033_v59  ;;  %4654 = vst [vmem:[#allocation30_spill] sm:$0xff] %v4035_v51  ;;  %3009 = vmatprep.mubr.msk.bf16.mxu0 %vm3244_vm2, %v4634_v45  ;;  %3113 = vmatprep.mubr.msk.bf16.mxu1 %vm3244_vm2, %v4634_v45  ;;  %v3231_v37 = vld [vmem:[%s4571_s0 + $0x2e4] sm:$0xff]  }
 0x166   :  { %v2803_v27 = vpop.f32.mrf.mxu0  ;;  %v2907_v33 = vpop.f32.mrf.mxu1 }
 0x168   :  { %v4045_v20 = vpop.f32.mrf.mxu0  ;;  %v4047_v8 = vpop.f32.mrf.mxu1 }
 0x169   :  { %4655 = vst [vmem:[#allocation31_spill] sm:$0xff] %v4045_v20  ;;  %4656 = vst [vmem:[#allocation32_spill] sm:$0xff] %v4047_v8 }
 0x16a   :  { %v2804_v51 = vpop.f32.mrf.mxu0  ;;  %v2908_v59 = vpop.f32.mrf.mxu1 }
 0x16c   :  { %v4057_v0 = vpop.f32.mrf.mxu0  ;;  %v4059_v27 = vpop.f32.mrf.mxu1  ;;  %3010 = vmatmul.mubr.msk.bf16.gmra.mxu0 %vm202_vm3, %v3230_v34  ;;  %3114 = vmatmul.mubr.msk.bf16.gmra.mxu1 %vm202_vm3, %v3231_v37  ;;  %v3232_v34 = vld [vmem:[%s4571_s0 + $0x228] sm:$0xff]  }
 0x16d   :  { %4657 = vst [vmem:[#allocation33_spill] sm:$0xff] %v4057_v0  ;;  %4658 = vst [vmem:[#allocation34_spill] sm:$0xff] %v4059_v27  ;;  %3013 = vmatprep.mubr.msk.bf16.mxu0 %vm3244_vm2, %v4634_v45  ;;  %3117 = vmatprep.mubr.msk.bf16.mxu1 %vm3244_vm2, %v4634_v45  ;;  %v3233_v37 = vld [vmem:[%s4571_s0 + $0x2ec] sm:$0xff]  }
 0x16e   :  { %v2807_v3 = vpop.f32.mrf.mxu0  ;;  %v2911_v51 = vpop.f32.mrf.mxu1 }
 0x170   :  { %v4069_v59 = vpop.f32.mrf.mxu0  ;;  %v4071_v8 = vpop.f32.mrf.mxu1 }
 0x171   :  { %4659 = vst [vmem:[#allocation35_spill] sm:$0xff] %v4069_v59  ;;  %4660 = vst [vmem:[#allocation36_spill] sm:$0xff] %v4071_v8 }
 0x172   :  { %v2808_v27 = vpop.f32.mrf.mxu0  ;;  %v2912_v0 = vpop.f32.mrf.mxu1 }
 0x174   :  { %v4081_v20 = vpop.f32.mrf.mxu0  ;;  %v4083_v3 = vpop.f32.mrf.mxu1  ;;  %3014 = vmatmul.mubr.msk.bf16.gmra.mxu0 %vm202_vm3, %v3232_v34  ;;  %3118 = vmatmul.mubr.msk.bf16.gmra.mxu1 %vm202_vm3, %v3233_v37  ;;  %v3234_v34 = vld [vmem:[%s4571_s0 + $0x230] sm:$0xff]  }
 0x175   :  { %4661 = vst [vmem:[#allocation37_spill] sm:$0xff] %v4081_v20  ;;  %4662 = vst [vmem:[#allocation38_spill] sm:$0xff] %v4083_v3  ;;  %3017 = vmatprep.mubr.msk.bf16.mxu0 %vm3244_vm2, %v4634_v45  ;;  %3121 = vmatprep.mubr.msk.bf16.mxu1 %vm3244_vm2, %v4634_v45  ;;  %v3235_v37 = vld [vmem:[%s4571_s0 + $0x2f4] sm:$0xff]  }
 0x176   :  { %v2811_v33 = vpop.f32.mrf.mxu0  ;;  %v2915_v27 = vpop.f32.mrf.mxu1 }
 0x178   :  { %v4093_v0 = vpop.f32.mrf.mxu0  ;;  %v4095_v8 = vpop.f32.mrf.mxu1 }
 0x179   :  { %4663 = vst [vmem:[#allocation39_spill] sm:$0xff] %v4093_v0  ;;  %4664 = vst [vmem:[#allocation40_spill] sm:$0xff] %v4095_v8 }
 0x17a   :  { %v2812_v3 = vpop.f32.mrf.mxu0  ;;  %v2916_v20 = vpop.f32.mrf.mxu1 }
 0x17c   :  { %v4105_v59 = vpop.f32.mrf.mxu0  ;;  %v4107_v33 = vpop.f32.mrf.mxu1  ;;  %3018 = vmatmul.mubr.msk.bf16.gmra.mxu0 %vm202_vm3, %v3234_v34  ;;  %3122 = vmatmul.mubr.msk.bf16.gmra.mxu1 %vm202_vm3, %v3235_v37  ;;  %v3236_v34 = vld [vmem:[%s4571_s0 + $0x238] sm:$0xff]  }
 0x17d   :  { %4665 = vst [vmem:[#allocation41_spill] sm:$0xff] %v4105_v59  ;;  %4666 = vst [vmem:[#allocation42_spill] sm:$0xff] %v4107_v33  ;;  %3021 = vmatprep.mubr.msk.bf16.mxu0 %vm3244_vm2, %v4634_v45  ;;  %3125 = vmatprep.mubr.msk.bf16.mxu1 %vm3244_vm2, %v4634_v45  ;;  %v3237_v37 = vld [vmem:[%s4571_s0 + $0x2fc] sm:$0xff]  }
 0x17e   :  { %v2815_v51 = vpop.f32.mrf.mxu0  ;;  %v2919_v3 = vpop.f32.mrf.mxu1 }
 0x180   :  { %v4117_v20 = vpop.f32.mrf.mxu0  ;;  %v4119_v8 = vpop.f32.mrf.mxu1 }
 0x181   :  { %4667 = vst [vmem:[#allocation43_spill] sm:$0xff] %v4117_v20  ;;  %4668 = vst [vmem:[#allocation44_spill] sm:$0xff] %v4119_v8 }
 0x182   :  { %v2816_v33 = vpop.f32.mrf.mxu0  ;;  %v2920_v59 = vpop.f32.mrf.mxu1 }
 0x184   :  { %v4129_v0 = vpop.f32.mrf.mxu0  ;;  %v4131_v51 = vpop.f32.mrf.mxu1  ;;  %3022 = vmatmul.mubr.msk.bf16.gmra.mxu0 %vm202_vm3, %v3236_v34  ;;  %3126 = vmatmul.mubr.msk.bf16.gmra.mxu1 %vm202_vm3, %v3237_v37  ;;  %v3238_v34 = vld [vmem:[%s4571_s0 + $0x240] sm:$0xff]  }
 0x185   :  { %4669 = vst [vmem:[#allocation45_spill] sm:$0xff] %v4129_v0  ;;  %4670 = vst [vmem:[#allocation46_spill] sm:$0xff] %v4131_v51  ;;  %3025 = vmatprep.mubr.msk.bf16.mxu0 %vm3244_vm2, %v4634_v45  ;;  %3129 = vmatprep.mubr.msk.bf16.mxu1 %vm3244_vm2, %v4634_v45  ;;  %v3239_v37 = vld [vmem:[%s4571_s0 + $0x304] sm:$0xff]  }
 0x186   :  { %v2819_v27 = vpop.f32.mrf.mxu0  ;;  %v2923_v33 = vpop.f32.mrf.mxu1 }
 0x188   :  { %v4141_v59 = vpop.f32.mrf.mxu0  ;;  %v4143_v8 = vpop.f32.mrf.mxu1 }
 0x189   :  { %4671 = vst [vmem:[#allocation47_spill] sm:$0xff] %v4141_v59  ;;  %4672 = vst [vmem:[#allocation48_spill] sm:$0xff] %v4143_v8  ;;  %v3240_v59 = vld [vmem:[%s4571_s0 + $0x248] ss:$0 sps:$4 sm:$0xff]  }
 0x18a   :  { %v2820_v51 = vpop.f32.mrf.mxu0  ;;  %v2924_v0 = vpop.f32.mrf.mxu1 }
 0x18c   :  { %v4153_v20 = vpop.f32.mrf.mxu0  ;;  %v4155_v27 = vpop.f32.mrf.mxu1  ;;  %3026 = vmatmul.mubr.msk.bf16.gmra.mxu0 %vm202_vm3, %v3238_v34  ;;  %3130 = vmatmul.mubr.msk.bf16.gmra.mxu1 %vm202_vm3, %v3239_v37  ;;  %v3241_v34 = vld [vmem:[%s4571_s0 + $0x30c] ss:$0 sps:$4 sm:$0xff]  }
 0x18d   :  { %4673 = vst [vmem:[#allocation49_spill] sm:$0xff] %v4153_v20  ;;  %4674 = vst [vmem:[#allocation50_spill] sm:$0xff] %v4155_v27  ;;  %3029 = vmatprep.mubr.msk.bf16.mxu0 %vm3244_vm2, %v4634_v45  ;;  %3133 = vmatprep.mubr.msk.bf16.mxu1 %vm3244_vm2, %v4634_v45  ;;  %v4675_v45 = vmax.f32 %v3577_v57, %v3580_v58 }
 0x18e   :  { %v2823_v3 = vpop.f32.mrf.mxu0  ;;  %v2927_v51 = vpop.f32.mrf.mxu1 }
 0x18f   :  { %v4179_v3 = vld [vmem:[%s4572_s2] ss:$0 sm:$0xff] }
 0x190   :  { %v514_v0 = vpop.f32.mrf.mxu0  ;;  %v994_v8 = vpop.f32.mrf.mxu1 }
 0x192   :  { %v2824_v37 = vpop.f32.mrf.mxu0  ;;  %v2928_v33 = vpop.f32.mrf.mxu1 }
 0x194   :  { %v1328_v27 = vpop.f32.mrf.mxu0  ;;  %3030 = vmatmul.mubr.msk.bf16.gmra.mxu0 %vm202_vm3, %v3240_v59  ;;  %v1857_v20 = vpop.f32.mrf.mxu1  ;;  %3134 = vmatmul.mubr.msk.bf16.gmra.mxu1 %vm202_vm3, %v3241_v34  ;;  %v4676_v59 = vmax.f32 %v3589_v62, %v3591_v63 }
 0x195   :  { %v1526_v8 = vmax.f32 %v4675_v45, %v1328_v27 }
 0x196   :  { %v2935_v51 = vpop.f32.mrf.mxu0  ;;  %v3039_v0 = vpop.f32.mrf.mxu1 }
 0x197   :  { %v2055_v15 = vmax.f32 %v1526_v8, %v1857_v20 }
 0x198   :  { %v1331_v37 = vpop.f32.mrf.mxu0  ;;  %v1860_v33 = vpop.f32.mrf.mxu1 }
 0x199   :  { %v2111_v32 = vadd.f32 %v4179_v3, %v2055_v15  ;;  %v1527_v34 = vmax.f32 %v4676_v59, %v1331_v37  ;;  %v4677_v15 = vmax.f32 %v3601_v6, %v3603_v7 }
 0x19a   :  { %v2936_v44 = vpop.f32.mrf.mxu0  ;;  %v3040_v57 = vpop.f32.mrf.mxu1 }
 0x19b   :  { %v2160_v58 = vmax.f32 %v2111_v32, 0.0  ;;  %v2056_v27 = vmax.f32 %v1527_v34, %v1860_v33  ;;  %v4678_v33 = vmax.f32 %v3613_v11, %v3615_v12 }
 0x19c   :  { %v1336_v45 = vpop.f32.mrf.mxu0  ;;  %v1865_v22 = vpop.f32.mrf.mxu1 }
 0x19d   :  { %2210 = vst.msk [vmem:[%s4573_s3] sm:$0xff] %vm2209_vm4, %v2160_v58  ;;  %v2112_v20 = vadd.f32 %v4179_v3, %v2056_v27  ;;  %v1528_v8 = vmax.f32 %v4677_v15, %v1336_v45  ;;  %v4679_v45 = vmax.f32 %v3625_v18, %v3627_v19 }
 0x19e   :  { %v2939_v62 = vpop.f32.mrf.mxu0  ;;  %v3043_v63 = vpop.f32.mrf.mxu1 }
 0x19f   :  { %v2161_v51 = vmax.f32 %v2112_v20, 0.0  ;;  %v2057_v44 = vmax.f32 %v1528_v8, %v1865_v22 }
 0x1a0   :  { %v1339_v0 = vpop.f32.mrf.mxu0  ;;  %v1868_v32 = vpop.f32.mrf.mxu1 }
 0x1a1   :  { %2211 = vst.msk [vmem:[%s4573_s3 + $0x8] sm:$0xff] %vm2209_vm4, %v2161_v51  ;;  %v2113_v37 = vadd.f32 %v4179_v3, %v2057_v44  ;;  %v1529_v59 = vmax.f32 %v4678_v33, %v1339_v0  ;;  %v4680_v44 = vmax.f32 %v3637_v23, %v3639_v24 }
 0x1a2   :  { %v2940_v34 = vpop.f32.mrf.mxu0  ;;  %v3044_v6 = vpop.f32.mrf.mxu1 }
 0x1a3   :  { %v2162_v7 = vmax.f32 %v2113_v37, 0.0  ;;  %v2058_v57 = vmax.f32 %v1529_v59, %v1868_v32  ;;  %v4681_v6 = vmax.f32 %v3649_v30, %v3651_v31 }
 0x1a4   :  { %v1344_v58 = vpop.f32.mrf.mxu0  ;;  %v1873_v27 = vpop.f32.mrf.mxu1 }
 0x1a5   :  { %2212 = vst.msk [vmem:[%s4573_s3 + $0x10] sm:$0xff] %vm2209_vm4, %v2162_v7  ;;  %v2114_v22 = vadd.f32 %v4179_v3, %v2058_v57  ;;  %v1530_v20 = vmax.f32 %v4679_v45, %v1344_v58 }
 0x1a6   :  { %v2943_v15 = vpop.f32.mrf.mxu0  ;;  %v3047_v11 = vpop.f32.mrf.mxu1 }
 0x1a7   :  { %v2163_v12 = vmax.f32 %v2114_v22, 0.0  ;;  %v2059_v8 = vmax.f32 %v1530_v20, %v1873_v27  ;;  %v4682_v20 = vmax.f32 %v3661_v35, %v3663_v36 }
 0x1a8   :  { %v1347_v62 = vpop.f32.mrf.mxu0  ;;  %v1876_v63 = vpop.f32.mrf.mxu1 }
 0x1a9   :  { %2213 = vst.msk [vmem:[%s4573_s3 + $0x18] sm:$0xff] %vm2209_vm4, %v2163_v12  ;;  %v2115_v51 = vadd.f32 %v4179_v3, %v2059_v8  ;;  %v1531_v0 = vmax.f32 %v4680_v44, %v1347_v62 }
 0x1aa   :  { %v2944_v32 = vpop.f32.mrf.mxu0  ;;  %v3048_v18 = vpop.f32.mrf.mxu1 }
 0x1ab   :  { %v2164_v19 = vmax.f32 %v2115_v51, 0.0  ;;  %v2060_v37 = vmax.f32 %v1531_v0, %v1876_v63  ;;  %v4683_v51 = vmax.f32 %v3673_v42, %v3675_v43 }
 0x1ac   :  { %v1352_v33 = vpop.f32.mrf.mxu0  ;;  %v1881_v59 = vpop.f32.mrf.mxu1 }
 0x1ad   :  { %2214 = vst.msk [vmem:[%s4573_s3 + $0x20] sm:$0xff] %vm2209_vm4, %v2164_v19  ;;  %v2116_v34 = vadd.f32 %v4179_v3, %v2060_v37  ;;  %v1532_v7 = vmax.f32 %v4681_v6, %v1352_v33  ;;  %v4684_v33 = vmax.f32 %v3685_v47, %v3687_v48 }
 0x1ae   :  { %v2947_v57 = vpop.f32.mrf.mxu0  ;;  %v3051_v23 = vpop.f32.mrf.mxu1 }
 0x1af   :  { %v2165_v24 = vmax.f32 %v2116_v34, 0.0  ;;  %v2061_v58 = vmax.f32 %v1532_v7, %v1881_v59 }
 0x1b0   :  { %v1355_v27 = vpop.f32.mrf.mxu0  ;;  %v1884_v22 = vpop.f32.mrf.mxu1 }
 0x1b1   :  { %2215 = vst.msk [vmem:[%s4573_s3 + $0x28] sm:$0xff] %vm2209_vm4, %v2165_v24  ;;  %v2117_v45 = vadd.f32 %v4179_v3, %v2061_v58  ;;  %v1533_v15 = vmax.f32 %v4682_v20, %v1355_v27  ;;  %v4685_v24 = vmax.f32 %v3697_v54, %v3699_v55 }
 0x1b2   :  { %v2948_v11 = vpop.f32.mrf.mxu0  ;;  %v3052_v30 = vpop.f32.mrf.mxu1 }
 0x1b3   :  { %v2166_v31 = vmax.f32 %v2117_v45, 0.0  ;;  %v2062_v12 = vmax.f32 %v1533_v15, %v1884_v22  ;;  %v4686_v11 = vmax.f32 %v3709_v1, %v3711_v2 }
 0x1b4   :  { %v1360_v8 = vpop.f32.mrf.mxu0  ;;  %v1889_v62 = vpop.f32.mrf.mxu1 }
 0x1b5   :  { %2216 = vst.msk [vmem:[%s4573_s3 + $0x30] sm:$0xff] %vm2209_vm4, %v2166_v31  ;;  %v2118_v63 = vadd.f32 %v4179_v3, %v2062_v12  ;;  %v1534_v44 = vmax.f32 %v4683_v51, %v1360_v8  ;;  %v4687_v51 = vmax.f32 %v3721_v14, %v3723_v16 }
 0x1b6   :  { %v2951_v0 = vpop.f32.mrf.mxu0  ;;  %v3055_v35 = vpop.f32.mrf.mxu1 }
 0x1b7   :  { %v2167_v36 = vmax.f32 %v2118_v63, 0.0  ;;  %v2063_v32 = vmax.f32 %v1534_v44, %v1889_v62 }
 0x1b8   :  { %v1363_v18 = vpop.f32.mrf.mxu0  ;;  %v1892_v19 = vpop.f32.mrf.mxu1 }
 0x1b9   :  { %2217 = vst.msk [vmem:[%s4573_s3 + $0x38] sm:$0xff] %vm2209_vm4, %v2167_v36  ;;  %v2119_v37 = vadd.f32 %v4179_v3, %v2063_v32  ;;  %v1535_v59 = vmax.f32 %v4684_v33, %v1363_v18 }
 0x1ba   :  { %v2952_v34 = vpop.f32.mrf.mxu0  ;;  %v3056_v42 = vpop.f32.mrf.mxu1 }
 0x1bb   :  { %v2168_v43 = vmax.f32 %v2119_v37, 0.0  ;;  %v2064_v6 = vmax.f32 %v1535_v59, %v1892_v19  ;;  %v4688_v19 = vmax.f32 %v3733_v25, %v3735_v26 }
 0x1bc   :  { %v1368_v7 = vpop.f32.mrf.mxu0  ;;  %v1897_v57 = vpop.f32.mrf.mxu1 }
 0x1bd   :  { %2218 = vst.msk [vmem:[%s4573_s3 + $0x40] sm:$0xff] %vm2209_vm4, %v2168_v43  ;;  %v2120_v23 = vadd.f32 %v4179_v3, %v2064_v6  ;;  %v1536_v58 = vmax.f32 %v4685_v24, %v1368_v7  ;;  %v4689_v6 = vmax.f32 %v3745_v38, %v3747_v40 }
 0x1be   :  { %v2955_v27 = vpop.f32.mrf.mxu0  ;;  %v3059_v47 = vpop.f32.mrf.mxu1 }
 0x1bf   :  { %v2169_v48 = vmax.f32 %v2120_v23, 0.0  ;;  %v2065_v22 = vmax.f32 %v1536_v58, %v1897_v57  ;;  %v4690_v47 = vmax.f32 %v3757_v49, %v3759_v50 }
 0x1c0   :  { %v1371_v45 = vpop.f32.mrf.mxu0  ;;  %v1900_v20 = vpop.f32.mrf.mxu1 }
 0x1c1   :  { %2219 = vst.msk [vmem:[%s4573_s3 + $0x48] sm:$0xff] %vm2209_vm4, %v2169_v48  ;;  %v2121_v15 = vadd.f32 %v4179_v3, %v2065_v22  ;;  %v1537_v30 = vmax.f32 %v4686_v11, %v1371_v45 }
 0x1c2   :  { %v2956_v31 = vpop.f32.mrf.mxu0  ;;  %v3060_v54 = vpop.f32.mrf.mxu1 }
 0x1c3   :  { %v2170_v55 = vmax.f32 %v2121_v15, 0.0  ;;  %v2066_v12 = vmax.f32 %v1537_v30, %v1900_v20  ;;  %v4691_v30 = vmax.f32 %v3769_v5, %v3771_v10 }
 0x1c4   :  { %v1376_v8 = vpop.f32.mrf.mxu0  ;;  %v1905_v62 = vpop.f32.mrf.mxu1 }
 0x1c5   :  { %2220 = vst.msk [vmem:[%s4573_s3 + $0x50] sm:$0xff] %vm2209_vm4, %v2170_v55  ;;  %v2122_v63 = vadd.f32 %v4179_v3, %v2066_v12  ;;  %v1538_v44 = vmax.f32 %v4687_v51, %v1376_v8 }
 0x1c6   :  { %v2959_v0 = vpop.f32.mrf.mxu0  ;;  %v3063_v1 = vpop.f32.mrf.mxu1 }
 0x1c7   :  { %v2171_v2 = vmax.f32 %v2122_v63, 0.0  ;;  %v2067_v35 = vmax.f32 %v1538_v44, %v1905_v62  ;;  %v4692_v63 = vmax.f32 %v3781_v28, %v3783_v29 }
 0x1c8   :  { %v1379_v36 = vpop.f32.mrf.mxu0  ;;  %v1908_v32 = vpop.f32.mrf.mxu1 }
 0x1c9   :  { %2221 = vst.msk [vmem:[%s4573_s3 + $0x58] sm:$0xff] %vm2209_vm4, %v2171_v2  ;;  %v2123_v18 = vadd.f32 %v4179_v3, %v2067_v35  ;;  %v1539_v37 = vmax.f32 %v4688_v19, %v1379_v36  ;;  %v4693_v36 = vmax.f32 %v3793_v53, %v3795_v61 }
 0x1ca   :  { %v2960_v33 = vpop.f32.mrf.mxu0  ;;  %v3064_v14 = vpop.f32.mrf.mxu1 }
 0x1cb   :  { %v2172_v16 = vmax.f32 %v2123_v18, 0.0  ;;  %v2068_v59 = vmax.f32 %v1539_v37, %v1908_v32 }
 0x1cc   :  { %v1384_v34 = vpop.f32.mrf.mxu0  ;;  %v1913_v42 = vpop.f32.mrf.mxu1 }
 0x1cd   :  { %2222 = vst.msk [vmem:[%s4573_s3 + $0x60] sm:$0xff] %vm2209_vm4, %v2172_v16  ;;  %v2124_v43 = vadd.f32 %v4179_v3, %v2068_v59  ;;  %v1540_v7 = vmax.f32 %v4689_v6, %v1384_v34  ;;  %v4694_v16 = vmax.f32 %v3805_v46, %v3807_v52 }
 0x1ce   :  { %v2963_v57 = vpop.f32.mrf.mxu0  ;;  %v3067_v25 = vpop.f32.mrf.mxu1 }
 0x1cf   :  { %v2173_v26 = vmax.f32 %v2124_v43, 0.0  ;;  %v2069_v23 = vmax.f32 %v1540_v7, %v1913_v42  ;;  %v4695_v57 = vmax.f32 %v3817_v60, %v3819_v21 }
 0x1d0   :  { %v1387_v24 = vpop.f32.mrf.mxu0  ;;  %v1916_v58 = vpop.f32.mrf.mxu1 }
 0x1d1   :  { %2223 = vst.msk [vmem:[%s4573_s3 + $0x68] sm:$0xff] %vm2209_vm4, %v2173_v26  ;;  %v2125_v27 = vadd.f32 %v4179_v3, %v2069_v23  ;;  %v1541_v48 = vmax.f32 %v4690_v47, %v1387_v24  ;;  %v4696_v47 = vmax.f32 %v3829_v13, %v3831_v41 }
 0x1d2   :  { %v2964_v22 = vpop.f32.mrf.mxu0  ;;  %v3068_v38 = vpop.f32.mrf.mxu1 }
 0x1d3   :  { %v2174_v40 = vmax.f32 %v2125_v27, 0.0  ;;  %v2070_v45 = vmax.f32 %v1541_v48, %v1916_v58 }
 0x1d4   :  { %v1392_v20 = vpop.f32.mrf.mxu0  ;;  %v1921_v15 = vpop.f32.mrf.mxu1 }
 0x1d5   :  { %2224 = vst.msk [vmem:[%s4573_s3 + $0x70] sm:$0xff] %vm2209_vm4, %v2174_v40  ;;  %v2126_v11 = vadd.f32 %v4179_v3, %v2070_v45  ;;  %v1542_v31 = vmax.f32 %v4691_v30, %v1392_v20 }
 0x1d6   :  { %v2967_v54 = vpop.f32.mrf.mxu0  ;;  %v3071_v49 = vpop.f32.mrf.mxu1 }
 0x1d7   :  { %v2175_v50 = vmax.f32 %v2126_v11, 0.0  ;;  %v2071_v55 = vmax.f32 %v1542_v31, %v1921_v15  ;;  %v4697_v15 = vmax.f32 %v3841_v9, %v3843_v4 }
 0x1d8   :  { %v1395_v12 = vpop.f32.mrf.mxu0  ;;  %v1924_v8 = vpop.f32.mrf.mxu1 }
 0x1d9   :  { %2225 = vst.msk [vmem:[%s4573_s3 + $0x78] sm:$0xff] %vm2209_vm4, %v2175_v50  ;;  %v2127_v62 = vadd.f32 %v4179_v3, %v2071_v55  ;;  %v1543_v51 = vmax.f32 %v4692_v63, %v1395_v12  ;;  %v4698_v55 = vmax.f32 %v3853_v17, %v3855_v56 }
 0x1da   :  { %v2968_v44 = vpop.f32.mrf.mxu0  ;;  %v3072_v5 = vpop.f32.mrf.mxu1 }
 0x1db   :  { %v2176_v10 = vmax.f32 %v2127_v62, 0.0  ;;  %v2072_v0 = vmax.f32 %v1543_v51, %v1924_v8  ;;  %v4699_v5 = vld [vmem:[#allocation2_spill] sm:$0xff] }
 0x1dc   :  { %v1400_v1 = vpop.f32.mrf.mxu0  ;;  %v1929_v2 = vpop.f32.mrf.mxu1 }
 0x1dd   :  { %2226 = vst.msk [vmem:[%s4573_s3 + $0x80] sm:$0xff] %vm2209_vm4, %v2176_v10  ;;  %v2128_v35 = vadd.f32 %v4179_v3, %v2072_v0  ;;  %v1544_v32 = vmax.f32 %v4693_v36, %v1400_v1  ;;  %v4700_v10 = vmax.f32 %v3865_v39, %v4699_v5 }
 0x1de   :  { %v2971_v18 = vpop.f32.mrf.mxu0  ;;  %v3075_v28 = vpop.f32.mrf.mxu1 }
 0x1df   :  { %v2177_v29 = vmax.f32 %v2128_v35, 0.0  ;;  %v2073_v19 = vmax.f32 %v1544_v32, %v1929_v2  ;;  %v4701_v18 = vld [vmem:[#allocation3_spill] sm:$0xff]  ;;  %v4702_v28 = vld [vmem:[#allocation4_spill] sm:$0xff] }
 0x1e0   :  { %v1403_v37 = vpop.f32.mrf.mxu0  ;;  %v1932_v33 = vpop.f32.mrf.mxu1 }
 0x1e1   :  { %2227 = vst.msk [vmem:[%s4573_s3 + $0x88] sm:$0xff] %vm2209_vm4, %v2177_v29  ;;  %v2129_v14 = vadd.f32 %v4179_v3, %v2073_v19  ;;  %v1545_v59 = vmax.f32 %v4694_v16, %v1403_v37  ;;  %v4703_v29 = vmax.f32 %v4701_v18, %v4702_v28 }
 0x1e2   :  { %v2972_v34 = vpop.f32.mrf.mxu0  ;;  %v3076_v53 = vpop.f32.mrf.mxu1 }
 0x1e3   :  { %v2178_v61 = vmax.f32 %v2129_v14, 0.0  ;;  %v2074_v42 = vmax.f32 %v1545_v59, %v1932_v33  ;;  %v4704_v53 = vld [vmem:[#allocation5_spill] sm:$0xff] }
 0x1e4   :  { %v1408_v43 = vpop.f32.mrf.mxu0  ;;  %v1937_v6 = vpop.f32.mrf.mxu1 }
 0x1e5   :  { %2228 = vst.msk [vmem:[%s4573_s3 + $0x90] sm:$0xff] %vm2209_vm4, %v2178_v61  ;;  %v2130_v7 = vadd.f32 %v4179_v3, %v2074_v42  ;;  %v1546_v25 = vmax.f32 %v4695_v57, %v1408_v43  ;;  %v4705_v61 = vld [vmem:[#allocation6_spill] sm:$0xff] }
 0x1e6   :  { %v2975_v26 = vpop.f32.mrf.mxu0  ;;  %v3079_v46 = vpop.f32.mrf.mxu1  ;;  %v4706_v42 = vmax.f32 %v4704_v53, %v4705_v61 }
 0x1e7   :  { %v2179_v52 = vmax.f32 %v2130_v7, 0.0  ;;  %v2075_v23 = vmax.f32 %v1546_v25, %v1937_v6 }
 0x1e8   :  { %v1411_v24 = vpop.f32.mrf.mxu0  ;;  %v1940_v58 = vpop.f32.mrf.mxu1 }
 0x1e9   :  { %2229 = vst.msk [vmem:[%s4573_s3 + $0x98] sm:$0xff] %vm2209_vm4, %v2179_v52  ;;  %v2131_v27 = vadd.f32 %v4179_v3, %v2075_v23  ;;  %v1547_v48 = vmax.f32 %v4696_v47, %v1411_v24  ;;  %v4707_v23 = vld [vmem:[#allocation7_spill] sm:$0xff]  ;;  %v4708_v24 = vld [vmem:[#allocation8_spill] sm:$0xff] }
 0x1ea   :  { %v2976_v22 = vpop.f32.mrf.mxu0  ;;  %v3080_v60 = vpop.f32.mrf.mxu1 }
 0x1eb   :  { %v2180_v21 = vmax.f32 %v2131_v27, 0.0  ;;  %v2076_v38 = vmax.f32 %v1547_v48, %v1940_v58  ;;  %v4709_v58 = vmax.f32 %v4707_v23, %v4708_v24 }
 0x1ec   :  { %v1416_v40 = vpop.f32.mrf.mxu0  ;;  %v1945_v45 = vpop.f32.mrf.mxu1 }
 0x1ed   :  { %2230 = vst.msk [vmem:[%s4573_s3 + $0xa0] sm:$0xff] %vm2209_vm4, %v2180_v21  ;;  %v2132_v20 = vadd.f32 %v4179_v3, %v2076_v38  ;;  %v1548_v11 = vmax.f32 %v4697_v15, %v1416_v40 }
 0x1ee   :  { %v2979_v30 = vpop.f32.mrf.mxu0  ;;  %v3083_v41 = vpop.f32.mrf.mxu1 }
 0x1ef   :  { %v2181_v13 = vmax.f32 %v2132_v20, 0.0  ;;  %v2077_v31 = vmax.f32 %v1548_v11, %v1945_v45  ;;  %v4710_v45 = vld [vmem:[#allocation9_spill] sm:$0xff]  ;;  %v4711_v20 = vld [vmem:[#allocation10_spill] sm:$0xff] }
 0x1f0   :  { %v1419_v54 = vpop.f32.mrf.mxu0  ;;  %v1948_v49 = vpop.f32.mrf.mxu1  ;;  %v4712_v15 = vmax.f32 %v4710_v45, %v4711_v20 }
 0x1f1   :  { %2231 = vst.msk [vmem:[%s4573_s3 + $0xa8] sm:$0xff] %vm2209_vm4, %v2181_v13  ;;  %v2133_v50 = vadd.f32 %v4179_v3, %v2077_v31  ;;  %v1549_v12 = vmax.f32 %v4698_v55, %v1419_v54  ;;  %v4713_v55 = vld [vmem:[#allocation11_spill] sm:$0xff] }
 0x1f2   :  { %v2980_v8 = vpop.f32.mrf.mxu0  ;;  %v3084_v9 = vpop.f32.mrf.mxu1 }
 0x1f3   :  { %v2182_v4 = vmax.f32 %v2133_v50, 0.0  ;;  %v2078_v62 = vmax.f32 %v1549_v12, %v1948_v49  ;;  %v4714_v12 = vld [vmem:[#allocation12_spill] sm:$0xff] }
 0x1f4   :  { %v1424_v63 = vpop.f32.mrf.mxu0  ;;  %v1953_v51 = vpop.f32.mrf.mxu1  ;;  %v4715_v8 = vmax.f32 %v4713_v55, %v4714_v12 }
 0x1f5   :  { %2232 = vst.msk [vmem:[%s4573_s3 + $0xb0] sm:$0xff] %vm2209_vm4, %v2182_v4  ;;  %v2134_v44 = vadd.f32 %v4179_v3, %v2078_v62  ;;  %v1550_v0 = vmax.f32 %v4700_v10, %v1424_v63 }
 0x1f6   :  { %v2983_v1 = vpop.f32.mrf.mxu0  ;;  %v3087_v56 = vpop.f32.mrf.mxu1 }
 0x1f7   :  { %v2183_v17 = vmax.f32 %v2134_v44, 0.0  ;;  %v2079_v2 = vmax.f32 %v1550_v0, %v1953_v51  ;;  %v4716_v0 = vld [vmem:[#allocation13_spill] sm:$0xff]  ;;  %v4717_v1 = vld [vmem:[#allocation14_spill] sm:$0xff] }
 0x1f8   :  { %v1427_v35 = vpop.f32.mrf.mxu0  ;;  %v1956_v36 = vpop.f32.mrf.mxu1  ;;  %v4718_v56 = vmax.f32 %v4716_v0, %v4717_v1 }
 0x1f9   :  { %2233 = vst.msk [vmem:[%s4573_s3 + $0xb8] sm:$0xff] %vm2209_vm4, %v2183_v17  ;;  %v2135_v32 = vadd.f32 %v4179_v3, %v2079_v2  ;;  %v1551_v19 = vmax.f32 %v4703_v29, %v1427_v35 }
 0x1fa   :  { %v2984_v37 = vpop.f32.mrf.mxu0  ;;  %v3088_v39 = vpop.f32.mrf.mxu1 }
 0x1fb   :  { %v2184_v33 = vmax.f32 %v2135_v32, 0.0  ;;  %v2080_v14 = vmax.f32 %v1551_v19, %v1956_v36  ;;  %v4719_v19 = vld [vmem:[#allocation15_spill] sm:$0xff]  ;;  %v4720_v37 = vld [vmem:[#allocation16_spill] sm:$0xff] }
 0x1fc   :  { %v1432_v16 = vpop.f32.mrf.mxu0  ;;  %v1961_v59 = vpop.f32.mrf.mxu1  ;;  %v4721_v39 = vmax.f32 %v4719_v19, %v4720_v37 }
 0x1fd   :  { %2234 = vst.msk [vmem:[%s4573_s3 + $0xc0] sm:$0xff] %vm2209_vm4, %v2184_v33  ;;  %v2136_v34 = vadd.f32 %v4179_v3, %v2080_v14  ;;  %v1552_v43 = vmax.f32 %v4706_v42, %v1432_v16 }
 0x1fe   :  { %v2987_v6 = vpop.f32.mrf.mxu0  ;;  %v3091_v7 = vpop.f32.mrf.mxu1 }
 0x1ff   :  { %v2185_v57 = vmax.f32 %v2136_v34, 0.0  ;;  %v2081_v25 = vmax.f32 %v1552_v43, %v1961_v59  ;;  %v4722_v43 = vld [vmem:[#allocation17_spill] sm:$0xff]  ;;  %v4723_v6 = vld [vmem:[#allocation18_spill] sm:$0xff] }
 0x200   :  { %v1435_v26 = vpop.f32.mrf.mxu0  ;;  %v1964_v46 = vpop.f32.mrf.mxu1  ;;  %v4724_v7 = vmax.f32 %v4722_v43, %v4723_v6 }
 0x201   :  { %2235 = vst.msk [vmem:[%s4573_s3 + $0xc8] sm:$0xff] %vm2209_vm4, %v2185_v57  ;;  %v2137_v52 = vadd.f32 %v4179_v3, %v2081_v25  ;;  %v1553_v27 = vmax.f32 %v4709_v58, %v1435_v26 }
 0x202   :  { %v2988_v47 = vpop.f32.mrf.mxu0  ;;  %v3092_v48 = vpop.f32.mrf.mxu1 }
 0x203   :  { %v2186_v22 = vmax.f32 %v2137_v52, 0.0  ;;  %v2082_v60 = vmax.f32 %v1553_v27, %v1964_v46  ;;  %v4725_v27 = vld [vmem:[#allocation19_spill] sm:$0xff]  ;;  %v4726_v47 = vld [vmem:[#allocation20_spill] sm:$0xff] }
 0x204   :  { %v1440_v21 = vpop.f32.mrf.mxu0  ;;  %v1969_v38 = vpop.f32.mrf.mxu1  ;;  %v4727_v48 = vmax.f32 %v4725_v27, %v4726_v47 }
 0x205   :  { %2236 = vst.msk [vmem:[%s4573_s3 + $0xd0] sm:$0xff] %vm2209_vm4, %v2186_v22  ;;  %v2138_v40 = vadd.f32 %v4179_v3, %v2082_v60  ;;  %v1554_v11 = vmax.f32 %v4712_v15, %v1440_v21 }
 0x206   :  { %v2991_v30 = vpop.f32.mrf.mxu0  ;;  %v3095_v41 = vpop.f32.mrf.mxu1 }
 0x207   :  { %v2187_v13 = vmax.f32 %v2138_v40, 0.0  ;;  %v2083_v31 = vmax.f32 %v1554_v11, %v1969_v38  ;;  %v4728_v11 = vld [vmem:[#allocation21_spill] sm:$0xff]  ;;  %v4729_v30 = vld [vmem:[#allocation22_spill] sm:$0xff] }
 0x208   :  { %v1443_v54 = vpop.f32.mrf.mxu0  ;;  %v1972_v49 = vpop.f32.mrf.mxu1  ;;  %v4730_v41 = vmax.f32 %v4728_v11, %v4729_v30 }
 0x209   :  { %2237 = vst.msk [vmem:[%s4573_s3 + $0xd8] sm:$0xff] %vm2209_vm4, %v2187_v13  ;;  %v2139_v50 = vadd.f32 %v4179_v3, %v2083_v31  ;;  %v1555_v9 = vmax.f32 %v4715_v8, %v1443_v54 }
 0x20a   :  { %v2992_v4 = vpop.f32.mrf.mxu0  ;;  %v3096_v62 = vpop.f32.mrf.mxu1 }
 0x20b   :  { %v2188_v63 = vmax.f32 %v2139_v50, 0.0  ;;  %v2084_v51 = vmax.f32 %v1555_v9, %v1972_v49  ;;  %v4731_v9 = vld [vmem:[#allocation23_spill] sm:$0xff]  ;;  %v4732_v4 = vld [vmem:[#allocation24_spill] sm:$0xff] }
 0x20c   :  { %v1448_v44 = vpop.f32.mrf.mxu0  ;;  %v1977_v5 = vpop.f32.mrf.mxu1  ;;  %v4733_v62 = vmax.f32 %v4731_v9, %v4732_v4 }
 0x20d   :  { %2238 = vst.msk [vmem:[%s4573_s3 + $0xe0] sm:$0xff] %vm2209_vm4, %v2188_v63  ;;  %v2140_v10 = vadd.f32 %v4179_v3, %v2084_v51  ;;  %v1556_v17 = vmax.f32 %v4718_v56, %v1448_v44 }
 0x20e   :  { %v2995_v2 = vpop.f32.mrf.mxu0  ;;  %v3099_v35 = vpop.f32.mrf.mxu1 }
 0x20f   :  { %v2189_v36 = vmax.f32 %v2140_v10, 0.0  ;;  %v2085_v32 = vmax.f32 %v1556_v17, %v1977_v5  ;;  %v4734_v17 = vld [vmem:[#allocation25_spill] sm:$0xff]  ;;  %v4735_v2 = vld [vmem:[#allocation26_spill] sm:$0xff] }
 0x210   :  { %v1451_v18 = vpop.f32.mrf.mxu0  ;;  %v1980_v28 = vpop.f32.mrf.mxu1  ;;  %v4736_v35 = vmax.f32 %v4734_v17, %v4735_v2 }
 0x211   :  { %2239 = vst.msk [vmem:[%s4573_s3 + $0xe8] sm:$0xff] %vm2209_vm4, %v2189_v36  ;;  %v2141_v29 = vadd.f32 %v4179_v3, %v2085_v32  ;;  %v1557_v33 = vmax.f32 %v4721_v39, %v1451_v18 }
 0x212   :  { %v2996_v14 = vpop.f32.mrf.mxu0  ;;  %v3100_v16 = vpop.f32.mrf.mxu1 }
 0x213   :  { %v2190_v59 = vmax.f32 %v2141_v29, 0.0  ;;  %v2086_v34 = vmax.f32 %v1557_v33, %v1980_v28  ;;  %v4737_v33 = vld [vmem:[#allocation27_spill] sm:$0xff]  ;;  %v4738_v14 = vld [vmem:[#allocation28_spill] sm:$0xff] }
 0x214   :  { %v1456_v53 = vpop.f32.mrf.mxu0  ;;  %v1985_v61 = vpop.f32.mrf.mxu1  ;;  %v4739_v16 = vmax.f32 %v4737_v33, %v4738_v14 }
 0x215   :  { %2240 = vst.msk [vmem:[%s4573_s3 + $0xf0] sm:$0xff] %vm2209_vm4, %v2190_v59  ;;  %v2142_v42 = vadd.f32 %v4179_v3, %v2086_v34  ;;  %v1558_v57 = vmax.f32 %v4724_v7, %v1456_v53 }
 0x216   :  { %v2999_v25 = vpop.f32.mrf.mxu0  ;;  %v3103_v26 = vpop.f32.mrf.mxu1 }
 0x217   :  { %v2191_v46 = vmax.f32 %v2142_v42, 0.0  ;;  %v2087_v52 = vmax.f32 %v1558_v57, %v1985_v61  ;;  %v4740_v57 = vld [vmem:[#allocation29_spill] sm:$0xff]  ;;  %v4741_v25 = vld [vmem:[#allocation30_spill] sm:$0xff] }
 0x218   :  { %v1459_v23 = vpop.f32.mrf.mxu0  ;;  %v1988_v24 = vpop.f32.mrf.mxu1  ;;  %v4742_v26 = vmax.f32 %v4740_v57, %v4741_v25 }
 0x219   :  { %2241 = vst.msk [vmem:[%s4573_s3 + $0xf8] sm:$0xff] %vm2209_vm4, %v2191_v46  ;;  %v2143_v58 = vadd.f32 %v4179_v3, %v2087_v52  ;;  %v1559_v22 = vmax.f32 %v4727_v48, %v1459_v23 }
 0x21a   :  { %v3000_v60 = vpop.f32.mrf.mxu0  ;;  %v3104_v21 = vpop.f32.mrf.mxu1 }
 0x21b   :  { %v2192_v38 = vmax.f32 %v2143_v58, 0.0  ;;  %v2088_v40 = vmax.f32 %v1559_v22, %v1988_v24  ;;  %v4743_v22 = vld [vmem:[#allocation31_spill] sm:$0xff]  ;;  %v4744_v60 = vld [vmem:[#allocation32_spill] sm:$0xff] }
 0x21c   :  { %v1464_v45 = vpop.f32.mrf.mxu0  ;;  %v1993_v20 = vpop.f32.mrf.mxu1  ;;  %v4745_v21 = vmax.f32 %v4743_v22, %v4744_v60 }
 0x21d   :  { %2242 = vst.msk [vmem:[%s4573_s3 + $0x100] sm:$0xff] %vm2209_vm4, %v2192_v38  ;;  %v2144_v15 = vadd.f32 %v4179_v3, %v2088_v40  ;;  %v1560_v13 = vmax.f32 %v4730_v41, %v1464_v45 }
 0x21e   :  { %v3003_v31 = vpop.f32.mrf.mxu0  ;;  %v3107_v54 = vpop.f32.mrf.mxu1 }
 0x21f   :  { %v2193_v49 = vmax.f32 %v2144_v15, 0.0  ;;  %v2089_v50 = vmax.f32 %v1560_v13, %v1993_v20  ;;  %v4746_v13 = vld [vmem:[#allocation33_spill] sm:$0xff]  ;;  %v4747_v31 = vld [vmem:[#allocation34_spill] sm:$0xff] }
 0x220   :  { %v1467_v55 = vpop.f32.mrf.mxu0  ;;  %v1996_v12 = vpop.f32.mrf.mxu1  ;;  %v4748_v54 = vmax.f32 %v4746_v13, %v4747_v31 }
 0x221   :  { %2243 = vst.msk [vmem:[%s4573_s3 + $0x108] sm:$0xff] %vm2209_vm4, %v2193_v49  ;;  %v2145_v8 = vadd.f32 %v4179_v3, %v2089_v50  ;;  %v1561_v63 = vmax.f32 %v4733_v62, %v1467_v55 }
 0x222   :  { %v3004_v51 = vpop.f32.mrf.mxu0  ;;  %v3108_v44 = vpop.f32.mrf.mxu1 }
 0x223   :  { %v2194_v5 = vmax.f32 %v2145_v8, 0.0  ;;  %v2090_v10 = vmax.f32 %v1561_v63, %v1996_v12  ;;  %v4749_v63 = vld [vmem:[#allocation35_spill] sm:$0xff]  ;;  %v4750_v51 = vld [vmem:[#allocation36_spill] sm:$0xff] }
 0x224   :  { %v1472_v0 = vpop.f32.mrf.mxu0  ;;  %v2001_v1 = vpop.f32.mrf.mxu1  ;;  %v4751_v44 = vmax.f32 %v4749_v63, %v4750_v51 }
 0x225   :  { %2244 = vst.msk [vmem:[%s4573_s3 + $0x110] sm:$0xff] %vm2209_vm4, %v2194_v5  ;;  %v2146_v56 = vadd.f32 %v4179_v3, %v2090_v10  ;;  %v1562_v36 = vmax.f32 %v4736_v35, %v1472_v0 }
 0x226   :  { %v3007_v32 = vpop.f32.mrf.mxu0  ;;  %v3111_v18 = vpop.f32.mrf.mxu1 }
 0x227   :  { %v2195_v28 = vmax.f32 %v2146_v56, 0.0  ;;  %v2091_v29 = vmax.f32 %v1562_v36, %v2001_v1  ;;  %v4752_v36 = vld [vmem:[#allocation37_spill] sm:$0xff]  ;;  %v4753_v32 = vld [vmem:[#allocation38_spill] sm:$0xff] }
 0x228   :  { %v1475_v19 = vpop.f32.mrf.mxu0  ;;  %v2004_v37 = vpop.f32.mrf.mxu1  ;;  %v4754_v18 = vmax.f32 %v4752_v36, %v4753_v32 }
 0x229   :  { %2245 = vst.msk [vmem:[%s4573_s3 + $0x118] sm:$0xff] %vm2209_vm4, %v2195_v28  ;;  %v2147_v39 = vadd.f32 %v4179_v3, %v2091_v29  ;;  %v1563_v59 = vmax.f32 %v4739_v16, %v1475_v19 }
 0x22a   :  { %v3008_v34 = vpop.f32.mrf.mxu0  ;;  %v3112_v53 = vpop.f32.mrf.mxu1 }
 0x22b   :  { %v2196_v61 = vmax.f32 %v2147_v39, 0.0  ;;  %v2092_v42 = vmax.f32 %v1563_v59, %v2004_v37  ;;  %v4755_v59 = vld [vmem:[#allocation39_spill] sm:$0xff]  ;;  %v4756_v34 = vld [vmem:[#allocation40_spill] sm:$0xff] }
 0x22c   :  { %v1480_v43 = vpop.f32.mrf.mxu0  ;;  %v2009_v6 = vpop.f32.mrf.mxu1  ;;  %v4757_v53 = vmax.f32 %v4755_v59, %v4756_v34 }
 0x22d   :  { %2246 = vst.msk [vmem:[%s4573_s3 + $0x120] sm:$0xff] %vm2209_vm4, %v2196_v61  ;;  %v2148_v7 = vadd.f32 %v4179_v3, %v2092_v42  ;;  %v1564_v46 = vmax.f32 %v4742_v26, %v1480_v43 }
 0x22e   :  { %v3011_v52 = vpop.f32.mrf.mxu0  ;;  %v3115_v23 = vpop.f32.mrf.mxu1 }
 0x22f   :  { %v2197_v24 = vmax.f32 %v2148_v7, 0.0  ;;  %v2093_v58 = vmax.f32 %v1564_v46, %v2009_v6  ;;  %v4758_v46 = vld [vmem:[#allocation41_spill] sm:$0xff]  ;;  %v4759_v52 = vld [vmem:[#allocation42_spill] sm:$0xff] }
 0x230   :  { %v1483_v27 = vpop.f32.mrf.mxu0  ;;  %v2012_v47 = vpop.f32.mrf.mxu1  ;;  %v4760_v23 = vmax.f32 %v4758_v46, %v4759_v52 }
 0x231   :  { %2247 = vst.msk [vmem:[%s4573_s3 + $0x128] sm:$0xff] %vm2209_vm4, %v2197_v24  ;;  %v2149_v48 = vadd.f32 %v4179_v3, %v2093_v58  ;;  %v1565_v38 = vmax.f32 %v4745_v21, %v1483_v27 }
 0x232   :  { %v3012_v40 = vpop.f32.mrf.mxu0  ;;  %v3116_v45 = vpop.f32.mrf.mxu1 }
 0x233   :  { %v2198_v20 = vmax.f32 %v2149_v48, 0.0  ;;  %v2094_v15 = vmax.f32 %v1565_v38, %v2012_v47  ;;  %v4761_v38 = vld [vmem:[#allocation43_spill] sm:$0xff]  ;;  %v4762_v40 = vld [vmem:[#allocation44_spill] sm:$0xff] }
 0x234   :  { %v1488_v11 = vpop.f32.mrf.mxu0  ;;  %v2017_v30 = vpop.f32.mrf.mxu1  ;;  %v4763_v45 = vmax.f32 %v4761_v38, %v4762_v40 }
 0x235   :  { %2248 = vst.msk [vmem:[%s4573_s3 + $0x130] sm:$0xff] %vm2209_vm4, %v2198_v20  ;;  %v2150_v41 = vadd.f32 %v4179_v3, %v2094_v15  ;;  %v1566_v49 = vmax.f32 %v4748_v54, %v1488_v11 }
 0x236   :  { %v3015_v50 = vpop.f32.mrf.mxu0  ;;  %v3119_v55 = vpop.f32.mrf.mxu1 }
 0x237   :  { %v2199_v12 = vmax.f32 %v2150_v41, 0.0  ;;  %v2095_v8 = vmax.f32 %v1566_v49, %v2017_v30  ;;  %v4764_v49 = vld [vmem:[#allocation45_spill] sm:$0xff]  ;;  %v4765_v50 = vld [vmem:[#allocation46_spill] sm:$0xff] }
 0x238   :  { %v1491_v9 = vpop.f32.mrf.mxu0  ;;  %v2020_v4 = vpop.f32.mrf.mxu1  ;;  %v4766_v55 = vmax.f32 %v4764_v49, %v4765_v50 }
 0x239   :  { %2249 = vst.msk [vmem:[%s4573_s3 + $0x138] sm:$0xff] %vm2209_vm4, %v2199_v12  ;;  %v2151_v62 = vadd.f32 %v4179_v3, %v2095_v8  ;;  %v1567_v5 = vmax.f32 %v4751_v44, %v1491_v9 }
 0x23a   :  { %v3016_v10 = vpop.f32.mrf.mxu0  ;;  %v3120_v0 = vpop.f32.mrf.mxu1 }
 0x23b   :  { %v2200_v1 = vmax.f32 %v2151_v62, 0.0  ;;  %v2096_v56 = vmax.f32 %v1567_v5, %v2020_v4  ;;  %v4767_v5 = vld [vmem:[#allocation47_spill] sm:$0xff]  ;;  %v4768_v10 = vld [vmem:[#allocation48_spill] sm:$0xff] }
 0x23c   :  { %v1496_v17 = vpop.f32.mrf.mxu0  ;;  %v2025_v2 = vpop.f32.mrf.mxu1  ;;  %v4769_v0 = vmax.f32 %v4767_v5, %v4768_v10 }
 0x23d   :  { %2250 = vst.msk [vmem:[%s4573_s3 + $0x140] sm:$0xff] %vm2209_vm4, %v2200_v1  ;;  %v2152_v35 = vadd.f32 %v4179_v3, %v2096_v56  ;;  %v1568_v28 = vmax.f32 %v4754_v18, %v1496_v17 }
 0x23e   :  { %v3019_v29 = vpop.f32.mrf.mxu0  ;;  %v3123_v19 = vpop.f32.mrf.mxu1 }
 0x23f   :  { %v2201_v37 = vmax.f32 %v2152_v35, 0.0  ;;  %v2097_v39 = vmax.f32 %v1568_v28, %v2025_v2  ;;  %v4770_v28 = vld [vmem:[#allocation49_spill] sm:$0xff]  ;;  %v4771_v29 = vld [vmem:[#allocation50_spill] sm:$0xff] }
 0x240   :  { %v1499_v33 = vpop.f32.mrf.mxu0  ;;  %v2028_v14 = vpop.f32.mrf.mxu1  ;;  %v4772_v19 = vmax.f32 %v4770_v28, %v4771_v29 }
 0x241   :  { %2251 = vst.msk [vmem:[%s4573_s3 + $0x148] sm:$0xff] %vm2209_vm4, %v2201_v37  ;;  %v2153_v16 = vadd.f32 %v4179_v3, %v2097_v39  ;;  %v1569_v61 = vmax.f32 %v4757_v53, %v1499_v33 }
 0x242   :  { %v3020_v42 = vpop.f32.mrf.mxu0  ;;  %v3124_v43 = vpop.f32.mrf.mxu1 }
 0x243   :  { %v2202_v6 = vmax.f32 %v2153_v16, 0.0  ;;  %v2098_v7 = vmax.f32 %v1569_v61, %v2028_v14 }
 0x244   :  { %v1504_v57 = vpop.f32.mrf.mxu0  ;;  %v2033_v25 = vpop.f32.mrf.mxu1 }
 0x245   :  { %2252 = vst.msk [vmem:[%s4573_s3 + $0x150] sm:$0xff] %vm2209_vm4, %v2202_v6  ;;  %v2154_v26 = vadd.f32 %v4179_v3, %v2098_v7  ;;  %v1570_v24 = vmax.f32 %v4760_v23, %v1504_v57 }
 0x246   :  { %v3023_v58 = vpop.f32.mrf.mxu0  ;;  %v3127_v27 = vpop.f32.mrf.mxu1 }
 0x247   :  { %v2203_v47 = vmax.f32 %v2154_v26, 0.0  ;;  %v2099_v48 = vmax.f32 %v1570_v24, %v2033_v25 }
 0x248   :  { %v1507_v22 = vpop.f32.mrf.mxu0  ;;  %v2036_v60 = vpop.f32.mrf.mxu1 }
 0x249   :  { %2253 = vst.msk [vmem:[%s4573_s3 + $0x158] sm:$0xff] %vm2209_vm4, %v2203_v47  ;;  %v2155_v21 = vadd.f32 %v4179_v3, %v2099_v48  ;;  %v1571_v20 = vmax.f32 %v4763_v45, %v1507_v22 }
 0x24a   :  { %v3024_v15 = vpop.f32.mrf.mxu0  ;;  %v3128_v11 = vpop.f32.mrf.mxu1 }
 0x24b   :  { %v2204_v30 = vmax.f32 %v2155_v21, 0.0  ;;  %v2100_v41 = vmax.f32 %v1571_v20, %v2036_v60 }
 0x24c   :  { %v1512_v13 = vpop.f32.mrf.mxu0  ;;  %v2041_v31 = vpop.f32.mrf.mxu1 }
 0x24d   :  { %2254 = vst.msk [vmem:[%s4573_s3 + $0x160] sm:$0xff] %vm2209_vm4, %v2204_v30  ;;  %v2156_v54 = vadd.f32 %v4179_v3, %v2100_v41  ;;  %v1572_v12 = vmax.f32 %v4766_v55, %v1512_v13 }
 0x24e   :  { %v3027_v8 = vpop.f32.mrf.mxu0  ;;  %v3131_v9 = vpop.f32.mrf.mxu1 }
 0x24f   :  { %v2205_v4 = vmax.f32 %v2156_v54, 0.0  ;;  %v2101_v62 = vmax.f32 %v1572_v12, %v2041_v31 }
 0x250   :  { %v1515_v63 = vpop.f32.mrf.mxu0  ;;  %v2044_v51 = vpop.f32.mrf.mxu1 }
 0x251   :  { %2255 = vst.msk [vmem:[%s4573_s3 + $0x168] sm:$0xff] %vm2209_vm4, %v2205_v4  ;;  %v2157_v44 = vadd.f32 %v4179_v3, %v2101_v62  ;;  %v1573_v1 = vmax.f32 %v4769_v0, %v1515_v63 }
 0x252   :  { %v3028_v56 = vpop.f32.mrf.mxu0  ;;  %v3132_v17 = vpop.f32.mrf.mxu1 }
 0x253   :  { %v2206_v2 = vmax.f32 %v2157_v44, 0.0  ;;  %v2102_v35 = vmax.f32 %v1573_v1, %v2044_v51 }
 0x254   :  { %v1520_v36 = vpop.f32.mrf.mxu0  ;;  %v2049_v32 = vpop.f32.mrf.mxu1 }
 0x255   :  { %2256 = vst.msk [vmem:[%s4573_s3 + $0x170] sm:$0xff] %vm2209_vm4, %v2206_v2  ;;  %v2158_v18 = vadd.f32 %v4179_v3, %v2102_v35  ;;  %v1574_v37 = vmax.f32 %v4772_v19, %v1520_v36 }
 0x256   :  { %v3031_v39 = vpop.f32.mrf.mxu0  ;;  %v3135_v33 = vpop.f32.mrf.mxu1 }
 0x257   :  { %v2207_v14 = vmax.f32 %v2158_v18, 0.0  ;;  %v2103_v16 = vmax.f32 %v1574_v37, %v2049_v32 }
 0x258   :  { %v1523_v59 = vpop.f32.mrf.mxu0  ;;  %v2052_v34 = vpop.f32.mrf.mxu1 }
 0x259   :  { %2257 = vst.msk [vmem:[%s4573_s3 + $0x178] sm:$0xff] %vm2209_vm4, %v2207_v14  ;;  %v2159_v53 = vadd.f32 %v4179_v3, %v2103_v16 }
 0x25a   :  { %v3032_v61 = vpop.f32.mrf.mxu0  ;;  %v3136_v42 = vpop.f32.mrf.mxu1 }
 0x25b   :  { %v2208_v43 = vmax.f32 %v2159_v53, 0.0 }
 0x25d   :  { %2258 = vst.msk [vmem:[%s4573_s3 + $0x180] sm:$0xff] %vm2209_vm4, %v2208_v43 }

// kernel: convnet_forward.4
= control target key start
LH: loop header
LB: loop body
LE: loop exit
PB: predicated region body
PF: predicated region fallthrough
CT: control target
= control target key end

     0   :  { %v2372_v0 = vmov 0   ;;  %vm368_vm0 = vcmask 130048   ;;  %vm1691_vm1 = vcmask 261120   ;;  %vm1704_vm2 = vcmask 254976   ;;  %s3273_s1 = inlined_call_operand.vmem [shape: bf16[400,32], index: 1, kind: input, shape index: {}]   ;;  %s3274_s0 = inlined_call_operand.vmem [shape: bf16[4,98,400], index: 0, kind: input, shape index: {}]   ;;  %s3275_s2 = inlined_call_operand.vmem [shape: f32[1,32], index: 2, kind: input, shape index: {}]   ;;  %s3276_s3 = inlined_call_operand.vmem [shape: f32[98,32], index: 3, kind: output, shape index: {}]  }
   0x1   :  { %478 = vmatprep.subr.bf16.mxu1 %v2372_v0  ;;  %v2397_v1 = vld [vmem:[%s3273_s1 + $0x78] sm:$0xff]   ;;  %v2414_v4 = vld [vmem:[%s3273_s1 + $0x70] sm:$0xff]   ;;  %v2432_v7 = vld [vmem:[%s3273_s1 + $0x68] sm:$0xff]  }
   0x2   :  { %v2402_v2 = vld [vmem:[%s3273_s1 + $0xb8] sm:$0xff]   ;;  %1954 = vmatprep.subr.bf16.mxu0 %v2397_v1  ;;  %v2421_v5 = vld [vmem:[%s3273_s1 + $0xb0] sm:$0xff]   ;;  %v2438_v8 = vld [vmem:[%s3273_s1 + $0xa8] sm:$0xff]  }
   0x3   :  { %v2408_v3 = vld [vmem:[%s3273_s1 + $0x38] sm:$0xff]   ;;  %479 = vmatpush1.bf16.msra.mxu1 %v2402_v2  ;;  %v2427_v6 = vld [vmem:[%s3273_s1 + $0x30] sm:$0xff]   ;;  %v2445_v9 = vld [vmem:[%s3273_s1 + $0x28] sm:$0xff]  }
   0x4   :  { %1955 = vmatpush3.bf16.msra.mxu0 %v2408_v3  ;;  %480 = vmatprep.subr.bf16.mxu1 %v2372_v0  ;;  %v2451_v10 = vld [vmem:[%s3273_s1 + $0x60] sm:$0xff]   ;;  %v2470_v13 = vld [vmem:[%s3273_s1 + $0x58] sm:$0xff]   ;;  %v2489_v16 = vld [vmem:[%s3273_s1 + $0x50] sm:$0xff]  }
   0x5   :  { %1956 = vmatprep.subr.bf16.mxu0 %v2414_v4  ;;  %v2457_v11 = vld [vmem:[%s3273_s1 + $0xa0] sm:$0xff]   ;;  %v2476_v14 = vld [vmem:[%s3273_s1 + $0x98] sm:$0xff]   ;;  %v2495_v17 = vld [vmem:[%s3273_s1 + $0x90] sm:$0xff]  }
   0x6   :  { %v2464_v12 = vld [vmem:[%s3273_s1 + $0x20] sm:$0xff]   ;;  %v2483_v15 = vld [vmem:[%s3273_s1 + $0x18] sm:$0xff]   ;;  %v2502_v18 = vld [vmem:[%s3273_s1 + $0x10] sm:$0xff]  }
   0x7   :  { %481 = vmatpush1.bf16.msra.mxu1 %v2421_v5  ;;  %v2508_v19 = vld [vmem:[%s3273_s1 + $0x48] sm:$0xff]   ;;  %v2526_v22 = vld [vmem:[%s3273_s1 + $0x40] sm:$0xff]  }
   0x8   :  { %1957 = vmatpush3.bf16.msra.mxu0 %v2427_v6  ;;  %482 = vmatprep.subr.bf16.mxu1 %v2372_v0  ;;  %v2513_v20 = vld [vmem:[%s3273_s1 + $0x88] sm:$0xff]   ;;  %v2213_v23 = vld [vmem:[%s3274_s0 + $0x4] ss:$16 sps:$4 sm:$0xff]   ;;  %v2211_v27 = vld [vmem:[%s3274_s0] ss:$16 sps:$4 sm:$0xff]  }
   0x9   :  { %1958 = vmatprep.subr.bf16.mxu0 %v2432_v7  ;;  %v2519_v21 = vld [vmem:[%s3273_s1 + $0x8] sm:$0xff]   ;;  %v2536_v24 = vld [vmem:[%s3273_s1 + $0x80] sm:$0xff]   ;;  %422 = vmatprep.mubr.bf16.mxu0 %v2213_v23 }
   0xa   :  { %v2217_v25 = vld [vmem:[%s3274_s0 + $0xc] ss:$16 sps:$4 sm:$0xff]   ;;  %v2546_v26 = vld [vmem:[%s3273_s1] sm:$0xff]   ;;  %v2215_v30 = vld [vmem:[%s3274_s0 + $0x8] ss:$16 sps:$4 sm:$0xff]  }
   0xb   :  { %483 = vmatpush1.bf16.msra.mxu1 %v2438_v8  ;;  %1763 = vmatprep.mubr.msk.bf16.mxu1 %vm368_vm0, %v2217_v25  ;;  %v2557_v28 = vld [vmem:[%s3273_s1 + $0xc0] sm:$0xff]   ;;  %v2221_v31 = vld [vmem:[%s3274_s0 + $0x2c] ss:$16 sps:$4 sm:$0xff]   ;;  %v2223_v34 = vld [vmem:[%s3274_s0 + $0x28] ss:$16 sps:$4 sm:$0xff]  }
   0xc   :  { %1959 = vmatpush3.bf16.msra.mxu0 %v2445_v9  ;;  %484 = vmatprep.subr.bf16.mxu1 %v2372_v0  ;;  %v2218_v29 = vld [vmem:[%s3274_s0 + $0x24] ss:$16 sps:$4 sm:$0xff]   ;;  %v2220_v32 = vld [vmem:[%s3274_s0 + $0x20] ss:$16 sps:$4 sm:$0xff]   ;;  %v2227_v35 = vld [vmem:[%s3274_s0 + $0x4c] ss:$16 sps:$4 sm:$0xff]  }
   0xd   :  { %1960 = vmatprep.subr.bf16.mxu0 %v2451_v10  ;;  %v2224_v33 = vld [vmem:[%s3274_s0 + $0x44] ss:$16 sps:$4 sm:$0xff]   ;;  %v2226_v36 = vld [vmem:[%s3274_s0 + $0x40] ss:$16 sps:$4 sm:$0xff]   ;;  %v2229_v38 = vld [vmem:[%s3274_s0 + $0x48] ss:$16 sps:$4 sm:$0xff]  }
   0xe   :  { %v2230_v37 = vld [vmem:[%s3274_s0 + $0x64] ss:$16 sps:$4 sm:$0xff]   ;;  %v2233_v39 = vld [vmem:[%s3274_s0 + $0x6c] ss:$16 sps:$4 sm:$0xff]   ;;  %v2232_v40 = vld [vmem:[%s3274_s0 + $0x60] ss:$16 sps:$4 sm:$0xff]  }
   0xf   :  { %485 = vmatpush1.bf16.msra.mxu1 %v2457_v11  ;;  %v2236_v41 = vld [vmem:[%s3274_s0 + $0x84] ss:$16 sps:$4 sm:$0xff]   ;;  %v2235_v42 = vld [vmem:[%s3274_s0 + $0x68] ss:$16 sps:$4 sm:$0xff]   ;;  %v2239_v43 = vld [vmem:[%s3274_s0 + $0x8c] ss:$16 sps:$4 sm:$0xff]  }
  0x10   :  { %1961 = vmatpush3.bf16.msra.mxu0 %v2464_v12  ;;  %486 = vmatprep.subr.bf16.mxu1 %v2372_v0  ;;  %v2238_v44 = vld [vmem:[%s3274_s0 + $0x80] ss:$16 sps:$4 sm:$0xff]   ;;  %v2242_v45 = vld [vmem:[%s3274_s0 + $0xa4] ss:$16 sps:$4 sm:$0xff]   ;;  %v2241_v46 = vld [vmem:[%s3274_s0 + $0x88] ss:$16 sps:$4 sm:$0xff]  }
  0x11   :  { %1962 = vmatprep.subr.bf16.mxu0 %v2470_v13  ;;  %v2245_v47 = vld [vmem:[%s3274_s0 + $0xac] ss:$16 sps:$4 sm:$0xff]   ;;  %v89_v48 = vld [vmem:[%s3274_s0 + $0xc0] sm:$0x11]  ;;  %v2247_v52 = vld [vmem:[%s3274_s0 + $0xa8] ss:$16 sps:$4 sm:$0xff]  }
  0x12   :  { %v2244_v49 = vld [vmem:[%s3274_s0 + $0xa0] ss:$16 sps:$4 sm:$0xff]   ;;  %v1735_v50 = vcombine.high %v89_v48, %v89_v48  ;;  %v90_v51 = vld [vmem:[%s3274_s0 + $0xc8] sm:$0x11]  ;;  %v2254_v54 = vld [vmem:[%s3274_s0 + $0xd4] ss:$16 sps:$4 sm:$0xff]   ;;  %v1734_v55 = vcombine.low %v89_v48, %v89_v48 }
  0x13   :  { %487 = vmatpush1.bf16.msra.mxu1 %v2476_v14  ;;  %v1737_v53 = vcombine.high %v90_v51, %v90_v51  ;;  %v1736_v56 = vcombine.low %v90_v51, %v90_v51  ;;  %v2257_v57 = vld [vmem:[%s3274_s0 + $0xdc] ss:$16 sps:$4 sm:$0xff]   ;;  %v2252_v58 = vld [vmem:[%s3274_s0 + $0xd0] ss:$16 sps:$4 sm:$0xff]   ;;  %v2258_v59 = vld [vmem:[%s3274_s0 + $0xf4] ss:$16 sps:$4 sm:$0xff]  }
  0x14   :  { %1963 = vmatpush3.bf16.msra.mxu0 %v2483_v15  ;;  %488 = vmatprep.subr.bf16.mxu1 %v2372_v0  ;;  %v2255_v60 = vld [vmem:[%s3274_s0 + $0xd8] ss:$16 sps:$4 sm:$0xff]   ;;  %v2261_v61 = vld [vmem:[%s3274_s0 + $0xfc] ss:$16 sps:$4 sm:$0xff]   ;;  %v2260_v62 = vld [vmem:[%s3274_s0 + $0xf0] ss:$16 sps:$4 sm:$0xff]  }
  0x15   :  { %1964 = vmatprep.subr.bf16.mxu0 %v2489_v16  ;;  %v2264_v63 = vld [vmem:[%s3274_s0 + $0x114] ss:$16 sps:$4 sm:$0xff]   ;;  %v2263_v23 = vld [vmem:[%s3274_s0 + $0xf8] ss:$16 sps:$4 sm:$0xff]   ;;  %v2267_v25 = vld [vmem:[%s3274_s0 + $0x11c] ss:$16 sps:$4 sm:$0xff]  }
  0x16   :  { %v2297_v48 = vld [vmem:[%s3274_s0 + $0x1ac] ss:$16 sps:$4 sm:$0xff]   ;;  %v2295_v51 = vld [vmem:[%s3274_s0 + $0x1a8] ss:$16 sps:$4 sm:$0xff]  }
  0x17   :  { %489 = vmatpush1.bf16.msra.mxu1 %v2495_v17 }
  0x18   :  { %1965 = vmatpush3.bf16.msra.mxu0 %v2502_v18  ;;  %490 = vmatprep.subr.bf16.mxu1 %v2372_v0 }
  0x19   :  { %1966 = vmatprep.subr.bf16.mxu0 %v2508_v19 }
  0x1b   :  { %491 = vmatpush1.bf16.msra.mxu1 %v2513_v20 }
  0x1c   :  { %1967 = vmatpush3.bf16.msra.mxu0 %v2519_v21  ;;  %492 = vmatprep.subr.bf16.mxu1 %v2372_v0 }
  0x1d   :  { %1968 = vmatprep.subr.bf16.mxu0 %v2526_v22 }
  0x1f   :  { %493 = vmatpush1.bf16.msra.mxu1 %v2536_v24 }
  0x20   :  { %1969 = vmatpush3.bf16.msra.mxu0 %v2546_v26  ;;  %508 = vmatprep.subr.bf16.mxu1 %v2372_v0 }
  0x21   :  { %2012 = vmatprep.subr.bf16.mxu0 %v2397_v1 }
  0x23   :  { %423 = vmatmul.mubr.bf16.vlgmr.msra.gmra.mxu0 %v2211_v27  ;;  %509 = vmatpush2.bf16.msra.mxu1 %v2557_v28  ;;  %v2266_v27 = vld [vmem:[%s3274_s0 + $0x110] ss:$16 sps:$4 sm:$0xff]  }
  0x24   :  { %2013 = vmatpush3.bf16.msra.mxu0 %v2408_v3  ;;  %829 = vmatprep.subr.bf16.mxu1 %v2372_v0 }
  0x25   :  { %430 = vmatprep.mubr.bf16.mxu0 %v2218_v29  ;;  %2014 = vmatprep.subr.bf16.mxu0 %v2414_v4  ;;  %v2270_v29 = vld [vmem:[%s3274_s0 + $0x134] ss:$16 sps:$4 sm:$0xff]  }
  0x26   :  { %511 = vmatmul.mubr.bf16.vlgmr.msra.gmra.mxu1 %v2215_v30  ;;  %v2269_v30 = vld [vmem:[%s3274_s0 + $0x118] ss:$16 sps:$4 sm:$0xff]  }
  0x27   :  { %830 = vmatpush1.bf16.msra.mxu1 %v2402_v2  ;;  %1764 = vmatprep.mubr.msk.bf16.mxu1 %vm368_vm0, %v2221_v31  ;;  %v2273_v31 = vld [vmem:[%s3274_s0 + $0x13c] ss:$16 sps:$4 sm:$0xff]  }
  0x28   :  { %2015 = vmatpush3.bf16.msra.mxu0 %v2427_v6  ;;  %831 = vmatprep.subr.bf16.mxu1 %v2372_v0 }
  0x29   :  { %2016 = vmatprep.subr.bf16.mxu0 %v2432_v7 }
  0x2b   :  { %431 = vmatmul.mubr.bf16.gmra.mxu0 %v2220_v32  ;;  %832 = vmatpush1.bf16.msra.mxu1 %v2421_v5  ;;  %v2272_v32 = vld [vmem:[%s3274_s0 + $0x130] ss:$16 sps:$4 sm:$0xff]  }
  0x2c   :  { %438 = vmatprep.mubr.bf16.mxu0 %v2224_v33  ;;  %2017 = vmatpush3.bf16.msra.mxu0 %v2445_v9  ;;  %v2276_v33 = vld [vmem:[%s3274_s0 + $0x154] ss:$16 sps:$4 sm:$0xff]  }
  0x2d   :  { %833 = vmatprep.subr.bf16.mxu1 %v2372_v0  ;;  %2018 = vmatprep.subr.bf16.mxu0 %v2451_v10 }
  0x2e   :  { %519 = vmatmul.mubr.bf16.gmra.mxu1 %v2223_v34  ;;  %v2275_v34 = vld [vmem:[%s3274_s0 + $0x138] ss:$16 sps:$4 sm:$0xff]  }
  0x2f   :  { %1765 = vmatprep.mubr.msk.bf16.mxu1 %vm368_vm0, %v2227_v35  ;;  %834 = vmatpush1.bf16.msra.mxu1 %v2438_v8  ;;  %v2279_v35 = vld [vmem:[%s3274_s0 + $0x15c] ss:$16 sps:$4 sm:$0xff]  }
  0x30   :  { %2019 = vmatpush3.bf16.msra.mxu0 %v2464_v12  ;;  %835 = vmatprep.subr.bf16.mxu1 %v2372_v0 }
  0x31   :  { %2020 = vmatprep.subr.bf16.mxu0 %v2470_v13 }
  0x33   :  { %439 = vmatmul.mubr.bf16.gmra.mxu0 %v2226_v36  ;;  %836 = vmatpush1.bf16.msra.mxu1 %v2457_v11  ;;  %v2278_v36 = vld [vmem:[%s3274_s0 + $0x150] ss:$16 sps:$4 sm:$0xff]  }
  0x34   :  { %446 = vmatprep.mubr.bf16.mxu0 %v2230_v37  ;;  %2021 = vmatpush3.bf16.msra.mxu0 %v2483_v15  ;;  %v2282_v37 = vld [vmem:[%s3274_s0 + $0x174] ss:$16 sps:$4 sm:$0xff]  }
  0x35   :  { %837 = vmatprep.subr.bf16.mxu1 %v2372_v0  ;;  %2022 = vmatprep.subr.bf16.mxu0 %v2489_v16 }
  0x36   :  { %527 = vmatmul.mubr.bf16.gmra.mxu1 %v2229_v38  ;;  %v2281_v38 = vld [vmem:[%s3274_s0 + $0x158] ss:$16 sps:$4 sm:$0xff]  }
  0x37   :  { %1766 = vmatprep.mubr.msk.bf16.mxu1 %vm368_vm0, %v2233_v39  ;;  %838 = vmatpush1.bf16.msra.mxu1 %v2476_v14  ;;  %v2285_v39 = vld [vmem:[%s3274_s0 + $0x17c] ss:$16 sps:$4 sm:$0xff]  }
  0x38   :  { %2023 = vmatpush3.bf16.msra.mxu0 %v2502_v18  ;;  %839 = vmatprep.subr.bf16.mxu1 %v2372_v0 }
  0x39   :  { %2024 = vmatprep.subr.bf16.mxu0 %v2508_v19 }
  0x3b   :  { %447 = vmatmul.mubr.bf16.gmra.mxu0 %v2232_v40  ;;  %840 = vmatpush1.bf16.msra.mxu1 %v2495_v17  ;;  %v1794_v40 = vld [vmem:[%s3274_s0 + $0x190] sm:$0x11] }
  0x3c   :  { %454 = vmatprep.mubr.bf16.mxu0 %v2236_v41  ;;  %841 = vmatprep.subr.bf16.mxu1 %v2372_v0  ;;  %v2284_v41 = vld [vmem:[%s3274_s0 + $0x170] ss:$16 sps:$4 sm:$0xff]  }
  0x3d   :  { %2025 = vmatpush3.bf16.msra.mxu0 %v2519_v21 }
  0x3e   :  { %535 = vmatmul.mubr.bf16.gmra.mxu1 %v2235_v42  ;;  %2026 = vmatprep.subr.bf16.mxu0 %v2526_v22  ;;  %v1795_v42 = vld [vmem:[%s3274_s0 + $0x198] sm:$0x11] }
  0x3f   :  { %1767 = vmatprep.mubr.msk.bf16.mxu1 %vm368_vm0, %v2239_v43  ;;  %842 = vmatpush1.bf16.msra.mxu1 %v2513_v20  ;;  %v2287_v43 = vld [vmem:[%s3274_s0 + $0x178] ss:$16 sps:$4 sm:$0xff]  }
  0x40   :  { %843 = vmatprep.subr.bf16.mxu1 %v2372_v0 }
  0x41   :  { %2027 = vmatpush3.bf16.msra.mxu0 %v2546_v26 }
  0x42   :  { %2070 = vmatprep.subr.bf16.mxu0 %v2397_v1 }
  0x43   :  { %455 = vmatmul.mubr.bf16.gmra.mxu0 %v2238_v44  ;;  %844 = vmatpush1.bf16.msra.mxu1 %v2536_v24  ;;  %v1823_v44 = vcombine.high %v1795_v42, %v1795_v42 }
  0x44   :  { %462 = vmatprep.mubr.bf16.mxu0 %v2242_v45  ;;  %859 = vmatprep.subr.bf16.mxu1 %v2372_v0  ;;  %v1820_v45 = vcombine.low %v1794_v40, %v1794_v40 }
  0x46   :  { %543 = vmatmul.mubr.bf16.gmra.mxu1 %v2241_v46  ;;  %v2294_v46 = vld [vmem:[%s3274_s0 + $0x1a4] ss:$16 sps:$4 sm:$0xff]  }
  0x47   :  { %1768 = vmatprep.mubr.msk.bf16.mxu1 %vm368_vm0, %v2245_v47  ;;  %860 = vmatpush2.bf16.msra.mxu1 %v2557_v28  ;;  %v1822_v47 = vcombine.low %v1795_v42, %v1795_v42 }
  0x48   :  { %1193 = vmatprep.subr.bf16.mxu1 %v2372_v0 }
  0x4b   :  { %463 = vmatmul.mubr.bf16.gmra.mxu0 %v2244_v49  ;;  %v2292_v49 = vld [vmem:[%s3274_s0 + $0x1a0] ss:$16 sps:$4 sm:$0xff]  }
  0x4c   :  { %470 = vmatprep.mubr.bf16.mxu0 %v1735_v50  ;;  %v2298_v50 = vld [vmem:[%s3274_s0 + $0x1c4] ss:$16 sps:$4 sm:$0xff]  }
  0x4e   :  { %551 = vmatmul.mubr.bf16.gmra.mxu1 %v2247_v52  ;;  %v2301_v52 = vld [vmem:[%s3274_s0 + $0x1cc] ss:$16 sps:$4 sm:$0xff]  }
  0x4f   :  { %1769 = vmatprep.mubr.msk.bf16.mxu1 %vm368_vm0, %v1737_v53  ;;  %v2300_v53 = vld [vmem:[%s3274_s0 + $0x1c0] ss:$16 sps:$4 sm:$0xff]  }
  0x53   :  { %471 = vmatmul.mubr.bf16.gmra.mxu0 %v1734_v55  ;;  %v2338_v55 = vld [vmem:[%s3274_s0 + $0x294] ss:$16 sps:$4 sm:$0xff]  }
  0x54   :  { %773 = vmatprep.mubr.bf16.mxu0 %v2254_v54  ;;  %v2332_v54 = vld [vmem:[%s3274_s0 + $0x270] ss:$16 sps:$4 sm:$0xff]  }
  0x56   :  { %559 = vmatmul.mubr.bf16.gmra.mxu1 %v1736_v56  ;;  %v2335_v56 = vld [vmem:[%s3274_s0 + $0x278] ss:$16 sps:$4 sm:$0xff]  }
  0x57   :  { %1824 = vmatprep.mubr.msk.bf16.mxu1 %vm368_vm0, %v2257_v57  ;;  %v2341_v57 = vld [vmem:[%s3274_s0 + $0x29c] ss:$16 sps:$4 sm:$0xff]  }
  0x5b   :  { %774 = vmatmul.mubr.bf16.vlgmr.msra.gmra.mxu0 %v2252_v58  ;;  %v2340_v58 = vld [vmem:[%s3274_s0 + $0x290] ss:$16 sps:$4 sm:$0xff]  }
  0x5c   :  { %2071 = vmatpush3.bf16.msra.mxu0 %v2408_v3  ;;  %781 = vmatprep.mubr.bf16.mxu0 %v2258_v59  ;;  %v2344_v59 = vld [vmem:[%s3274_s0 + $0x2b4] ss:$16 sps:$4 sm:$0xff]  }
  0x5d   :  { %2072 = vmatprep.subr.bf16.mxu0 %v2414_v4 }
  0x5e   :  { %862 = vmatmul.mubr.bf16.vlgmr.msra.gmra.mxu1 %v2255_v60  ;;  %v2343_v60 = vld [vmem:[%s3274_s0 + $0x298] ss:$16 sps:$4 sm:$0xff]  }
  0x5f   :  { %1194 = vmatpush1.bf16.msra.mxu1 %v2402_v2  ;;  %1825 = vmatprep.mubr.msk.bf16.mxu1 %vm368_vm0, %v2261_v61  ;;  %v2347_v61 = vld [vmem:[%s3274_s0 + $0x2bc] ss:$16 sps:$4 sm:$0xff]  }
  0x60   :  { %2073 = vmatpush3.bf16.msra.mxu0 %v2427_v6  ;;  %1195 = vmatprep.subr.bf16.mxu1 %v2372_v0 }
  0x61   :  { %2074 = vmatprep.subr.bf16.mxu0 %v2432_v7 }
  0x63   :  { %782 = vmatmul.mubr.bf16.gmra.mxu0 %v2260_v62  ;;  %1196 = vmatpush1.bf16.msra.mxu1 %v2421_v5  ;;  %v2346_v62 = vld [vmem:[%s3274_s0 + $0x2b0] ss:$16 sps:$4 sm:$0xff]  }
  0x64   :  { %789 = vmatprep.mubr.bf16.mxu0 %v2264_v63  ;;  %2075 = vmatpush3.bf16.msra.mxu0 %v2445_v9  ;;  %v2350_v63 = vld [vmem:[%s3274_s0 + $0x2d4] ss:$16 sps:$4 sm:$0xff]  }
  0x65   :  { %1197 = vmatprep.subr.bf16.mxu1 %v2372_v0  ;;  %2076 = vmatprep.subr.bf16.mxu0 %v2451_v10 }
  0x66   :  { %870 = vmatmul.mubr.bf16.gmra.mxu1 %v2263_v23  ;;  %v2349_v23 = vld [vmem:[%s3274_s0 + $0x2b8] ss:$16 sps:$4 sm:$0xff]  }
  0x67   :  { %1826 = vmatprep.mubr.msk.bf16.mxu1 %vm368_vm0, %v2267_v25  ;;  %1198 = vmatpush1.bf16.msra.mxu1 %v2438_v8  ;;  %v2353_v25 = vld [vmem:[%s3274_s0 + $0x2dc] ss:$16 sps:$4 sm:$0xff]  }
  0x68   :  { %2077 = vmatpush3.bf16.msra.mxu0 %v2464_v12  ;;  %1199 = vmatprep.subr.bf16.mxu1 %v2372_v0 }
  0x69   :  { %2078 = vmatprep.subr.bf16.mxu0 %v2470_v13 }
  0x6b   :  { %790 = vmatmul.mubr.bf16.gmra.mxu0 %v2266_v27  ;;  %1200 = vmatpush1.bf16.msra.mxu1 %v2457_v11  ;;  %v2352_v27 = vld [vmem:[%s3274_s0 + $0x2d0] ss:$16 sps:$4 sm:$0xff]  }
  0x6c   :  { %797 = vmatprep.mubr.bf16.mxu0 %v2270_v29  ;;  %2079 = vmatpush3.bf16.msra.mxu0 %v2483_v15  ;;  %v2356_v29 = vld [vmem:[%s3274_s0 + $0x2f4] ss:$16 sps:$4 sm:$0xff]  }
  0x6d   :  { %1201 = vmatprep.subr.bf16.mxu1 %v2372_v0  ;;  %2080 = vmatprep.subr.bf16.mxu0 %v2489_v16 }
  0x6e   :  { %878 = vmatmul.mubr.bf16.gmra.mxu1 %v2269_v30  ;;  %v2355_v30 = vld [vmem:[%s3274_s0 + $0x2d8] ss:$16 sps:$4 sm:$0xff]  }
  0x6f   :  { %1827 = vmatprep.mubr.msk.bf16.mxu1 %vm368_vm0, %v2273_v31  ;;  %1202 = vmatpush1.bf16.msra.mxu1 %v2476_v14 }
  0x70   :  { %2081 = vmatpush3.bf16.msra.mxu0 %v2502_v18  ;;  %1203 = vmatprep.subr.bf16.mxu1 %v2372_v0 }
  0x71   :  { %2082 = vmatprep.subr.bf16.mxu0 %v2508_v19 }
  0x73   :  { %798 = vmatmul.mubr.bf16.gmra.mxu0 %v2272_v32  ;;  %1204 = vmatpush1.bf16.msra.mxu1 %v2495_v17  ;;  %v2359_v32 = vld [vmem:[%s3274_s0 + $0x2fc] ss:$16 sps:$4 sm:$0xff]  }
  0x74   :  { %805 = vmatprep.mubr.bf16.mxu0 %v2276_v33  ;;  %1205 = vmatprep.subr.bf16.mxu1 %v2372_v0 }
  0x75   :  { %2083 = vmatpush3.bf16.msra.mxu0 %v2519_v21 }
  0x76   :  { %886 = vmatmul.mubr.bf16.gmra.mxu1 %v2275_v34  ;;  %2084 = vmatprep.subr.bf16.mxu0 %v2526_v22 }
  0x77   :  { %1828 = vmatprep.mubr.msk.bf16.mxu1 %vm368_vm0, %v2279_v35  ;;  %1206 = vmatpush1.bf16.msra.mxu1 %v2513_v20 }
  0x78   :  { %1207 = vmatprep.subr.bf16.mxu1 %v2372_v0 }
  0x79   :  { %2085 = vmatpush3.bf16.msra.mxu0 %v2546_v26 }
  0x7a   :  { %2128 = vmatprep.subr.bf16.mxu0 %v2397_v1  ;;  %v1821_v1 = vcombine.high %v1794_v40, %v1794_v40  ;;  %v2362_v40 = vld [vmem:[%s3274_s0 + $0x314] ss:$16 sps:$4 sm:$0xff]  }
  0x7b   :  { %806 = vmatmul.mubr.bf16.gmra.mxu0 %v2278_v36  ;;  %1208 = vmatpush1.bf16.msra.mxu1 %v2536_v24 }
  0x7c   :  { %813 = vmatprep.mubr.bf16.mxu0 %v2282_v37  ;;  %1223 = vmatprep.subr.bf16.mxu1 %v2372_v0  ;;  %v2358_v37 = vld [vmem:[%s3274_s0 + $0x2f0] ss:$16 sps:$4 sm:$0xff]  }
  0x7e   :  { %894 = vmatmul.mubr.bf16.gmra.mxu1 %v2281_v38 }
  0x7f   :  { %1829 = vmatprep.mubr.msk.bf16.mxu1 %vm368_vm0, %v2285_v39  ;;  %1224 = vmatpush2.bf16.msra.mxu1 %v2557_v28 }
  0x80   :  { %1557 = vmatprep.subr.bf16.mxu1 %v2372_v0 }
  0x83   :  { %814 = vmatmul.mubr.bf16.gmra.mxu0 %v2284_v41 }
  0x84   :  { %821 = vmatprep.mubr.bf16.mxu0 %v1821_v1 }
  0x86   :  { %902 = vmatmul.mubr.bf16.gmra.mxu1 %v2287_v43  ;;  %v2361_v43 = vld [vmem:[%s3274_s0 + $0x2f8] ss:$16 sps:$4 sm:$0xff]  }
  0x87   :  { %1830 = vmatprep.mubr.msk.bf16.mxu1 %vm368_vm0, %v1823_v44 }
  0x8b   :  { %822 = vmatmul.mubr.bf16.gmra.mxu0 %v1820_v45  ;;  %v2365_v45 = vld [vmem:[%s3274_s0 + $0x31c] ss:$16 sps:$4 sm:$0xff]  }
  0x8c   :  { %1137 = vmatprep.mubr.bf16.mxu0 %v2294_v46 }
  0x8e   :  { %910 = vmatmul.mubr.bf16.gmra.mxu1 %v1822_v47 }
  0x8f   :  { %1885 = vmatprep.mubr.msk.bf16.mxu1 %vm368_vm0, %v2297_v48 }
  0x93   :  { %1138 = vmatmul.mubr.bf16.vlgmr.msra.gmra.mxu0 %v2292_v49  ;;  %v1916_v49 = vld [vmem:[%s3274_s0 + $0x330] sm:$0x11] }
  0x94   :  { %2129 = vmatpush3.bf16.msra.mxu0 %v2408_v3  ;;  %1145 = vmatprep.mubr.bf16.mxu0 %v2298_v50  ;;  %v2304_v3 = vld [vmem:[%s3274_s0 + $0x1e4] ss:$16 sps:$4 sm:$0xff]  }
  0x95   :  { %2130 = vmatprep.subr.bf16.mxu0 %v2414_v4  ;;  %v2307_v4 = vld [vmem:[%s3274_s0 + $0x1ec] ss:$16 sps:$4 sm:$0xff]  }
  0x96   :  { %1226 = vmatmul.mubr.bf16.vlgmr.msra.gmra.mxu1 %v2295_v51 }
  0x97   :  { %1558 = vmatpush1.bf16.msra.mxu1 %v2402_v2  ;;  %1886 = vmatprep.mubr.msk.bf16.mxu1 %vm368_vm0, %v2301_v52  ;;  %v2303_v2 = vld [vmem:[%s3274_s0 + $0x1c8] ss:$16 sps:$4 sm:$0xff]  }
  0x98   :  { %2131 = vmatpush3.bf16.msra.mxu0 %v2427_v6  ;;  %1559 = vmatprep.subr.bf16.mxu1 %v2372_v0  ;;  %v2306_v6 = vld [vmem:[%s3274_s0 + $0x1e0] ss:$16 sps:$4 sm:$0xff]  }
  0x99   :  { %2132 = vmatprep.subr.bf16.mxu0 %v2432_v7  ;;  %v2309_v7 = vld [vmem:[%s3274_s0 + $0x1e8] ss:$16 sps:$4 sm:$0xff]  }
  0x9b   :  { %1146 = vmatmul.mubr.bf16.gmra.mxu0 %v2300_v53  ;;  %1560 = vmatpush1.bf16.msra.mxu1 %v2421_v5  ;;  %v2310_v5 = vld [vmem:[%s3274_s0 + $0x204] ss:$16 sps:$4 sm:$0xff]   ;;  %v2364_v53 = vld [vmem:[%s3274_s0 + $0x310] ss:$16 sps:$4 sm:$0xff]  }
  0x9c   :  { %1153 = vmatprep.mubr.bf16.mxu0 %v2304_v3  ;;  %2133 = vmatpush3.bf16.msra.mxu0 %v2445_v9  ;;  %v2312_v9 = vld [vmem:[%s3274_s0 + $0x200] ss:$16 sps:$4 sm:$0xff]  }
  0x9d   :  { %1561 = vmatprep.subr.bf16.mxu1 %v2372_v0  ;;  %2134 = vmatprep.subr.bf16.mxu0 %v2451_v10  ;;  %v2316_v10 = vld [vmem:[%s3274_s0 + $0x224] ss:$16 sps:$4 sm:$0xff]  }
  0x9e   :  { %1234 = vmatmul.mubr.bf16.gmra.mxu1 %v2303_v2 }
  0x9f   :  { %1887 = vmatprep.mubr.msk.bf16.mxu1 %vm368_vm0, %v2307_v4  ;;  %1562 = vmatpush1.bf16.msra.mxu1 %v2438_v8  ;;  %v2313_v8 = vld [vmem:[%s3274_s0 + $0x20c] ss:$16 sps:$4 sm:$0xff]   ;;  %v1943_v4 = vcombine.high %v1916_v49, %v1916_v49 }
  0xa0   :  { %2135 = vmatpush3.bf16.msra.mxu0 %v2464_v12  ;;  %1563 = vmatprep.subr.bf16.mxu1 %v2372_v0  ;;  %v2319_v12 = vld [vmem:[%s3274_s0 + $0x22c] ss:$16 sps:$4 sm:$0xff]  }
  0xa1   :  { %2136 = vmatprep.subr.bf16.mxu0 %v2470_v13  ;;  %v2318_v13 = vld [vmem:[%s3274_s0 + $0x220] ss:$16 sps:$4 sm:$0xff]  }
  0xa3   :  { %1154 = vmatmul.mubr.bf16.gmra.mxu0 %v2306_v6  ;;  %1564 = vmatpush1.bf16.msra.mxu1 %v2457_v11  ;;  %v2315_v11 = vld [vmem:[%s3274_s0 + $0x208] ss:$16 sps:$4 sm:$0xff]  }
  0xa4   :  { %1161 = vmatprep.mubr.bf16.mxu0 %v2310_v5  ;;  %2137 = vmatpush3.bf16.msra.mxu0 %v2483_v15  ;;  %v2321_v15 = vld [vmem:[%s3274_s0 + $0x228] ss:$16 sps:$4 sm:$0xff]  }
  0xa5   :  { %1565 = vmatprep.subr.bf16.mxu1 %v2372_v0  ;;  %2138 = vmatprep.subr.bf16.mxu0 %v2489_v16  ;;  %v2325_v16 = vld [vmem:[%s3274_s0 + $0x24c] ss:$16 sps:$4 sm:$0xff]  }
  0xa6   :  { %1242 = vmatmul.mubr.bf16.gmra.mxu1 %v2309_v7  ;;  %v1917_v6 = vld [vmem:[%s3274_s0 + $0x338] sm:$0x11] }
  0xa7   :  { %1888 = vmatprep.mubr.msk.bf16.mxu1 %vm368_vm0, %v2313_v8  ;;  %1566 = vmatpush1.bf16.msra.mxu1 %v2476_v14  ;;  %v2322_v14 = vld [vmem:[%s3274_s0 + $0x244] ss:$16 sps:$4 sm:$0xff]  }
  0xa8   :  { %2139 = vmatpush3.bf16.msra.mxu0 %v2502_v18  ;;  %1567 = vmatprep.subr.bf16.mxu1 %v2372_v0  ;;  %v2324_v18 = vld [vmem:[%s3274_s0 + $0x240] ss:$16 sps:$4 sm:$0xff]  }
  0xa9   :  { %2140 = vmatprep.subr.bf16.mxu0 %v2508_v19 }
  0xab   :  { %1162 = vmatmul.mubr.bf16.gmra.mxu0 %v2312_v9  ;;  %1568 = vmatpush1.bf16.msra.mxu1 %v2495_v17  ;;  %v1855_v17 = vld [vmem:[%s3274_s0 + $0x260] sm:$0x11]  ;;  %v2367_v9 = vld [vmem:[%s3274_s0 + $0x318] ss:$16 sps:$4 sm:$0xff]  }
  0xac   :  { %1169 = vmatprep.mubr.bf16.mxu0 %v2316_v10  ;;  %1569 = vmatprep.subr.bf16.mxu1 %v2372_v0  ;;  %v1882_v19 = vcombine.high %v1855_v17, %v1855_v17 }
  0xad   :  { %2141 = vmatpush3.bf16.msra.mxu0 %v2519_v21 }
  0xae   :  { %1250 = vmatmul.mubr.bf16.gmra.mxu1 %v2315_v11  ;;  %2142 = vmatprep.subr.bf16.mxu0 %v2526_v22  ;;  %v1881_v22 = vcombine.low %v1855_v17, %v1855_v17  ;;  %v1945_v11 = vcombine.high %v1917_v6, %v1917_v6 }
  0xaf   :  { %1889 = vmatprep.mubr.msk.bf16.mxu1 %vm368_vm0, %v2319_v12  ;;  %1570 = vmatpush1.bf16.msra.mxu1 %v2513_v20  ;;  %v1856_v20 = vld [vmem:[%s3274_s0 + $0x268] sm:$0x11] }
  0xb0   :  { %1571 = vmatprep.subr.bf16.mxu1 %v2372_v0  ;;  %v1884_v21 = vcombine.high %v1856_v20, %v1856_v20 }
  0xb1   :  { %2143 = vmatpush3.bf16.msra.mxu0 %v2546_v26  ;;  %v1883_v26 = vcombine.low %v1856_v20, %v1856_v20 }
  0xb3   :  { %1170 = vmatmul.mubr.bf16.gmra.mxu0 %v2318_v13  ;;  %1572 = vmatpush1.bf16.msra.mxu1 %v2536_v24  ;;  %v2334_v24 = vld [vmem:[%s3274_s0 + $0x274] ss:$16 sps:$4 sm:$0xff]  }
  0xb4   :  { %1177 = vmatprep.mubr.bf16.mxu0 %v2322_v14  ;;  %1587 = vmatprep.subr.bf16.mxu1 %v2372_v0  ;;  %v2327_v0 = vld [vmem:[%s3274_s0 + $0x248] ss:$16 sps:$4 sm:$0xff]  }
  0xb6   :  { %1258 = vmatmul.mubr.bf16.gmra.mxu1 %v2321_v15 }
  0xb7   :  { %1890 = vmatprep.mubr.msk.bf16.mxu1 %vm368_vm0, %v2325_v16  ;;  %1588 = vmatpush2.bf16.msra.mxu1 %v2557_v28  ;;  %v2337_v28 = vld [vmem:[%s3274_s0 + $0x27c] ss:$16 sps:$4 sm:$0xff]  }
  0xbb   :  { %1178 = vmatmul.mubr.bf16.gmra.mxu0 %v2324_v18  ;;  %v1942_v18 = vcombine.low %v1916_v49, %v1916_v49 }
  0xbc   :  { %1185 = vmatprep.mubr.bf16.mxu0 %v1882_v19 }
  0xbe   :  { %1266 = vmatmul.mubr.bf16.gmra.mxu1 %v2327_v0 }
  0xbf   :  { %1891 = vmatprep.mubr.msk.bf16.mxu1 %vm368_vm0, %v1884_v21 }
  0xc3   :  { %1186 = vmatmul.mubr.bf16.gmra.mxu0 %v1881_v22 }
  0xc4   :  { %1501 = vmatprep.mubr.bf16.mxu0 %v2334_v24  ;;  %v1944_v24 = vcombine.low %v1917_v6, %v1917_v6 }
  0xc6   :  { %1274 = vmatmul.mubr.bf16.gmra.mxu1 %v1883_v26 }
  0xc7   :  { %1946 = vmatprep.mubr.msk.bf16.mxu1 %vm368_vm0, %v2337_v28 }
  0xcb   :  { %1502 = vmatmul.mubr.bf16.vlgmr.msra.gmra.mxu0 %v2332_v54 }
  0xcc   :  { %1509 = vmatprep.mubr.bf16.mxu0 %v2338_v55 }
  0xce   :  { %1590 = vmatmul.mubr.bf16.vlgmr.msra.gmra.mxu1 %v2335_v56 }
  0xcf   :  { %1947 = vmatprep.mubr.msk.bf16.mxu1 %vm368_vm0, %v2341_v57 }
  0xd3   :  { %1510 = vmatmul.mubr.bf16.gmra.mxu0 %v2340_v58 }
  0xd4   :  { %1517 = vmatprep.mubr.bf16.mxu0 %v2344_v59 }
  0xd6   :  { %1598 = vmatmul.mubr.bf16.gmra.mxu1 %v2343_v60 }
  0xd7   :  { %1948 = vmatprep.mubr.msk.bf16.mxu1 %vm368_vm0, %v2347_v61 }
  0xdb   :  { %1518 = vmatmul.mubr.bf16.gmra.mxu0 %v2346_v62 }
  0xdc   :  { %1525 = vmatprep.mubr.bf16.mxu0 %v2350_v63 }
  0xde   :  { %1606 = vmatmul.mubr.bf16.gmra.mxu1 %v2349_v23 }
  0xdf   :  { %1949 = vmatprep.mubr.msk.bf16.mxu1 %vm368_vm0, %v2353_v25 }
  0xe3   :  { %v1970_v31 = vpop.f32.mrf.mxu0  ;;  %1526 = vmatmul.mubr.bf16.gmra.mxu0 %v2352_v27 }
  0xe4   :  { %1533 = vmatprep.mubr.bf16.mxu0 %v2356_v29 }
  0xe5   :  { %v1971_v33 = vpop.f32.mrf.mxu0 }
  0xe6   :  { %v1972_v34 = vadd.f32 %v1971_v33, %v1970_v31  ;;  %v512_v35 = vpop.f32.mrf.mxu1  ;;  %1614 = vmatmul.mubr.bf16.gmra.mxu1 %v2355_v30 }
  0xe7   :  { %v1973_v36 = vpop.f32.mrf.mxu0  ;;  %1950 = vmatprep.mubr.msk.bf16.mxu1 %vm368_vm0, %v2359_v32 }
  0xe8   :  { %v2971_v38 = vadd.f32 %v1972_v34, %v512_v35  ;;  %v514_v39 = vpop.f32.mrf.mxu1 }
  0xe9   :  { %v1974_v41 = vpop.f32.mrf.mxu0 }
  0xea   :  { %v1975_v1 = vadd.f32 %v1974_v41, %v1973_v36  ;;  %v515_v42 = vpop.f32.mrf.mxu1 }
  0xeb   :  { %v1976_v44 = vpop.f32.mrf.mxu0  ;;  %1534 = vmatmul.mubr.bf16.gmra.mxu0 %v2358_v37 }
  0xec   :  { %v2982_v46 = vadd.f32 %v1975_v1, %v515_v42  ;;  %v517_v47 = vpop.f32.mrf.mxu1  ;;  %1541 = vmatprep.mubr.bf16.mxu0 %v2362_v40 }
  0xed   :  { %v1977_v48 = vpop.f32.mrf.mxu0 }
  0xee   :  { %v1978_v50 = vadd.f32 %v1977_v48, %v1976_v44  ;;  %v520_v51 = vpop.f32.mrf.mxu1  ;;  %1622 = vmatmul.mubr.bf16.gmra.mxu1 %v2361_v43 }
  0xef   :  { %v1979_v52 = vpop.f32.mrf.mxu0  ;;  %1951 = vmatprep.mubr.msk.bf16.mxu1 %vm368_vm0, %v2365_v45 }
  0xf0   :  { %v2991_v3 = vadd.f32 %v1978_v50, %v520_v51  ;;  %v522_v2 = vpop.f32.mrf.mxu1 }
  0xf1   :  { %v1980_v5 = vpop.f32.mrf.mxu0 }
  0xf2   :  { %v1981_v7 = vadd.f32 %v1980_v5, %v1979_v52  ;;  %v523_v8 = vpop.f32.mrf.mxu1 }
  0xf3   :  { %v1982_v10 = vpop.f32.mrf.mxu0  ;;  %1542 = vmatmul.mubr.bf16.gmra.mxu0 %v2364_v53 }
  0xf4   :  { %v2999_v12 = vadd.f32 %v1981_v7, %v523_v8  ;;  %v525_v13 = vpop.f32.mrf.mxu1  ;;  %1549 = vmatprep.mubr.bf16.mxu0 %v1943_v4 }
  0xf5   :  { %v1983_v14 = vpop.f32.mrf.mxu0 }
  0xf6   :  { %v1984_v15 = vadd.f32 %v1983_v14, %v1982_v10  ;;  %v528_v16 = vpop.f32.mrf.mxu1  ;;  %1630 = vmatmul.mubr.bf16.gmra.mxu1 %v2367_v9 }
  0xf7   :  { %v1985_v17 = vpop.f32.mrf.mxu0  ;;  %1952 = vmatprep.mubr.msk.bf16.mxu1 %vm368_vm0, %v1945_v11 }
  0xf8   :  { %v3002_v19 = vadd.f32 %v1984_v15, %v528_v16  ;;  %v530_v20 = vpop.f32.mrf.mxu1 }
  0xf9   :  { %v1986_v0 = vpop.f32.mrf.mxu0 }
  0xfa   :  { %v1987_v21 = vadd.f32 %v1986_v0, %v1985_v17  ;;  %v531_v22 = vpop.f32.mrf.mxu1 }
  0xfb   :  { %v1988_v26 = vpop.f32.mrf.mxu0  ;;  %1550 = vmatmul.mubr.bf16.gmra.mxu0 %v1942_v18 }
  0xfc   :  { %v3004_v28 = vadd.f32 %v1987_v21, %v531_v22  ;;  %v533_v54 = vpop.f32.mrf.mxu1 }
  0xfd   :  { %v1989_v55 = vpop.f32.mrf.mxu0 }
  0xfe   :  { %v1990_v56 = vadd.f32 %v1989_v55, %v1988_v26  ;;  %v536_v57 = vpop.f32.mrf.mxu1  ;;  %1638 = vmatmul.mubr.bf16.gmra.mxu1 %v1944_v24 }
  0xff   :  { %v1991_v58 = vpop.f32.mrf.mxu0 }
 0x100   :  { %v3006_v59 = vadd.f32 %v1990_v56, %v536_v57  ;;  %v538_v60 = vpop.f32.mrf.mxu1 }
 0x101   :  { %v1992_v61 = vpop.f32.mrf.mxu0 }
 0x102   :  { %v1993_v62 = vadd.f32 %v1992_v61, %v1991_v58  ;;  %v539_v63 = vpop.f32.mrf.mxu1 }
 0x103   :  { %v1994_v23 = vpop.f32.mrf.mxu0 }
 0x104   :  { %v3008_v25 = vadd.f32 %v1993_v62, %v539_v63  ;;  %v541_v27 = vpop.f32.mrf.mxu1 }
 0x105   :  { %v1995_v29 = vpop.f32.mrf.mxu0 }
 0x106   :  { %v1996_v30 = vadd.f32 %v1995_v29, %v1994_v23  ;;  %v544_v31 = vpop.f32.mrf.mxu1 }
 0x107   :  { %v1997_v32 = vpop.f32.mrf.mxu0 }
 0x108   :  { %v3010_v33 = vadd.f32 %v1996_v30, %v544_v31  ;;  %v546_v34 = vpop.f32.mrf.mxu1 }
 0x109   :  { %v1998_v35 = vpop.f32.mrf.mxu0 }
 0x10a   :  { %3287 = vst [vmem:[#allocation2_spill] sm:$0xff] %v3010_v33  ;;  %v1999_v36 = vadd.f32 %v1998_v35, %v1997_v32  ;;  %v547_v37 = vpop.f32.mrf.mxu1 }
 0x10b   :  { %v2000_v39 = vpop.f32.mrf.mxu0 }
 0x10c   :  { %v3012_v40 = vadd.f32 %v1999_v36, %v547_v37  ;;  %v549_v41 = vpop.f32.mrf.mxu1 }
 0x10d   :  { %v2001_v1 = vpop.f32.mrf.mxu0 }
 0x10e   :  { %3288 = vst [vmem:[#allocation3_spill] sm:$0xff] %v3012_v40  ;;  %v2002_v42 = vadd.f32 %v2001_v1, %v2000_v39  ;;  %v552_v43 = vpop.f32.mrf.mxu1 }
 0x10f   :  { %v2003_v44 = vpop.f32.mrf.mxu0 }
 0x110   :  { %v3014_v45 = vadd.f32 %v2002_v42, %v552_v43  ;;  %v554_v47 = vpop.f32.mrf.mxu1 }
 0x111   :  { %v2004_v48 = vpop.f32.mrf.mxu0 }
 0x112   :  { %3289 = vst [vmem:[#allocation4_spill] sm:$0xff] %v3014_v45  ;;  %v2005_v49 = vadd.f32 %v2004_v48, %v2003_v44  ;;  %v555_v50 = vpop.f32.mrf.mxu1 }
 0x113   :  { %v2006_v51 = vpop.f32.mrf.mxu0 }
 0x114   :  { %v3016_v52 = vadd.f32 %v2005_v49, %v555_v50  ;;  %v557_v53 = vpop.f32.mrf.mxu1 }
 0x115   :  { %v2007_v2 = vpop.f32.mrf.mxu0 }
 0x116   :  { %3290 = vst [vmem:[#allocation5_spill] sm:$0xff] %v3016_v52  ;;  %v2008_v4 = vadd.f32 %v2007_v2, %v2006_v51  ;;  %v560_v6 = vpop.f32.mrf.mxu1 }
 0x117   :  { %v2009_v5 = vpop.f32.mrf.mxu0 }
 0x118   :  { %v3018_v7 = vadd.f32 %v2008_v4, %v560_v6  ;;  %v562_v8 = vpop.f32.mrf.mxu1 }
 0x119   :  { %v2010_v9 = vpop.f32.mrf.mxu0 }
 0x11a   :  { %3291 = vst [vmem:[#allocation6_spill] sm:$0xff] %v3018_v7  ;;  %v563_v10 = vpop.f32.mrf.mxu1 }
 0x11b   :  { %v2028_v11 = vpop.f32.mrf.mxu0 }
 0x11c   :  { %v564_v13 = vpop.f32.mrf.mxu1 }
 0x11d   :  { %v2029_v14 = vpop.f32.mrf.mxu0 }
 0x11e   :  { %v2030_v15 = vadd.f32 %v2029_v14, %v2028_v11  ;;  %v863_v16 = vpop.f32.mrf.mxu1 }
 0x11f   :  { %v2031_v17 = vpop.f32.mrf.mxu0 }
 0x120   :  { %v3020_v18 = vadd.f32 %v2030_v15, %v863_v16  ;;  %v865_v20 = vpop.f32.mrf.mxu1 }
 0x121   :  { %v2032_v0 = vpop.f32.mrf.mxu0 }
 0x122   :  { %v2033_v22 = vadd.f32 %v2032_v0, %v2031_v17  ;;  %v866_v24 = vpop.f32.mrf.mxu1 }
 0x123   :  { %v2034_v26 = vpop.f32.mrf.mxu0 }
 0x124   :  { %v3024_v54 = vadd.f32 %v2033_v22, %v866_v24  ;;  %v868_v55 = vpop.f32.mrf.mxu1 }
 0x125   :  { %v2035_v56 = vpop.f32.mrf.mxu0 }
 0x126   :  { %v2036_v58 = vadd.f32 %v2035_v56, %v2034_v26  ;;  %v871_v60 = vpop.f32.mrf.mxu1 }
 0x127   :  { %v2037_v61 = vpop.f32.mrf.mxu0 }
 0x128   :  { %v3028_v62 = vadd.f32 %v2036_v58, %v871_v60  ;;  %v873_v63 = vpop.f32.mrf.mxu1 }
 0x129   :  { %v2038_v23 = vpop.f32.mrf.mxu0 }
 0x12a   :  { %v2039_v29 = vadd.f32 %v2038_v23, %v2037_v61  ;;  %v874_v30 = vpop.f32.mrf.mxu1 }
 0x12b   :  { %v2040_v31 = vpop.f32.mrf.mxu0 }
 0x12c   :  { %v3032_v32 = vadd.f32 %v2039_v29, %v874_v30  ;;  %v876_v34 = vpop.f32.mrf.mxu1 }
 0x12d   :  { %v2041_v35 = vpop.f32.mrf.mxu0 }
 0x12e   :  { %v2042_v37 = vadd.f32 %v2041_v35, %v2040_v31  ;;  %v879_v39 = vpop.f32.mrf.mxu1 }
 0x12f   :  { %v2043_v41 = vpop.f32.mrf.mxu0 }
 0x130   :  { %v3036_v1 = vadd.f32 %v2042_v37, %v879_v39  ;;  %v881_v42 = vpop.f32.mrf.mxu1 }
 0x131   :  { %v2044_v43 = vpop.f32.mrf.mxu0 }
 0x132   :  { %v2045_v47 = vadd.f32 %v2044_v43, %v2043_v41  ;;  %v882_v48 = vpop.f32.mrf.mxu1 }
 0x133   :  { %v2046_v49 = vpop.f32.mrf.mxu0 }
 0x134   :  { %v3040_v50 = vadd.f32 %v2045_v47, %v882_v48  ;;  %v884_v51 = vpop.f32.mrf.mxu1 }
 0x135   :  { %v2047_v53 = vpop.f32.mrf.mxu0 }
 0x136   :  { %v2048_v4 = vadd.f32 %v2047_v53, %v2046_v49  ;;  %v887_v6 = vpop.f32.mrf.mxu1 }
 0x137   :  { %v2049_v5 = vpop.f32.mrf.mxu0 }
 0x138   :  { %v3044_v8 = vadd.f32 %v2048_v4, %v887_v6  ;;  %v889_v9 = vpop.f32.mrf.mxu1 }
 0x139   :  { %v2050_v10 = vpop.f32.mrf.mxu0 }
 0x13a   :  { %v2051_v13 = vadd.f32 %v2050_v10, %v2049_v5  ;;  %v890_v14 = vpop.f32.mrf.mxu1 }
 0x13b   :  { %v2052_v15 = vpop.f32.mrf.mxu0 }
 0x13c   :  { %v3048_v16 = vadd.f32 %v2051_v13, %v890_v14  ;;  %v892_v17 = vpop.f32.mrf.mxu1 }
 0x13d   :  { %v2053_v20 = vpop.f32.mrf.mxu0 }
 0x13e   :  { %v2054_v22 = vadd.f32 %v2053_v20, %v2052_v15  ;;  %v895_v24 = vpop.f32.mrf.mxu1 }
 0x13f   :  { %v2055_v26 = vpop.f32.mrf.mxu0 }
 0x140   :  { %v3052_v55 = vadd.f32 %v2054_v22, %v895_v24  ;;  %v897_v56 = vpop.f32.mrf.mxu1 }
 0x141   :  { %v2056_v58 = vpop.f32.mrf.mxu0 }
 0x142   :  { %3292 = vst [vmem:[#allocation7_spill] sm:$0xff] %v3052_v55  ;;  %v2057_v61 = vadd.f32 %v2056_v58, %v2055_v26  ;;  %v898_v63 = vpop.f32.mrf.mxu1 }
 0x143   :  { %v2058_v23 = vpop.f32.mrf.mxu0 }
 0x144   :  { %v3056_v29 = vadd.f32 %v2057_v61, %v898_v63  ;;  %v900_v30 = vpop.f32.mrf.mxu1 }
 0x145   :  { %v2059_v31 = vpop.f32.mrf.mxu0 }
 0x146   :  { %3293 = vst [vmem:[#allocation8_spill] sm:$0xff] %v3056_v29  ;;  %v2060_v35 = vadd.f32 %v2059_v31, %v2058_v23  ;;  %v903_v37 = vpop.f32.mrf.mxu1 }
 0x147   :  { %v2061_v39 = vpop.f32.mrf.mxu0 }
 0x148   :  { %v3060_v41 = vadd.f32 %v2060_v35, %v903_v37  ;;  %v905_v42 = vpop.f32.mrf.mxu1 }
 0x149   :  { %v2062_v43 = vpop.f32.mrf.mxu0 }
 0x14a   :  { %3294 = vst [vmem:[#allocation9_spill] sm:$0xff] %v3060_v41  ;;  %v2063_v48 = vadd.f32 %v2062_v43, %v2061_v39  ;;  %v906_v49 = vpop.f32.mrf.mxu1 }
 0x14b   :  { %v2064_v51 = vpop.f32.mrf.mxu0 }
 0x14c   :  { %v3064_v53 = vadd.f32 %v2063_v48, %v906_v49  ;;  %v908_v4 = vpop.f32.mrf.mxu1 }
 0x14d   :  { %v2065_v6 = vpop.f32.mrf.mxu0 }
 0x14e   :  { %3295 = vst [vmem:[#allocation10_spill] sm:$0xff] %v3064_v53  ;;  %v2066_v9 = vadd.f32 %v2065_v6, %v2064_v51  ;;  %v911_v10 = vpop.f32.mrf.mxu1 }
 0x14f   :  { %v2067_v13 = vpop.f32.mrf.mxu0 }
 0x150   :  { %v3068_v14 = vadd.f32 %v2066_v9, %v911_v10  ;;  %v913_v15 = vpop.f32.mrf.mxu1 }
 0x151   :  { %v2068_v17 = vpop.f32.mrf.mxu0 }
 0x152   :  { %3296 = vst [vmem:[#allocation11_spill] sm:$0xff] %v3068_v14  ;;  %v914_v22 = vpop.f32.mrf.mxu1 }
 0x153   :  { %v2086_v24 = vpop.f32.mrf.mxu0 }
 0x154   :  { %v915_v26 = vpop.f32.mrf.mxu1 }
 0x155   :  { %v2087_v56 = vpop.f32.mrf.mxu0 }
 0x156   :  { %v1227_v58 = vpop.f32.mrf.mxu1 }
 0x157   :  { %v2089_v61 = vpop.f32.mrf.mxu0 }
 0x158   :  { %v1229_v63 = vpop.f32.mrf.mxu1 }
 0x159   :  { %v2090_v23 = vpop.f32.mrf.mxu0 }
 0x15a   :  { %v1230_v30 = vpop.f32.mrf.mxu1 }
 0x15b   :  { %v2092_v31 = vpop.f32.mrf.mxu0 }
 0x15c   :  { %v1232_v35 = vpop.f32.mrf.mxu1 }
 0x15d   :  { %v2093_v37 = vpop.f32.mrf.mxu0 }
 0x15e   :  { %v3072_v39 = vpop.f32.mrf.mxu1 }
 0x15f   :  { %v3074_v42 = vpop.f32.mrf.mxu0 }
 0x160   :  { %v1237_v43 = vpop.f32.mrf.mxu1 }
 0x161   :  { %v3076_v48 = vpop.f32.mrf.mxu0 }
 0x162   :  { %v3078_v49 = vpop.f32.mrf.mxu1 }
 0x163   :  { %v3080_v51 = vpop.f32.mrf.mxu0 }
 0x164   :  { %v1240_v4 = vpop.f32.mrf.mxu1 }
 0x165   :  { %v3082_v6 = vpop.f32.mrf.mxu0 }
 0x166   :  { %v3084_v9 = vpop.f32.mrf.mxu1 }
 0x167   :  { %v3086_v10 = vpop.f32.mrf.mxu0 }
 0x168   :  { %v1245_v13 = vpop.f32.mrf.mxu1 }
 0x169   :  { %v3088_v15 = vpop.f32.mrf.mxu0 }
 0x16a   :  { %v3090_v17 = vpop.f32.mrf.mxu1 }
 0x16b   :  { %v3092_v22 = vpop.f32.mrf.mxu0 }
 0x16c   :  { %v1248_v26 = vpop.f32.mrf.mxu1 }
 0x16d   :  { %v3094_v63 = vpop.f32.mrf.mxu0 }
 0x16e   :  { %v3096_v35 = vpop.f32.mrf.mxu1 }
 0x16f   :  { %v3098_v43 = vpop.f32.mrf.mxu0 }
 0x170   :  { %v1253_v4 = vpop.f32.mrf.mxu1 }
 0x171   :  { %v3100_v20 = vpop.f32.mrf.mxu0 }
 0x172   :  { %v3102_v5 = vpop.f32.mrf.mxu1 }
 0x173   :  { %v3104_v47 = vpop.f32.mrf.mxu0 }
 0x174   :  { %v1256_v13 = vpop.f32.mrf.mxu1 }
 0x175   :  { %v3106_v34 = vpop.f32.mrf.mxu0 }
 0x176   :  { %v3108_v60 = vpop.f32.mrf.mxu1 }
 0x177   :  { %v3110_v0 = vpop.f32.mrf.mxu0 }
 0x178   :  { %v1261_v26 = vpop.f32.mrf.mxu1 }
 0x179   :  { %v3112_v11 = vpop.f32.mrf.mxu0 }
 0x17a   :  { %v3114_v2 = vpop.f32.mrf.mxu1 }
 0x17b   :  { %3297 = vst [vmem:[#allocation12_spill] sm:$0xff] %v3114_v2  ;;  %v3116_v44 = vpop.f32.mrf.mxu0 }
 0x17c   :  { %v1264_v4 = vpop.f32.mrf.mxu1 }
 0x17d   :  { %v3118_v36 = vpop.f32.mrf.mxu0  ;;  %v2088_v4 = vadd.f32 %v2087_v56, %v2086_v24 }
 0x17e   :  { %3298 = vst [vmem:[#allocation13_spill] sm:$0xff] %v3118_v36  ;;  %v3120_v27 = vpop.f32.mrf.mxu1 }
 0x17f   :  { %3299 = vst [vmem:[#allocation14_spill] sm:$0xff] %v3120_v27  ;;  %v3122_v57 = vpop.f32.mrf.mxu0  ;;  %v2091_v27 = vadd.f32 %v2090_v23, %v2089_v61 }
 0x180   :  { %3300 = vst [vmem:[#allocation15_spill] sm:$0xff] %v3122_v57  ;;  %v1269_v13 = vpop.f32.mrf.mxu1  ;;  %v1228_v57 = vadd.f32 %v2088_v4, %v1227_v58 }
 0x181   :  { %v3124_v21 = vpop.f32.mrf.mxu0 }
 0x182   :  { %3301 = vst [vmem:[#allocation16_spill] sm:$0xff] %v3124_v21  ;;  %v3126_v14 = vpop.f32.mrf.mxu1 }
 0x183   :  { %3302 = vst [vmem:[#allocation17_spill] sm:$0xff] %v3126_v14  ;;  %v3128_v7 = vpop.f32.mrf.mxu0  ;;  %v1231_v14 = vadd.f32 %v2091_v27, %v1230_v30  ;;  %v3307_v27 = vmax.f32 %v2982_v46, %v3024_v54  ;;  %v2100_v46 = vadd.f32 %v3082_v6, %v3080_v51 }
 0x184   :  { %3303 = vst [vmem:[#allocation18_spill] sm:$0xff] %v3128_v7  ;;  %v1272_v26 = vpop.f32.mrf.mxu1  ;;  %v2094_v7 = vadd.f32 %v2093_v37, %v2092_v31 }
 0x185   :  { %v3130_v53 = vpop.f32.mrf.mxu0  ;;  %v3306_v26 = vmax.f32 %v2971_v38, %v3020_v18  ;;  %v1244_v4 = vadd.f32 %v2100_v46, %v3084_v9 }
 0x186   :  { %3304 = vst [vmem:[#allocation19_spill] sm:$0xff] %v3130_v53  ;;  %v3132_v52 = vpop.f32.mrf.mxu1  ;;  %v1236_v38 = vadd.f32 %v2094_v7, %v3072_v39  ;;  %v3308_v7 = vmax.f32 %v2991_v3, %v3028_v62  ;;  %v3309_v62 = vmax.f32 %v2999_v12, %v3032_v32  ;;  %v3310_v12 = vmax.f32 %v3002_v19, %v3036_v1 }
 0x187   :  { %3305 = vst [vmem:[#allocation20_spill] sm:$0xff] %v3132_v52  ;;  %v2125_v41 = vpop.f32.mrf.mxu0  ;;  %v1281_v53 = vmax.f32 %v3306_v26, %v1228_v57 }
 0x188   :  { %v1277_v45 = vpop.f32.mrf.mxu1  ;;  %v1285_v32 = vmax.f32 %v3310_v12, %v1244_v4 }
 0x189   :  { %v2126_v29 = vpop.f32.mrf.mxu0 }
 0x18a   :  { %v1278_v40 = vpop.f32.mrf.mxu1 }
 0x18b   :  { %v2144_v2 = vpop.f32.mrf.mxu0  ;;  %v3140_v40 = vld [vmem:[%s3275_s2] ss:$0 sm:$0xff] }
 0x18c   :  { %v1279_v13 = vpop.f32.mrf.mxu1 }
 0x18d   :  { %v2145_v55 = vpop.f32.mrf.mxu0  ;;  %v2103_v13 = vadd.f32 %v3088_v15, %v3086_v10  ;;  %v2106_v15 = vadd.f32 %v3094_v63, %v3092_v22  ;;  %v3311_v22 = vmax.f32 %v3004_v28, %v3040_v50  ;;  %v3312_v50 = vmax.f32 %v3006_v59, %v3044_v8 }
 0x18e   :  { %v2146_v21 = vadd.f32 %v2145_v55, %v2144_v2  ;;  %v1591_v33 = vpop.f32.mrf.mxu1  ;;  %v1282_v2 = vmax.f32 %v3307_v27, %v1231_v14  ;;  %v1283_v14 = vmax.f32 %v3308_v7, %v1236_v38  ;;  %v3313_v59 = vmax.f32 %v3008_v25, %v3048_v16 }
 0x18f   :  { %v2147_v36 = vpop.f32.mrf.mxu0  ;;  %v1247_v10 = vadd.f32 %v2103_v13, %v3090_v17  ;;  %v2109_v17 = vadd.f32 %v3100_v20, %v3098_v43 }
 0x190   :  { %v1592_v52 = vadd.f32 %v2146_v21, %v1591_v33  ;;  %v1593_v41 = vpop.f32.mrf.mxu1  ;;  %v2097_v33 = vadd.f32 %v3076_v48, %v3074_v42 }
 0x191   :  { %v2148_v45 = vpop.f32.mrf.mxu0  ;;  %v1286_v63 = vmax.f32 %v3311_v22, %v1247_v10 }
 0x192   :  { %v1645_v29 = vmax.f32 %v1281_v53, %v1592_v52  ;;  %v2149_v24 = vadd.f32 %v2148_v45, %v2147_v36  ;;  %v1594_v56 = vpop.f32.mrf.mxu1  ;;  %v1239_v23 = vadd.f32 %v2097_v33, %v3078_v49 }
 0x193   :  { %v2150_v55 = vpop.f32.mrf.mxu0 }
 0x194   :  { %v1665_v18 = vadd.f32 %v3140_v40, %v1645_v29  ;;  %v1595_v21 = vadd.f32 %v2149_v24, %v1594_v56  ;;  %v1596_v57 = vpop.f32.mrf.mxu1  ;;  %v1284_v49 = vmax.f32 %v3309_v62, %v1239_v23  ;;  %v2112_v23 = vadd.f32 %v3106_v34, %v3104_v47 }
 0x195   :  { %v2151_v58 = vpop.f32.mrf.mxu0  ;;  %v2115_v47 = vadd.f32 %v3112_v11, %v3110_v0  ;;  %v3316_v11 = vld [vmem:[#allocation7_spill] sm:$0xff] }
 0x196   :  { %v1678_v61 = vmax.f32 %v1665_v18, 0.0  ;;  %v1646_v52 = vmax.f32 %v1282_v2, %v1595_v21  ;;  %v2152_v36 = vadd.f32 %v2151_v58, %v2150_v55  ;;  %v1599_v53 = vpop.f32.mrf.mxu1  ;;  %v1260_v34 = vadd.f32 %v2112_v23, %v3108_v60 }
 0x197   :  { %v2153_v54 = vpop.f32.mrf.mxu0 }
 0x198   :  { %1692 = vst.msk [vmem:[%s3276_s3] sm:$0xff] %vm1691_vm1, %v1678_v61  ;;  %v1666_v30 = vadd.f32 %v3140_v40, %v1646_v52  ;;  %v1600_v31 = vadd.f32 %v2152_v36, %v1599_v53  ;;  %v1601_v37 = vpop.f32.mrf.mxu1  ;;  %v1252_v61 = vadd.f32 %v2106_v15, %v3096_v35 }
 0x199   :  { %v2154_v39 = vpop.f32.mrf.mxu0 }
 0x19a   :  { %v1679_v42 = vmax.f32 %v1666_v30, 0.0  ;;  %v1647_v48 = vmax.f32 %v1283_v14, %v1600_v31  ;;  %v2155_v51 = vadd.f32 %v2154_v39, %v2153_v54  ;;  %v1602_v6 = vpop.f32.mrf.mxu1  ;;  %v1255_v14 = vadd.f32 %v2109_v17, %v3102_v5  ;;  %v3323_v17 = vld [vmem:[#allocation15_spill] sm:$0xff] }
 0x19b   :  { %v2156_v3 = vpop.f32.mrf.mxu0  ;;  %v1287_v35 = vmax.f32 %v3312_v50, %v1252_v61 }
 0x19c   :  { %1693 = vst.msk [vmem:[%s3276_s3 + $0x8] sm:$0xff] %vm1691_vm1, %v1679_v42  ;;  %v1667_v26 = vadd.f32 %v3140_v40, %v1647_v48  ;;  %v1603_v41 = vadd.f32 %v2155_v51, %v1602_v6  ;;  %v1604_v45 = vpop.f32.mrf.mxu1  ;;  %v1288_v8 = vmax.f32 %v3313_v59, %v1255_v14 }
 0x19d   :  { %v2157_v29 = vpop.f32.mrf.mxu0 }
 0x19e   :  { %v1680_v24 = vmax.f32 %v1667_v26, 0.0  ;;  %v1648_v9 = vmax.f32 %v1284_v49, %v1603_v41  ;;  %v2158_v56 = vadd.f32 %v2157_v29, %v2156_v3  ;;  %v1607_v27 = vpop.f32.mrf.mxu1  ;;  %v3314_v41 = vld [vmem:[#allocation13_spill] sm:$0xff]  ;;  %v3315_v29 = vld [vmem:[#allocation2_spill] sm:$0xff] }
 0x19f   :  { %v2159_v2 = vpop.f32.mrf.mxu0  ;;  %v2118_v60 = vadd.f32 %v3314_v41, %v3116_v44  ;;  %v3317_v0 = vmax.f32 %v3315_v29, %v3316_v11 }
 0x1a0   :  { %1694 = vst.msk [vmem:[%s3276_s3 + $0x10] sm:$0xff] %vm1691_vm1, %v1680_v24  ;;  %v1668_v55 = vadd.f32 %v3140_v40, %v1648_v9  ;;  %v1608_v38 = vadd.f32 %v2158_v56, %v1607_v27  ;;  %v1609_v33 = vpop.f32.mrf.mxu1  ;;  %v3318_v9 = vld [vmem:[#allocation12_spill] sm:$0xff] }
 0x1a1   :  { %v2160_v18 = vpop.f32.mrf.mxu0  ;;  %v1289_v24 = vmax.f32 %v3317_v0, %v1260_v34  ;;  %v1263_v56 = vadd.f32 %v2115_v47, %v3318_v9  ;;  %v3331_v47 = vld [vmem:[#allocation5_spill] sm:$0xff]  ;;  %v3336_v9 = vld [vmem:[#allocation11_spill] sm:$0xff] }
 0x1a2   :  { %v1681_v21 = vmax.f32 %v1668_v55, 0.0  ;;  %v1649_v57 = vmax.f32 %v1285_v32, %v1608_v38  ;;  %v2161_v19 = vadd.f32 %v2160_v18, %v2159_v2  ;;  %v1610_v1 = vpop.f32.mrf.mxu1  ;;  %v3319_v38 = vld [vmem:[#allocation14_spill] sm:$0xff] }
 0x1a3   :  { %v2162_v58 = vpop.f32.mrf.mxu0  ;;  %v1268_v33 = vadd.f32 %v2118_v60, %v3319_v38 }
 0x1a4   :  { %1695 = vst.msk [vmem:[%s3276_s3 + $0x18] sm:$0xff] %vm1691_vm1, %v1681_v21  ;;  %v1669_v52 = vadd.f32 %v3140_v40, %v1649_v57  ;;  %v1611_v36 = vadd.f32 %v2161_v19, %v1610_v1  ;;  %v1612_v53 = vpop.f32.mrf.mxu1  ;;  %v3320_v21 = vld [vmem:[#allocation3_spill] sm:$0xff]  ;;  %v3321_v57 = vld [vmem:[#allocation8_spill] sm:$0xff] }
 0x1a5   :  { %v2163_v46 = vpop.f32.mrf.mxu0  ;;  %v3322_v19 = vmax.f32 %v3320_v21, %v3321_v57 }
 0x1a6   :  { %v1682_v54 = vmax.f32 %v1669_v52, 0.0  ;;  %v1650_v7 = vmax.f32 %v1286_v63, %v1611_v36  ;;  %v2164_v20 = vadd.f32 %v2163_v46, %v2162_v58  ;;  %v1615_v43 = vpop.f32.mrf.mxu1  ;;  %v3324_v58 = vld [vmem:[#allocation16_spill] sm:$0xff] }
 0x1a7   :  { %v2165_v28 = vpop.f32.mrf.mxu0  ;;  %v1290_v1 = vmax.f32 %v3322_v19, %v1263_v56  ;;  %v2121_v22 = vadd.f32 %v3324_v58, %v3323_v17 }
 0x1a8   :  { %1696 = vst.msk [vmem:[%s3276_s3 + $0x20] sm:$0xff] %vm1691_vm1, %v1682_v54  ;;  %v1670_v30 = vadd.f32 %v3140_v40, %v1650_v7  ;;  %v1616_v31 = vadd.f32 %v2164_v20, %v1615_v43  ;;  %v1617_v37 = vpop.f32.mrf.mxu1  ;;  %v3325_v20 = vld [vmem:[#allocation4_spill] sm:$0xff]  ;;  %v3326_v43 = vld [vmem:[#allocation9_spill] sm:$0xff] }
 0x1a9   :  { %v2166_v39 = vpop.f32.mrf.mxu0  ;;  %v3327_v14 = vmax.f32 %v3325_v20, %v3326_v43 }
 0x1aa   :  { %v1683_v42 = vmax.f32 %v1670_v30, 0.0  ;;  %v1651_v5 = vmax.f32 %v1287_v35, %v1616_v31  ;;  %v2167_v48 = vadd.f32 %v2166_v39, %v2165_v28  ;;  %v1618_v51 = vpop.f32.mrf.mxu1  ;;  %v3328_v35 = vld [vmem:[#allocation17_spill] sm:$0xff]  ;;  %v3329_v30 = vld [vmem:[#allocation18_spill] sm:$0xff]  ;;  %v3330_v31 = vld [vmem:[#allocation19_spill] sm:$0xff] }
 0x1ab   :  { %v2168_v6 = vpop.f32.mrf.mxu0  ;;  %v1291_v28 = vmax.f32 %v3327_v14, %v1268_v33  ;;  %v1271_v23 = vadd.f32 %v2121_v22, %v3328_v35  ;;  %v2124_v37 = vadd.f32 %v3330_v31, %v3329_v30 }
 0x1ac   :  { %1697 = vst.msk [vmem:[%s3276_s3 + $0x28] sm:$0xff] %vm1691_vm1, %v1683_v42  ;;  %v1671_v4 = vadd.f32 %v3140_v40, %v1651_v5  ;;  %v1619_v3 = vadd.f32 %v2167_v48, %v1618_v51  ;;  %v1620_v62 = vpop.f32.mrf.mxu1 }
 0x1ad   :  { %v2169_v49 = vpop.f32.mrf.mxu0 }
 0x1ae   :  { %v1684_v13 = vmax.f32 %v1671_v4, 0.0  ;;  %v1652_v26 = vmax.f32 %v1288_v8, %v1619_v3  ;;  %v2170_v25 = vadd.f32 %v2169_v49, %v2168_v6  ;;  %v1623_v16 = vpop.f32.mrf.mxu1  ;;  %v3332_v4 = vld [vmem:[#allocation10_spill] sm:$0xff]  ;;  %v3334_v49 = vld [vmem:[#allocation20_spill] sm:$0xff] }
 0x1af   :  { %v2171_v45 = vpop.f32.mrf.mxu0  ;;  %v3333_v3 = vmax.f32 %v3331_v47, %v3332_v4 }
 0x1b0   :  { %1698 = vst.msk [vmem:[%s3276_s3 + $0x30] sm:$0xff] %vm1691_vm1, %v1684_v13  ;;  %v1672_v27 = vadd.f32 %v3140_v40, %v1652_v26  ;;  %v1624_v12 = vadd.f32 %v2170_v25, %v1623_v16  ;;  %v1625_v32 = vpop.f32.mrf.mxu1  ;;  %v1276_v13 = vadd.f32 %v2124_v37, %v3334_v49 }
 0x1b1   :  { %v2172_v2 = vpop.f32.mrf.mxu0  ;;  %v1292_v62 = vmax.f32 %v3333_v3, %v1271_v23 }
 0x1b2   :  { %v1685_v10 = vmax.f32 %v1672_v27, 0.0  ;;  %v1653_v15 = vmax.f32 %v1289_v24, %v1624_v12  ;;  %v2173_v44 = vadd.f32 %v2172_v2, %v2171_v45  ;;  %v1626_v55 = vpop.f32.mrf.mxu1  ;;  %v3335_v24 = vld [vmem:[#allocation6_spill] sm:$0xff] }
 0x1b3   :  { %v2174_v18 = vpop.f32.mrf.mxu0  ;;  %v3337_v56 = vmax.f32 %v3335_v24, %v3336_v9 }
 0x1b4   :  { %1699 = vst.msk [vmem:[%s3276_s3 + $0x38] sm:$0xff] %vm1691_vm1, %v1685_v10  ;;  %v1673_v63 = vadd.f32 %v3140_v40, %v1653_v15  ;;  %v1627_v61 = vadd.f32 %v2173_v44, %v1626_v55  ;;  %v1628_v52 = vpop.f32.mrf.mxu1 }
 0x1b5   :  { %v2175_v36 = vpop.f32.mrf.mxu0  ;;  %v1293_v27 = vmax.f32 %v3337_v56, %v1276_v13 }
 0x1b6   :  { %v1686_v53 = vmax.f32 %v1673_v63, 0.0  ;;  %v1654_v46 = vmax.f32 %v1290_v1, %v1627_v61  ;;  %v2176_v54 = vadd.f32 %v2175_v36, %v2174_v18  ;;  %v1631_v7 = vpop.f32.mrf.mxu1 }
 0x1b7   :  { %v2177_v50 = vpop.f32.mrf.mxu0 }
 0x1b8   :  { %1700 = vst.msk [vmem:[%s3276_s3 + $0x40] sm:$0xff] %vm1691_vm1, %v1686_v53  ;;  %v1674_v39 = vadd.f32 %v3140_v40, %v1654_v46  ;;  %v1632_v42 = vadd.f32 %v2176_v54, %v1631_v7  ;;  %v1633_v5 = vpop.f32.mrf.mxu1 }
 0x1b9   :  { %v2178_v48 = vpop.f32.mrf.mxu0 }
 0x1ba   :  { %v1687_v51 = vmax.f32 %v1674_v39, 0.0  ;;  %v1655_v59 = vmax.f32 %v1291_v28, %v1632_v42  ;;  %v2179_v8 = vadd.f32 %v2178_v48, %v2177_v50  ;;  %v1634_v6 = vpop.f32.mrf.mxu1 }
 0x1bb   :  { %v2180_v34 = vpop.f32.mrf.mxu0 }
 0x1bc   :  { %1701 = vst.msk [vmem:[%s3276_s3 + $0x48] sm:$0xff] %vm1691_vm1, %v1687_v51  ;;  %v1675_v26 = vadd.f32 %v3140_v40, %v1655_v59  ;;  %v1635_v25 = vadd.f32 %v2179_v8, %v1634_v6  ;;  %v1636_v16 = vpop.f32.mrf.mxu1 }
 0x1bd   :  { %v2181_v41 = vpop.f32.mrf.mxu0 }
 0x1be   :  { %v1688_v60 = vmax.f32 %v1675_v26, 0.0  ;;  %v1656_v45 = vmax.f32 %v1292_v62, %v1635_v25  ;;  %v2182_v29 = vadd.f32 %v2181_v41, %v2180_v34  ;;  %v1639_v11 = vpop.f32.mrf.mxu1 }
 0x1bf   :  { %v2183_v0 = vpop.f32.mrf.mxu0 }
 0x1c0   :  { %1702 = vst.msk [vmem:[%s3276_s3 + $0x50] sm:$0xff] %vm1691_vm1, %v1688_v60  ;;  %v1676_v12 = vadd.f32 %v3140_v40, %v1656_v45  ;;  %v1640_v32 = vadd.f32 %v2182_v29, %v1639_v11  ;;  %v1641_v2 = vpop.f32.mrf.mxu1 }
 0x1c1   :  { %v2184_v10 = vpop.f32.mrf.mxu0 }
 0x1c2   :  { %v1689_v15 = vmax.f32 %v1676_v12, 0.0  ;;  %v1657_v44 = vmax.f32 %v1293_v27, %v1640_v32  ;;  %v1642_v55 = vpop.f32.mrf.mxu1 }
 0x1c4   :  { %1703 = vst.msk [vmem:[%s3276_s3 + $0x58] sm:$0xff] %vm1691_vm1, %v1689_v15  ;;  %v1677_v38 = vadd.f32 %v3140_v40, %v1657_v44  ;;  %v1643_v33 = vpop.f32.mrf.mxu1 }
 0x1c6   :  { %v1690_v18 = vmax.f32 %v1677_v38, 0.0 }
 0x1c8   :  { %1705 = vst.msk [vmem:[%s3276_s3 + $0x60] sm:$0x3] %vm1704_vm2, %v1690_v18 }

// kernel: convnet_forward.5
= control target key start
LH: loop header
LB: loop body
LE: loop exit
PB: predicated region body
PF: predicated region fallthrough
CT: control target
= control target key end

     0   :  { %v227_v28 = vlaneseq  ;;  %v1580_v36 = vmov 1966171168   ;;  %s1928_s0 = inlined_call_operand.vmem [shape: bf16[2,1568], index: 0, kind: input, shape index: {}]   ;;  %s1929_s1 = inlined_call_operand.vmem [shape: bf16[1568,10], index: 1, kind: input, shape index: {}]   ;;  %s1930_s2 = inlined_call_operand.vmem [shape: f32[1,10], index: 2, kind: input, shape index: {}]   ;;  %s1931_s3 = inlined_call_operand.hbm [shape: f32[2,10], index: 3, kind: output, shape index: {}]  }
   0x1   :  { %v1458_v0 = vld [vmem:[%s1929_s1 + $0x78] sm:$0xff]   ;;  %v1462_v4 = vld [vmem:[%s1929_s1 + $0x70] sm:$0xff]   ;;  %v1466_v8 = vld [vmem:[%s1929_s1 + $0x68] sm:$0xff]   ;;  %v225_v37 = vunpack.c.l.s4 %v1580_v36 }
   0x2   :  { %v1459_v1 = vld [vmem:[%s1929_s1 + $0xf8] sm:$0xff]   ;;  %1311 = vmatprep.subr.bf16.mxu0 %v1458_v0  ;;  %v1463_v5 = vld [vmem:[%s1929_s1 + $0xf0] sm:$0xff]   ;;  %v1467_v9 = vld [vmem:[%s1929_s1 + $0xe8] sm:$0xff]   ;;  %v228_v33 = vshrl.u32 %v227_v28, 7 }
   0x3   :  { %v1460_v2 = vld [vmem:[%s1929_s1 + $0x38] sm:$0xff]   ;;  %1333 = vmatprep.subr.bf16.mxu1 %v1459_v1  ;;  %v1464_v6 = vld [vmem:[%s1929_s1 + $0x30] sm:$0xff]   ;;  %v1468_v10 = vld [vmem:[%s1929_s1 + $0x28] sm:$0xff]   ;;  %v226_v40 = vunpack.c.0.s8 %v225_v37 }
   0x4   :  { %v1461_v3 = vld [vmem:[%s1929_s1 + $0xb8] sm:$0xff]   ;;  %1312 = vmatpush3.bf16.msra.mxu0 %v1460_v2  ;;  %v1465_v7 = vld [vmem:[%s1929_s1 + $0xb0] sm:$0xff]   ;;  %v1469_v11 = vld [vmem:[%s1929_s1 + $0xa8] sm:$0xff]  }
   0x5   :  { %1334 = vmatpush3.bf16.msra.mxu1 %v1461_v3  ;;  %1313 = vmatprep.subr.bf16.mxu0 %v1462_v4  ;;  %v1470_v12 = vld [vmem:[%s1929_s1 + $0x60] sm:$0xff]   ;;  %v1474_v16 = vld [vmem:[%s1929_s1 + $0x58] sm:$0xff]   ;;  %v1478_v20 = vld [vmem:[%s1929_s1 + $0x50] sm:$0xff]   ;;  %v1709_v41 = vsub.s32 %v226_v40, %v228_v33 }
   0x6   :  { %1335 = vmatprep.subr.bf16.mxu1 %v1463_v5  ;;  %v1471_v13 = vld [vmem:[%s1929_s1 + $0xe0] sm:$0xff]   ;;  %v1475_v17 = vld [vmem:[%s1929_s1 + $0xd8] sm:$0xff]   ;;  %v1479_v21 = vld [vmem:[%s1929_s1 + $0xd0] sm:$0xff]  }
   0x7   :  { %v1472_v14 = vld [vmem:[%s1929_s1 + $0x20] sm:$0xff]   ;;  %v1476_v18 = vld [vmem:[%s1929_s1 + $0x18] sm:$0xff]   ;;  %v1480_v22 = vld [vmem:[%s1929_s1 + $0x10] sm:$0xff]  }
   0x8   :  { %1314 = vmatpush3.bf16.msra.mxu0 %v1464_v6  ;;  %v1473_v15 = vld [vmem:[%s1929_s1 + $0xa0] sm:$0xff]   ;;  %v1477_v19 = vld [vmem:[%s1929_s1 + $0x98] sm:$0xff]   ;;  %v1481_v23 = vld [vmem:[%s1929_s1 + $0x90] sm:$0xff]  }
   0x9   :  { %1336 = vmatpush3.bf16.msra.mxu1 %v1465_v7  ;;  %1315 = vmatprep.subr.bf16.mxu0 %v1466_v8  ;;  %v1482_v24 = vld [vmem:[%s1929_s1 + $0x48] sm:$0xff]   ;;  %v1486_v29 = vld [vmem:[%s1929_s1 + $0x40] sm:$0xff]   ;;  %v1491_v35 = vld [vmem:[%s1929_s1 + $0x178] sm:$0xff]  }
   0xa   :  { %1337 = vmatprep.subr.bf16.mxu1 %v1467_v9  ;;  %v1483_v25 = vld [vmem:[%s1929_s1 + $0xc8] sm:$0xff]   ;;  %v1487_v30 = vld [vmem:[%s1929_s1 + $0xc0] sm:$0xff]   ;;  %v1492_v38 = vld [vmem:[%s1929_s1 + $0x1f8] sm:$0xff]  }
   0xb   :  { %v1484_v26 = vld [vmem:[%s1929_s1 + $0x8] sm:$0xff]   ;;  %v1488_v31 = vld [vmem:[%s1929_s1] sm:$0xff]   ;;  %v1493_v48 = vld [vmem:[%s1929_s1 + $0x138] sm:$0xff]  }
   0xc   :  { %1316 = vmatpush3.bf16.msra.mxu0 %v1468_v10  ;;  %v1485_v27 = vld [vmem:[%s1929_s1 + $0x88] sm:$0xff]   ;;  %v1489_v32 = vld [vmem:[%s1929_s1 + $0x80] sm:$0xff]   ;;  %v1495_v51 = vld [vmem:[%s1929_s1 + $0x170] sm:$0xff]  }
   0xd   :  { %1338 = vmatpush3.bf16.msra.mxu1 %v1469_v11  ;;  %1317 = vmatprep.subr.bf16.mxu0 %v1470_v12  ;;  %v16_v34 = vld [vmem:[%s1928_s0] sm:$0xff]  ;;  %v1494_v53 = vld [vmem:[%s1929_s1 + $0x1b8] sm:$0xff]   ;;  %v1496_v54 = vld [vmem:[%s1929_s1 + $0x1f0] sm:$0xff]  }
   0xe   :  { %1339 = vmatprep.subr.bf16.mxu1 %v1471_v13  ;;  %v223_v39 = vcombine.high %v16_v34, %v16_v34  ;;  %v230_v42 = vrot.slane %v16_v34, %v1709_v41  ;;  %v1497_v56 = vld [vmem:[%s1929_s1 + $0x130] sm:$0xff]   ;;  %v1499_v57 = vld [vmem:[%s1929_s1 + $0x168] sm:$0xff]   ;;  %v1503_v61 = vld [vmem:[%s1929_s1 + $0x160] sm:$0xff]  }
   0xf   :  { %v1498_v58 = vld [vmem:[%s1929_s1 + $0x1b0] sm:$0xff]   ;;  %v1500_v59 = vld [vmem:[%s1929_s1 + $0x1e8] sm:$0xff]   ;;  %v1504_v63 = vld [vmem:[%s1929_s1 + $0x1e0] sm:$0xff]  }
  0x10   :  { %1318 = vmatpush3.bf16.msra.mxu0 %v1472_v14  ;;  %v1713_v43 = vrot.slane %v223_v39, %v1709_v41  ;;  %v238_v44 = vcombine.high %v230_v42, %v230_v42  ;;  %v246_v45 = vrot.slane %v230_v42, %v1709_v41  ;;  %v1501_v60 = vld [vmem:[%s1929_s1 + $0x128] sm:$0xff]   ;;  %v1505_v0 = vld [vmem:[%s1929_s1 + $0x120] sm:$0xff]   ;;  %v1507_v1 = vld [vmem:[%s1929_s1 + $0x158] sm:$0xff]  }
  0x11   :  { %1340 = vmatpush3.bf16.msra.mxu1 %v1473_v15  ;;  %1319 = vmatprep.subr.bf16.mxu0 %v1474_v16  ;;  %v1502_v62 = vld [vmem:[%s1929_s1 + $0x1a8] sm:$0xff]   ;;  %v1506_v2 = vld [vmem:[%s1929_s1 + $0x1a0] sm:$0xff]   ;;  %v1508_v3 = vld [vmem:[%s1929_s1 + $0x1d8] sm:$0xff]  }
  0x12   :  { %1341 = vmatprep.subr.bf16.mxu1 %v1475_v17  ;;  %v239_v46 = vcombine.high %v1713_v43, %v1713_v43  ;;  %v260_v47 = vrot.slane %v238_v44, %v1709_v41  ;;  %v268_v50 = vcombine.high %v246_v45, %v246_v45  ;;  %v1509_v4 = vld [vmem:[%s1929_s1 + $0x118] sm:$0xff]   ;;  %v1511_v5 = vld [vmem:[%s1929_s1 + $0x150] sm:$0xff]   ;;  %v1515_v9 = vld [vmem:[%s1929_s1 + $0x148] sm:$0xff]   ;;  %v253_v17 = vrot.slane %v1713_v43, %v1709_v41 }
  0x13   :  { %v1510_v6 = vld [vmem:[%s1929_s1 + $0x198] sm:$0xff]   ;;  %v1512_v7 = vld [vmem:[%s1929_s1 + $0x1d0] sm:$0xff]   ;;  %v1516_v11 = vld [vmem:[%s1929_s1 + $0x1c8] sm:$0xff]  }
  0x14   :  { %1320 = vmatpush3.bf16.msra.mxu0 %v1476_v18  ;;  %v267_v49 = vrot.slane %v239_v46, %v1709_v41  ;;  %947 = vmatprep.mubr.bf16.mxu0 %v260_v47  ;;  %v270_v52 = vcombine.high %v260_v47, %v260_v47  ;;  %v1513_v8 = vld [vmem:[%s1929_s1 + $0x110] sm:$0xff]   ;;  %v1517_v12 = vld [vmem:[%s1929_s1 + $0x108] sm:$0xff]   ;;  %v1519_v13 = vld [vmem:[%s1929_s1 + $0x140] sm:$0xff]  }
  0x15   :  { %1342 = vmatpush3.bf16.msra.mxu1 %v1477_v19  ;;  %1321 = vmatprep.subr.bf16.mxu0 %v1478_v20  ;;  %v1514_v10 = vld [vmem:[%s1929_s1 + $0x190] sm:$0xff]   ;;  %v1518_v14 = vld [vmem:[%s1929_s1 + $0x188] sm:$0xff]   ;;  %v1520_v15 = vld [vmem:[%s1929_s1 + $0x1c0] sm:$0xff]  }
  0x16   :  { %1343 = vmatprep.subr.bf16.mxu1 %v1479_v21  ;;  %v271_v55 = vcombine.high %v267_v49, %v267_v49  ;;  %987 = vmatprep.mubr.bf16.mxu1 %v270_v52  ;;  %v1521_v16 = vld [vmem:[%s1929_s1 + $0x100] sm:$0xff]   ;;  %v1523_v18 = vld [vmem:[%s1929_s1 + $0x278] sm:$0xff]   ;;  %v1530_v28 = vld [vmem:[%s1929_s1 + $0x2b0] sm:$0xff]  }
  0x17   :  { %v1522_v19 = vld [vmem:[%s1929_s1 + $0x180] sm:$0xff]   ;;  %v1524_v20 = vld [vmem:[%s1929_s1 + $0x2f8] sm:$0xff]   ;;  %v1543_v39 = vld [vmem:[%s1929_s1 + $0x250] sm:$0xff]  }
  0x18   :  { %1322 = vmatpush3.bf16.msra.mxu0 %v1480_v22  ;;  %v1525_v21 = vld [vmem:[%s1929_s1 + $0x238] sm:$0xff]   ;;  %v269_v22 = vcombine.high %v253_v17, %v253_v17  ;;  %v1536_v33 = vld [vmem:[%s1929_s1 + $0x2e0] sm:$0xff]   ;;  %v1544_v42 = vld [vmem:[%s1929_s1 + $0x2d0] sm:$0xff]  }
  0x19   :  { %1344 = vmatpush3.bf16.msra.mxu1 %v1481_v23  ;;  %1323 = vmatprep.subr.bf16.mxu0 %v1482_v24  ;;  %v1527_v23 = vld [vmem:[%s1929_s1 + $0x270] sm:$0xff]   ;;  %v1526_v24 = vld [vmem:[%s1929_s1 + $0x2b8] sm:$0xff]   ;;  %v1537_v34 = vld [vmem:[%s1929_s1 + $0x220] sm:$0xff]  }
  0x1a   :  { %1345 = vmatprep.subr.bf16.mxu1 %v1483_v25  ;;  %v1528_v25 = vld [vmem:[%s1929_s1 + $0x2f0] sm:$0xff]   ;;  %v1538_v36 = vld [vmem:[%s1929_s1 + $0x2a0] sm:$0xff]   ;;  %v1540_v37 = vld [vmem:[%s1929_s1 + $0x2d8] sm:$0xff]  }
  0x1b   :  { %v1542_v40 = vld [vmem:[%s1929_s1 + $0x298] sm:$0xff]   ;;  %v1545_v43 = vld [vmem:[%s1929_s1 + $0x210] sm:$0xff]   ;;  %v1547_v44 = vld [vmem:[%s1929_s1 + $0x248] sm:$0xff]  }
  0x1c   :  { %1324 = vmatpush3.bf16.msra.mxu0 %v1484_v26  ;;  %v1529_v26 = vld [vmem:[%s1929_s1 + $0x230] sm:$0xff]  }
  0x1d   :  { %1346 = vmatpush3.bf16.msra.mxu1 %v1485_v27  ;;  %1325 = vmatprep.subr.bf16.mxu0 %v1486_v29  ;;  %v1531_v27 = vld [vmem:[%s1929_s1 + $0x268] sm:$0xff]   ;;  %v1546_v46 = vld [vmem:[%s1929_s1 + $0x290] sm:$0xff]  }
  0x1e   :  { %1347 = vmatprep.subr.bf16.mxu1 %v1487_v30  ;;  %v1532_v29 = vld [vmem:[%s1929_s1 + $0x2e8] sm:$0xff]  }
  0x1f   :  { %v1533_v30 = vld [vmem:[%s1929_s1 + $0x228] sm:$0xff]  }
  0x20   :  { %1326 = vmatpush3.bf16.msra.mxu0 %v1488_v31  ;;  %v1535_v31 = vld [vmem:[%s1929_s1 + $0x260] sm:$0xff]  }
  0x21   :  { %1348 = vmatpush3.bf16.msra.mxu1 %v1489_v32  ;;  %1355 = vmatprep.subr.bf16.mxu0 %v1491_v35  ;;  %v1534_v32 = vld [vmem:[%s1929_s1 + $0x2a8] sm:$0xff]   ;;  %v1539_v35 = vld [vmem:[%s1929_s1 + $0x258] sm:$0xff]  }
  0x22   :  { %1377 = vmatprep.subr.bf16.mxu1 %v1492_v38  ;;  %v1541_v38 = vld [vmem:[%s1929_s1 + $0x218] sm:$0xff]  }
  0x23   :  { %948 = vmatmul.mubr.bf16.vlgmr.msra.gmra.mxu0 %v246_v45  ;;  %v17_v45 = vld [vmem:[%s1928_s0 + $0x8] sm:$0x1f] }
  0x24   :  { %1356 = vmatpush3.bf16.msra.mxu0 %v1493_v48  ;;  %988 = vmatmul.mubr.bf16.vlgmr.msra.gmra.mxu1 %v268_v50  ;;  %v279_v47 = vrot.slane %v17_v45, %v1709_v41  ;;  %v1548_v48 = vld [vmem:[%s1929_s1 + $0x2c8] sm:$0xff]  }
  0x25   :  { %1357 = vmatprep.subr.bf16.mxu0 %v1495_v51  ;;  %1378 = vmatpush3.bf16.msra.mxu1 %v1494_v53 }
  0x26   :  { %1027 = vmatprep.mubr.bf16.mxu0 %v267_v49  ;;  %1379 = vmatprep.subr.bf16.mxu1 %v1496_v54 }
  0x27   :  { %1067 = vmatprep.mubr.bf16.mxu1 %v271_v55 }
  0x28   :  { %1358 = vmatpush3.bf16.msra.mxu0 %v1497_v56 }
  0x29   :  { %1359 = vmatprep.subr.bf16.mxu0 %v1499_v57  ;;  %1380 = vmatpush3.bf16.msra.mxu1 %v1498_v58 }
  0x2a   :  { %1381 = vmatprep.subr.bf16.mxu1 %v1500_v59 }
  0x2c   :  { %1360 = vmatpush3.bf16.msra.mxu0 %v1501_v60 }
  0x2d   :  { %1361 = vmatprep.subr.bf16.mxu0 %v1503_v61  ;;  %1382 = vmatpush3.bf16.msra.mxu1 %v1502_v62 }
  0x2e   :  { %1383 = vmatprep.subr.bf16.mxu1 %v1504_v63 }
  0x30   :  { %1362 = vmatpush3.bf16.msra.mxu0 %v1505_v0 }
  0x31   :  { %1363 = vmatprep.subr.bf16.mxu0 %v1507_v1  ;;  %1384 = vmatpush3.bf16.msra.mxu1 %v1506_v2 }
  0x32   :  { %1385 = vmatprep.subr.bf16.mxu1 %v1508_v3 }
  0x34   :  { %1364 = vmatpush3.bf16.msra.mxu0 %v1509_v4 }
  0x35   :  { %1365 = vmatprep.subr.bf16.mxu0 %v1511_v5  ;;  %1386 = vmatpush3.bf16.msra.mxu1 %v1510_v6 }
  0x36   :  { %1387 = vmatprep.subr.bf16.mxu1 %v1512_v7 }
  0x38   :  { %1366 = vmatpush3.bf16.msra.mxu0 %v1513_v8 }
  0x39   :  { %1367 = vmatprep.subr.bf16.mxu0 %v1515_v9  ;;  %1388 = vmatpush3.bf16.msra.mxu1 %v1514_v10 }
  0x3a   :  { %1389 = vmatprep.subr.bf16.mxu1 %v1516_v11 }
  0x3c   :  { %1368 = vmatpush3.bf16.msra.mxu0 %v1517_v12 }
  0x3d   :  { %1369 = vmatprep.subr.bf16.mxu0 %v1519_v13  ;;  %1390 = vmatpush3.bf16.msra.mxu1 %v1518_v14 }
  0x3e   :  { %1391 = vmatprep.subr.bf16.mxu1 %v1520_v15 }
  0x40   :  { %1370 = vmatpush3.bf16.msra.mxu0 %v1521_v16 }
  0x41   :  { %1399 = vmatprep.subr.bf16.mxu0 %v1523_v18  ;;  %1392 = vmatpush3.bf16.msra.mxu1 %v1522_v19 }
  0x42   :  { %1421 = vmatprep.subr.bf16.mxu1 %v1524_v20 }
  0x43   :  { %1028 = vmatmul.mubr.bf16.vlgmr.msra.gmra.mxu0 %v253_v17 }
  0x44   :  { %1400 = vmatpush3.bf16.msra.mxu0 %v1525_v21  ;;  %1068 = vmatmul.mubr.bf16.vlgmr.msra.gmra.mxu1 %v269_v22 }
  0x45   :  { %1401 = vmatprep.subr.bf16.mxu0 %v1527_v23  ;;  %1422 = vmatpush3.bf16.msra.mxu1 %v1526_v24 }
  0x46   :  { %1423 = vmatprep.subr.bf16.mxu1 %v1528_v25 }
  0x48   :  { %1402 = vmatpush3.bf16.msra.mxu0 %v1529_v26 }
  0x49   :  { %1403 = vmatprep.subr.bf16.mxu0 %v1531_v27  ;;  %1424 = vmatpush3.bf16.msra.mxu1 %v1530_v28 }
  0x4a   :  { %1425 = vmatprep.subr.bf16.mxu1 %v1532_v29 }
  0x4c   :  { %1404 = vmatpush3.bf16.msra.mxu0 %v1533_v30 }
  0x4d   :  { %1405 = vmatprep.subr.bf16.mxu0 %v1535_v31  ;;  %1426 = vmatpush3.bf16.msra.mxu1 %v1534_v32 }
  0x4e   :  { %1427 = vmatprep.subr.bf16.mxu1 %v1536_v33 }
  0x50   :  { %1406 = vmatpush3.bf16.msra.mxu0 %v1537_v34 }
  0x51   :  { %1407 = vmatprep.subr.bf16.mxu0 %v1539_v35  ;;  %1428 = vmatpush3.bf16.msra.mxu1 %v1538_v36 }
  0x52   :  { %1429 = vmatprep.subr.bf16.mxu1 %v1540_v37 }
  0x54   :  { %1408 = vmatpush3.bf16.msra.mxu0 %v1541_v38 }
  0x55   :  { %1409 = vmatprep.subr.bf16.mxu0 %v1543_v39  ;;  %1430 = vmatpush3.bf16.msra.mxu1 %v1542_v40 }
  0x56   :  { %1431 = vmatprep.subr.bf16.mxu1 %v1544_v42 }
  0x57   :  { %8 = vsyncpa [#allocation3], 0  ;;  %v1549_v49 = vld [vmem:[%s1929_s1 + $0x208] sm:$0xff]   ;;  %v287_v50 = vcombine.high %v279_v47, %v279_v47  ;;  %v1551_v51 = vld [vmem:[%s1929_s1 + $0x240] sm:$0xff]   ;;  %v294_v57 = vrot.slane %v279_v47, %v1709_v41  ;;  %v272_v59 = vcombine.high %v17_v45, %v17_v45  ;;  %v1581_v62 = vmov 0.0   ;;  %s1583_s23 = smov [#allocation2]  }
  0x58   :  { %1410 = vmatpush3.bf16.msra.mxu0 %v1545_v43  ;;  %v1550_v52 = vld [vmem:[%s1929_s1 + $0x288] sm:$0xff]   ;;  %v1552_v54 = vld [vmem:[%s1929_s1 + $0x2c0] sm:$0xff]   ;;  %vm1582_vm0 = vmmov 0   ;;  %vm911_vm1 = vcmask 261120   ;;  %s1203_s24 = sshll.u32 %s1583_s23, 4  ;;  %vm1195_vm2 = vcmask 74752   ;;  %s1204_s24 = int_to_ptr.vmem [resolvable:$true] %s1203_s24 }
  0x59   :  { %1411 = vmatprep.subr.bf16.mxu0 %v1547_v44  ;;  %1432 = vmatpush3.bf16.msra.mxu1 %v1546_v46  ;;  %v308_v53 = vrot.slane %v287_v50, %v1709_v41  ;;  %v1553_v55 = vld [vmem:[%s1929_s1 + $0x200] sm:$0xff]   ;;  %v1556_v60 = vld [vmem:[%s1929_s1 + $0x308] sm:$0xff]   ;;  %v309_v61 = vcombine.high %v294_v57, %v294_v57  ;;  %v286_v63 = vrot.slane %v272_v59, %v1709_v41  ;;  %p1563_p1 = scmp.lt.s32.totalorder %s1204_s24, %s1204_s24 }
  0x5a   :  { %1433 = vmatprep.subr.bf16.mxu1 %v1548_v48  ;;  %v1554_v58 = vld [vmem:[%s1929_s1 + $0x280] sm:$0xff]  }
  0x5b   :  { %1107 = vmatprep.mubr.bf16.mxu0 %v308_v53  ;;  %v310_v56 = vcombine.high %v308_v53, %v308_v53  ;;  %v1557_v0 = vld [vmem:[%s1929_s1 + $0x300] sm:$0xff]   ;;  %v301_v1 = vrot.slane %v286_v63, %v1709_v41 }
  0x5c   :  { %1412 = vmatpush3.bf16.msra.mxu0 %v1549_v49  ;;  %v1211_v18 = vld [vmem:[%s1930_s2] ss:$0 sm:$0xff]  ;;  %s1558_s2 = scalar_lea.vmem %s1204_s24, 32 }
  0x5d   :  { %1413 = vmatprep.subr.bf16.mxu0 %v1551_v51  ;;  %1434 = vmatpush3.bf16.msra.mxu1 %v1550_v52  ;;  %p1559_p0 = scmp.ne.s32.totalorder %s1204_s24, %s1558_s2  ;;  %p1564_p2 = scmp.lt.s32.totalorder %s1558_s2, %s1558_s2 }
  0x5e   :  { %1147 = vmatprep.mubr.bf16.mxu1 %v310_v56  ;;  %1435 = vmatprep.subr.bf16.mxu1 %v1552_v54 }
  0x5f   :  { %p1565_p3 = por %p1564_p2, %p1563_p1 }
  0x60   :  { %1414 = vmatpush3.bf16.msra.mxu0 %v1553_v55 }
  0x61   :  { %1446 = vmatprep.subr.bf16.mxu0 %v1581_v62  ;;  %1436 = vmatpush3.bf16.msra.mxu1 %v1554_v58  ;;  %p1566_p4 = pnand %p1565_p3, %p1559_p0 }
  0x63   :  { %1108 = vmatmul.mubr.bf16.vlgmr.msra.gmra.mxu0 %v294_v57 }
  0x64   :  { %1447 = vmatpush3.bf16.msra.mxu0 %v1556_v60  ;;  %1450 = vmatprep.mubr.msk.bf16.mxu0 %vm1582_vm0, %v1581_v62 }
  0x65   :  { %1148 = vmatmul.mubr.bf16.vlgmr.msra.gmra.mxu1 %v309_v61  ;;  %1448 = vmatprep.subr.bf16.mxu0 %v1581_v62 }
  0x68   :  { %1449 = vmatpush3.bf16.msra.mxu0 %v1557_v0 }
  0x6b   :  { %1451 = vmatmul.mubr.msk.bf16.vlgmr.msra.gmra.mxu0 %vm911_vm1, %v301_v1 }
  0xe3   :  { %v1327_v2 = vpop.f32.mrf.mxu0 }
  0xe4   :  { %v1349_v3 = vpop.f32.mrf.mxu1 }
  0xe5   :  { %v1328_v4 = vpop.f32.mrf.mxu0 }
  0xe6   :  { %v1350_v5 = vpop.f32.mrf.mxu1  ;;  %v1329_v41 = vadd.f32 %v1328_v4, %v1327_v2 }
  0xe7   :  { %v1330_v6 = vpop.f32.mrf.mxu0  ;;  %v1351_v20 = vadd.f32 %v1350_v5, %v1349_v3 }
  0xe8   :  { %v1352_v7 = vpop.f32.mrf.mxu1  ;;  %v950_v19 = vadd.f32 %v1329_v41, %v1211_v18 }
  0xe9   :  { %v1331_v8 = vpop.f32.mrf.mxu0 }
  0xea   :  { %v1353_v9 = vpop.f32.mrf.mxu1  ;;  %v990_v22 = vadd.f32 %v1351_v20, %v950_v19 }
 0x103   :  { %v1371_v10 = vpop.f32.mrf.mxu0 }
 0x104   :  { %v1393_v11 = vpop.f32.mrf.mxu1 }
 0x105   :  { %v1372_v12 = vpop.f32.mrf.mxu0 }
 0x106   :  { %v1394_v13 = vpop.f32.mrf.mxu1  ;;  %v1373_v21 = vadd.f32 %v1372_v12, %v1371_v10 }
 0x107   :  { %v1374_v14 = vpop.f32.mrf.mxu0  ;;  %v1395_v24 = vadd.f32 %v1394_v13, %v1393_v11 }
 0x108   :  { %v1396_v15 = vpop.f32.mrf.mxu1  ;;  %v1030_v23 = vadd.f32 %v1373_v21, %v990_v22 }
 0x109   :  { %v1375_v16 = vpop.f32.mrf.mxu0 }
 0x10a   :  { %v1397_v17 = vpop.f32.mrf.mxu1  ;;  %v1070_v28 = vadd.f32 %v1395_v24, %v1030_v23 }
 0x123   :  { %v1415_v25 = vpop.f32.mrf.mxu0 }
 0x125   :  { %v1437_v26 = vpop.f32.mrf.mxu1  ;;  %v1416_v27 = vpop.f32.mrf.mxu0 }
 0x126   :  { %v1417_v29 = vadd.f32 %v1416_v27, %v1415_v25 }
 0x127   :  { %v1438_v30 = vpop.f32.mrf.mxu1  ;;  %v1418_v31 = vpop.f32.mrf.mxu0 }
 0x128   :  { %v1110_v32 = vadd.f32 %v1417_v29, %v1070_v28  ;;  %v1439_v33 = vadd.f32 %v1438_v30, %v1437_v26 }
 0x129   :  { %v1440_v34 = vpop.f32.mrf.mxu1  ;;  %v1419_v35 = vpop.f32.mrf.mxu0 }
 0x12a   :  { %v1150_v36 = vadd.f32 %v1439_v33, %v1110_v32 }
 0x12b   :  { %v1441_v37 = vpop.f32.mrf.mxu1  ;;  %v1189_v38 = vpop.f32.mrf.mxu0 }
 0x12c   :  { %v1190_v39 = vadd.f32 %v1189_v38, %v1150_v36 }
 0x12d   :  { %v1452_v40 = vpop.f32.mrf.mxu0 }
 0x12e   :  { %1196 = vst.msk [vmem:[#allocation2] sm:$0x3] %vm1195_vm2, %v1190_v39 }
 0x12f   :  { %v1192_v42 = vpop.f32.mrf.mxu0 }
 0x130   :  { %1569 = shalt.err (!%p1566_p4)
}
 0x131   :  { %1206 = dma.vmem_to_hbm [thread:$0]  %s1204_s24, 32, %s1931_s3, [#allocation3]   ;;  %v1453_v43 = vpop.f32.mrf.mxu0 }
 0x132   :  { %1578 = dma.done.wait [#allocation3], 32  }
 0x133   :  { %1579 = vsyncadd [#allocation3], 4294967264 }
 0x134   :  { %1210 = vsyncpa [#allocation3], 1 }

</bundles_post_ra>
